<compile_context>
chip_gen: v7x
topology: tpu7x:2x2x1
jax: 0.10.0
libtpu: 0.0.40
codegen_flags: <defaults>
</compile_context>

<pallas_src>
import numpy as np
import jax
import jax.numpy as jnp
from jax.experimental import pallas as pl
from jax.experimental.pallas import tpu as pltpu

OUTPUT_AGL = "agl"
OUTPUT_VFLOW_DIRECTION = "vflow_direction"
OUTPUT_VFLOW_SCALE = "vflow_scale"
OUTPUT_VFLOW_ANGLE = "vflow_angle"


# ------------------------------------------------------------------ trace-time helpers
def bilinear_resize_matrix(in_size, out_size):
    """Row interpolation matrix matching F.interpolate(mode='bilinear', align_corners=False)."""
    scale = in_size / out_size
    dst = np.arange(out_size, dtype=np.float64)
    src = np.maximum((dst + 0.5) * scale - 0.5, 0.0)
    i0 = np.minimum(np.floor(src).astype(np.int64), in_size - 1)
    i1 = np.minimum(i0 + 1, in_size - 1)
    w1 = (src - i0).astype(np.float32)
    w0 = 1.0 - w1
    m = np.zeros((out_size, in_size), dtype=np.float32)
    m[np.arange(out_size), i0] += w0
    m[np.arange(out_size), i1] += w1
    return m


# ------------------------------------------------------------------------ fused kernel
def _fused_tta_kernel(x_ref, rwa_ref, at_ref, b1_ref, dt_ref, rwd_ref, mcol_ref,
                      gt_ref, ba_ref, vfb_ref, agl_ref, vf_ref):
    S = rwa_ref.shape[0]
    x_t = x_ref[0]                       # (W, C*H)   pixels on sublanes, C*H on lanes
    b1row = b1_ref[...]                  # (1, HR)

    agl_acc = None
    vf_acc = None
    for s in range(S):                   # static unroll over scales (S small)
        # augment resize (W-dir), then H-resize with the 1x1-conv weight folded in
        tmp_t = jnp.dot(rwa_ref[s], x_t, preferred_element_type=jnp.float32)    # (Wo, C*H)
        lin_t = jnp.dot(tmp_t, at_ref[s], preferred_element_type=jnp.float32)   # (Wo, HR)
        feat_t = jnp.maximum(lin_t + b1row, 0.0)                                # ReLU(1x1 conv)

        # AGL head + deaugment resize (head weight folded into D^T, 1/S into rwd)
        agl_h_t = jnp.dot(feat_t, dt_ref[s], preferred_element_type=jnp.float32)   # (Wo, H)
        agl_c_t = jnp.dot(rwd_ref[s], agl_h_t, preferred_element_type=jnp.float32) # (W, H)

        # masked pooled mean + vflow heads (row mask / scaling folded into G^T)
        pooled = jnp.sum(feat_t * mcol_ref[s], axis=0, keepdims=True)            # (1, HR)
        hd = jnp.dot(pooled, gt_ref[s], preferred_element_type=jnp.float32)      # (1, 128)

        agl_acc = agl_c_t if s == 0 else agl_acc + agl_c_t
        vf_acc = hd if s == 0 else vf_acc + hd

    agl_ref[0] = agl_acc + ba_ref[...]        # biases added once (deaug rows sum to 1)
    vf_ref[0] = vf_acc + vfb_ref[...]


# --------------------------------------------------------------------- TTA forward
def geopose_multiscale_tta_forward(params, size_offsets, image):
    """Mirror of GeoposeMultiscaleTTAModel.forward(image=image), fully fused."""
    B, C, H, W = image.shape
    S = len(size_offsets)
    hidden = params["w1"].shape[1]
    ho_list = [H + o for o in size_offsets]
    wo_list = [W + o for o in size_offsets]
    Ho, Wo = max(ho_list), max(wo_list)          # per-scale padded spatial dims
    HR = hidden * Ho
    CH = C * H

    # per-scale resize matrices, zero-padded to the common (Ho, Wo) (numpy, trace time)
    rh_aug = np.zeros((S, Ho, H), np.float32)
    rw_aug = np.zeros((S, Wo, W), np.float32)
    rh_de = np.zeros((S, H, Ho), np.float32)
    rw_de = np.zeros((S, W, Wo), np.float32)     # 1/S (scale mean) folded in
    mcol = np.zeros((S, Wo, 1), np.float32)      # valid-column (Wo) mask
    rmask = np.zeros((S, Ho), np.float32)        # valid-row mask / (ho*wo*S)
    for si, o in enumerate(size_offsets):
        ho, wo = H + o, W + o
        rh_aug[si, :ho, :] = bilinear_resize_matrix(H, ho)
        rw_aug[si, :wo, :] = bilinear_resize_matrix(W, wo)
        rh_de[si, :, :ho] = bilinear_resize_matrix(ho, H)
        rw_de[si, :, :wo] = bilinear_resize_matrix(wo, W) / S
        mcol[si, :wo, 0] = 1.0
        rmask[si, :ho] = 1.0 / (ho * wo * S)

    w1 = params["w1"]                                     # (C, hidden)
    b1 = params["b1"].reshape(hidden)
    wa = params["wa"].reshape(hidden)
    ba = params["ba"].reshape(1, 1)
    wcat = jnp.concatenate([params["wd"], params["ws"]], axis=1)      # (hidden, 3)
    wcat = jnp.pad(wcat, ((0, 0), (0, 128 - wcat.shape[1])))          # (hidden, 128) lane-dense
    vfb = jnp.concatenate([params["bd"].reshape(2), params["bs"].reshape(1),
                           jnp.zeros((125,), jnp.float32)]).reshape(1, 128)

    # fold model weights into the per-scale matrices (tiny trace-time einsums),
    # all transposed so HR lands on the lane axis inside the kernel.
    a_t = jnp.einsum("ch,sik->sckhi", w1, rh_aug).reshape(S, CH, HR)   # A^T
    d_t = jnp.einsum("h,spi->ship", wa, rh_de).reshape(S, HR, H)       # D^T
    g_t = jnp.einsum("hk,si->shik", wcat, rmask).reshape(S, HR, 128)   # G^T (heads + mean)
    b1row = jnp.repeat(b1, Ho).reshape(1, HR)

    # image as x^T: (B, W, C*H) — pixels on sublanes, channels*rows on lanes
    x_t = jnp.transpose(image, (0, 3, 1, 2)).reshape(B, W, CH)

    agl_t, vf = pl.pallas_call(
        _fused_tta_kernel,
        out_shape=(
            jax.ShapeDtypeStruct((B, W, H), jnp.float32),
            jax.ShapeDtypeStruct((B, 1, 128), jnp.float32),
        ),
        grid=(B,),
        in_specs=[
            pl.BlockSpec((1, W, CH), lambda b: (b, 0, 0)),     # x^T (per image)
            pl.BlockSpec((S, Wo, W), lambda b: (0, 0, 0)),     # augment W-resize (all S, resident)
            pl.BlockSpec((S, CH, HR), lambda b: (0, 0, 0)),    # A^T = (w1 ⊗ Rh_aug)^T
            pl.BlockSpec((1, HR), lambda b: (0, 0)),           # conv bias row
            pl.BlockSpec((S, HR, H), lambda b: (0, 0, 0)),     # D^T = (wa ⊗ Rh_de)^T
            pl.BlockSpec((S, W, Wo), lambda b: (0, 0, 0)),     # deaug W-resize / S
            pl.BlockSpec((S, Wo, 1), lambda b: (0, 0, 0)),     # column mask
            pl.BlockSpec((S, HR, 128), lambda b: (0, 0, 0)),   # G^T (heads + masked mean)
            pl.BlockSpec((1, 1), lambda b: (0, 0)),            # AGL bias
            pl.BlockSpec((1, 128), lambda b: (0, 0)),          # packed vflow bias row
        ],
        out_specs=(
            pl.BlockSpec((1, W, H), lambda b: (b, 0, 0)),      # AGL^T
            pl.BlockSpec((1, 1, 128), lambda b: (b, 0, 0)),    # packed vflow slab (lane-dense)
        ),
        compiler_params=pltpu.CompilerParams(
            dimension_semantics=("parallel",)),
    )(x_t, jnp.asarray(rw_aug), a_t, b1row, d_t, jnp.asarray(rw_de),
      jnp.asarray(mcol), g_t, ba, vfb)

    agl = jnp.transpose(agl_t, (0, 2, 1))        # (B, H, W)
    dirv = vf[:, 0, 0:2]
    scl = vf[:, 0, 2:3]
    return {
        OUTPUT_AGL: agl,
        OUTPUT_VFLOW_DIRECTION: dirv,
        OUTPUT_VFLOW_SCALE: scl,
        # TODO(synk): tensor_vector2angle (atan2) stays in plain JAX glue — a per-image
        # scalar op on the (B, 2) direction output, not a Pallas hot path.
        OUTPUT_VFLOW_ANGLE: jnp.arctan2(dirv[:, 1], dirv[:, 0]),
    }


# -------------------------------------------------------------------- pure JAX reference
def ref_forward(params, size_offsets, image):
    B, C, H, W = image.shape
    agl_list, dir_list, scl_list = [], [], []
    for o in size_offsets:
        Ho, Wo = H + o, W + o
        rh = bilinear_resize_matrix(H, Ho)
        rw = bilinear_resize_matrix(W, Wo)
        xi = jnp.einsum("ih,bchw,jw->bcij", rh, image, rw)
        xf = jnp.transpose(xi, (0, 2, 3, 1)).reshape(B, Ho * Wo, C)
        feat = jnp.maximum(xf @ params["w1"] + params["b1"], 0.0)
        agl = (feat @ params["wa"] + params["ba"]).reshape(B, Ho, Wo)
        pooled = feat.mean(axis=1)
        dir_list.append(pooled @ params["wd"] + params["bd"])
        scl_list.append(pooled @ params["ws"] + params["bs"])
        rh_b = bilinear_resize_matrix(Ho, H)
        rw_b = bilinear_resize_matrix(Wo, W)
        agl_list.append(jnp.einsum("ih,bhw,jw->bij", rh_b, agl, rw_b))
    agl = jnp.mean(jnp.stack(agl_list, 0), axis=0)
    dirv = jnp.mean(jnp.stack(dir_list, 0), axis=0)
    scl = jnp.mean(jnp.stack(scl_list, 0), axis=0)
    return {
        OUTPUT_AGL: agl,
        OUTPUT_VFLOW_DIRECTION: dirv,
        OUTPUT_VFLOW_SCALE: scl,
        OUTPUT_VFLOW_ANGLE: jnp.arctan2(dirv[:, 1], dirv[:, 0]),
    }


def init_params(key, c_in, hidden):
    ks = jax.random.split(key, 8)
    return {
        "w1": jax.random.normal(ks[0], (c_in, hidden), jnp.float32) * 0.2,
        "b1": jax.random.normal(ks[1], (1, hidden), jnp.float32) * 0.1,
        "wa": jax.random.normal(ks[2], (hidden, 1), jnp.float32) * 0.2,
        "ba": jax.random.normal(ks[3], (1, 1), jnp.float32) * 0.1,
        "wd": jax.random.normal(ks[4], (hidden, 2), jnp.float32) * 0.2,
        "bd": jax.random.normal(ks[5], (1, 2), jnp.float32) * 0.1,
        "ws": jax.random.normal(ks[6], (hidden, 1), jnp.float32) * 0.2,
        "bs": jax.random.normal(ks[7], (1, 1), jnp.float32) * 0.1,
    }


if __name__ == "__main__":
    key = jax.random.PRNGKey(0)
    k_img, k_par = jax.random.split(key)
    B, C, H, W, hidden = 2, 4, 16, 16, 32
    size_offsets = [-4, 0, 4]

    image = jax.random.normal(k_img, (B, C, H, W), jnp.float32)
    params = init_params(k_par, C, hidden)

    out = geopose_multiscale_tta_forward(params, size_offsets, image)
    out = jax.tree_util.tree_map(jax.block_until_ready, out)

    ref = ref_forward(params, size_offsets, image)
    for k in (OUTPUT_AGL, OUTPUT_VFLOW_DIRECTION, OUTPUT_VFLOW_SCALE, OUTPUT_VFLOW_ANGLE):
        np.testing.assert_allclose(np.asarray(out[k]), np.asarray(ref[k]),
                                   rtol=1e-4, atol=1e-4)

    print("KERNEL_OK")
</pallas_src>

<mosaic_0001>
module attributes {stable_mosaic.version = 11 : i64} {
  func.func @_fused_tta_kernel(%arg0: i32, %arg1: memref<1x16x64xf32, #tpu.memory_space<vmem>>, %arg2: memref<3x20x16xf32, #tpu.memory_space<vmem>>, %arg3: memref<3x64x640xf32, #tpu.memory_space<vmem>>, %arg4: memref<1x640xf32, #tpu.memory_space<vmem>>, %arg5: memref<3x640x16xf32, #tpu.memory_space<vmem>>, %arg6: memref<3x16x20xf32, #tpu.memory_space<vmem>>, %arg7: memref<3x20x1xf32, #tpu.memory_space<vmem>>, %arg8: memref<3x640x128xf32, #tpu.memory_space<vmem>>, %arg9: memref<1x1xf32, #tpu.memory_space<vmem>>, %arg10: memref<1x128xf32, #tpu.memory_space<vmem>>, %arg11: memref<1x16x16xf32, #tpu.memory_space<vmem>>, %arg12: memref<1x1x128xf32, #tpu.memory_space<vmem>>) attributes {dimension_semantics = [#tpu.dimension_semantics<parallel>], iteration_bounds = array<i64: 2>, scalar_prefetch = 0 : i64, scratch_operands = 0 : i64, tpu.core_type = #tpu.core_type<tc>, window_params = [{transform_indices = @transform_0, window_bounds = array<i64: 1, 16, 64>}, {pipeline_mode = #tpu.pipeline_mode<synchronous>, transform_indices = @transform_1, window_bounds = array<i64: 3, 20, 16>}, {pipeline_mode = #tpu.pipeline_mode<synchronous>, transform_indices = @transform_2, window_bounds = array<i64: 3, 64, 640>}, {pipeline_mode = #tpu.pipeline_mode<synchronous>, transform_indices = @transform_3, window_bounds = array<i64: 1, 640>}, {pipeline_mode = #tpu.pipeline_mode<synchronous>, transform_indices = @transform_4, window_bounds = array<i64: 3, 640, 16>}, {pipeline_mode = #tpu.pipeline_mode<synchronous>, transform_indices = @transform_5, window_bounds = array<i64: 3, 16, 20>}, {pipeline_mode = #tpu.pipeline_mode<synchronous>, transform_indices = @transform_6, window_bounds = array<i64: 3, 20, 1>}, {pipeline_mode = #tpu.pipeline_mode<synchronous>, transform_indices = @transform_7, window_bounds = array<i64: 3, 640, 128>}, {pipeline_mode = #tpu.pipeline_mode<synchronous>, transform_indices = @transform_8, window_bounds = array<i64: 1, 1>}, {pipeline_mode = #tpu.pipeline_mode<synchronous>, transform_indices = @transform_9, window_bounds = array<i64: 1, 128>}, {transform_indices = @transform_10, window_bounds = array<i64: 1, 16, 16>}, {transform_indices = @transform_11, window_bounds = array<i64: 1, 1, 128>}]} {
    %c0 = arith.constant 0 : index
    %c0_0 = arith.constant 0 : index
    %c0_1 = arith.constant 0 : index
    %0 = vector.load %arg1[%c0, %c0_0, %c0_1] : memref<1x16x64xf32, #tpu.memory_space<vmem>>, vector<1x16x64xf32>
    %1 = vector.shape_cast %0 : vector<1x16x64xf32> to vector<16x64xf32>
    %c0_2 = arith.constant 0 : index
    %c0_3 = arith.constant 0 : index
    %2 = vector.load %arg4[%c0_2, %c0_3] : memref<1x640xf32, #tpu.memory_space<vmem>>, vector<1x640xf32>
    %c0_4 = arith.constant 0 : index
    %c0_5 = arith.constant 0 : index
    %c0_6 = arith.constant 0 : index
    %3 = vector.load %arg2[%c0_4, %c0_5, %c0_6] : memref<3x20x16xf32, #tpu.memory_space<vmem>>, vector<1x20x16xf32>
    %4 = vector.shape_cast %3 : vector<1x20x16xf32> to vector<20x16xf32>
    %cst = arith.constant dense<0.000000e+00> : vector<20x64xf32>
    %5 = tpu.matmul %4, %1, %cst {dimension_numbers = #tpu.dot_dimension_numbers<[1], [0], [0], [1], [0, 0, 1, 1], [], []>} : vector<20x16xf32>, vector<16x64xf32>, vector<20x64xf32> -> vector<20x64xf32>
    %c0_7 = arith.constant 0 : index
    %c0_8 = arith.constant 0 : index
    %c0_9 = arith.constant 0 : index
    %6 = vector.load %arg3[%c0_7, %c0_8, %c0_9] : memref<3x64x640xf32, #tpu.memory_space<vmem>>, vector<1x64x640xf32>
    %7 = vector.shape_cast %6 : vector<1x64x640xf32> to vector<64x640xf32>
    %cst_10 = arith.constant dense<0.000000e+00> : vector<20x640xf32>
    %8 = tpu.matmul %5, %7, %cst_10 {dimension_numbers = #tpu.dot_dimension_numbers<[1], [0], [0], [1], [0, 0, 1, 1], [], []>} : vector<20x64xf32>, vector<64x640xf32>, vector<20x640xf32> -> vector<20x640xf32>
    %9 = vector.broadcast %2 : vector<1x640xf32> to vector<20x640xf32>
    %10 = arith.addf %8, %9 : vector<20x640xf32>
    %cst_11 = arith.constant 0.000000e+00 : f32
    %11 = vector.broadcast %cst_11 : f32 to vector<20x640xf32>
    %12 = arith.maximumf %10, %11 : vector<20x640xf32>
    %c0_12 = arith.constant 0 : index
    %c0_13 = arith.constant 0 : index
    %c0_14 = arith.constant 0 : index
    %13 = vector.load %arg5[%c0_12, %c0_13, %c0_14] : memref<3x640x16xf32, #tpu.memory_space<vmem>>, vector<1x640x16xf32>
    %14 = vector.shape_cast %13 : vector<1x640x16xf32> to vector<640x16xf32>
    %cst_15 = arith.constant dense<0.000000e+00> : vector<20x16xf32>
    %15 = tpu.matmul %12, %14, %cst_15 {dimension_numbers = #tpu.dot_dimension_numbers<[1], [0], [0], [1], [0, 0, 1, 1], [], []>} : vector<20x640xf32>, vector<640x16xf32>, vector<20x16xf32> -> vector<20x16xf32>
    %c0_16 = arith.constant 0 : index
    %c0_17 = arith.constant 0 : index
    %c0_18 = arith.constant 0 : index
    %16 = vector.load %arg6[%c0_16, %c0_17, %c0_18] : memref<3x16x20xf32, #tpu.memory_space<vmem>>, vector<1x16x20xf32>
    %17 = vector.shape_cast %16 : vector<1x16x20xf32> to vector<16x20xf32>
    %cst_19 = arith.constant dense<0.000000e+00> : vector<16x16xf32>
    %18 = tpu.matmul %17, %15, %cst_19 {dimension_numbers = #tpu.dot_dimension_numbers<[1], [0], [0], [1], [0, 0, 1, 1], [], []>} : vector<16x20xf32>, vector<20x16xf32>, vector<16x16xf32> -> vector<16x16xf32>
    %c0_20 = arith.constant 0 : index
    %c0_21 = arith.constant 0 : index
    %c0_22 = arith.constant 0 : index
    %19 = vector.load %arg7[%c0_20, %c0_21, %c0_22] : memref<3x20x1xf32, #tpu.memory_space<vmem>>, vector<1x20x1xf32>
    %20 = vector.shape_cast %19 : vector<1x20x1xf32> to vector<20x1xf32>
    %21 = vector.broadcast %20 : vector<20x1xf32> to vector<20x640xf32>
    %22 = arith.mulf %12, %21 : vector<20x640xf32>
    %cst_23 = arith.constant dense<0.000000e+00> : vector<640xf32>
    %23 = vector.multi_reduction <add>, %22, %cst_23 [0] : vector<20x640xf32> to vector<640xf32>
    %24 = vector.shape_cast %23 : vector<640xf32> to vector<1x640xf32>
    %c0_24 = arith.constant 0 : index
    %c0_25 = arith.constant 0 : index
    %c0_26 = arith.constant 0 : index
    %25 = vector.load %arg8[%c0_24, %c0_25, %c0_26] : memref<3x640x128xf32, #tpu.memory_space<vmem>>, vector<1x640x128xf32>
    %26 = vector.shape_cast %25 : vector<1x640x128xf32> to vector<640x128xf32>
    %cst_27 = arith.constant dense<0.000000e+00> : vector<1x128xf32>
    %27 = tpu.matmul %24, %26, %cst_27 {dimension_numbers = #tpu.dot_dimension_numbers<[1], [0], [0], [1], [0, 0, 1, 1], [], []>} : vector<1x640xf32>, vector<640x128xf32>, vector<1x128xf32> -> vector<1x128xf32>
    %c1 = arith.constant 1 : index
    %c0_28 = arith.constant 0 : index
    %c0_29 = arith.constant 0 : index
    %28 = vector.load %arg2[%c1, %c0_28, %c0_29] : memref<3x20x16xf32, #tpu.memory_space<vmem>>, vector<1x20x16xf32>
    %29 = vector.shape_cast %28 : vector<1x20x16xf32> to vector<20x16xf32>
    %cst_30 = arith.constant dense<0.000000e+00> : vector<20x64xf32>
    %30 = tpu.matmul %29, %1, %cst_30 {dimension_numbers = #tpu.dot_dimension_numbers<[1], [0], [0], [1], [0, 0, 1, 1], [], []>} : vector<20x16xf32>, vector<16x64xf32>, vector<20x64xf32> -> vector<20x64xf32>
    %c1_31 = arith.constant 1 : index
    %c0_32 = arith.constant 0 : index
    %c0_33 = arith.constant 0 : index
    %31 = vector.load %arg3[%c1_31, %c0_32, %c0_33] : memref<3x64x640xf32, #tpu.memory_space<vmem>>, vector<1x64x640xf32>
    %32 = vector.shape_cast %31 : vector<1x64x640xf32> to vector<64x640xf32>
    %cst_34 = arith.constant dense<0.000000e+00> : vector<20x640xf32>
    %33 = tpu.matmul %30, %32, %cst_34 {dimension_numbers = #tpu.dot_dimension_numbers<[1], [0], [0], [1], [0, 0, 1, 1], [], []>} : vector<20x64xf32>, vector<64x640xf32>, vector<20x640xf32> -> vector<20x640xf32>
    %34 = vector.broadcast %2 : vector<1x640xf32> to vector<20x640xf32>
    %35 = arith.addf %33, %34 : vector<20x640xf32>
    %cst_35 = arith.constant 0.000000e+00 : f32
    %36 = vector.broadcast %cst_35 : f32 to vector<20x640xf32>
    %37 = arith.maximumf %35, %36 : vector<20x640xf32>
    %c1_36 = arith.constant 1 : index
    %c0_37 = arith.constant 0 : index
    %c0_38 = arith.constant 0 : index
    %38 = vector.load %arg5[%c1_36, %c0_37, %c0_38] : memref<3x640x16xf32, #tpu.memory_space<vmem>>, vector<1x640x16xf32>
    %39 = vector.shape_cast %38 : vector<1x640x16xf32> to vector<640x16xf32>
    %cst_39 = arith.constant dense<0.000000e+00> : vector<20x16xf32>
    %40 = tpu.matmul %37, %39, %cst_39 {dimension_numbers = #tpu.dot_dimension_numbers<[1], [0], [0], [1], [0, 0, 1, 1], [], []>} : vector<20x640xf32>, vector<640x16xf32>, vector<20x16xf32> -> vector<20x16xf32>
    %c1_40 = arith.constant 1 : index
    %c0_41 = arith.constant 0 : index
    %c0_42 = arith.constant 0 : index
    %41 = vector.load %arg6[%c1_40, %c0_41, %c0_42] : memref<3x16x20xf32, #tpu.memory_space<vmem>>, vector<1x16x20xf32>
    %42 = vector.shape_cast %41 : vector<1x16x20xf32> to vector<16x20xf32>
    %cst_43 = arith.constant dense<0.000000e+00> : vector<16x16xf32>
    %43 = tpu.matmul %42, %40, %cst_43 {dimension_numbers = #tpu.dot_dimension_numbers<[1], [0], [0], [1], [0, 0, 1, 1], [], []>} : vector<16x20xf32>, vector<20x16xf32>, vector<16x16xf32> -> vector<16x16xf32>
    %c1_44 = arith.constant 1 : index
    %c0_45 = arith.constant 0 : index
    %c0_46 = arith.constant 0 : index
    %44 = vector.load %arg7[%c1_44, %c0_45, %c0_46] : memref<3x20x1xf32, #tpu.memory_space<vmem>>, vector<1x20x1xf32>
    %45 = vector.shape_cast %44 : vector<1x20x1xf32> to vector<20x1xf32>
    %46 = vector.broadcast %45 : vector<20x1xf32> to vector<20x640xf32>
    %47 = arith.mulf %37, %46 : vector<20x640xf32>
    %cst_47 = arith.constant dense<0.000000e+00> : vector<640xf32>
    %48 = vector.multi_reduction <add>, %47, %cst_47 [0] : vector<20x640xf32> to vector<640xf32>
    %49 = vector.shape_cast %48 : vector<640xf32> to vector<1x640xf32>
    %c1_48 = arith.constant 1 : index
    %c0_49 = arith.constant 0 : index
    %c0_50 = arith.constant 0 : index
    %50 = vector.load %arg8[%c1_48, %c0_49, %c0_50] : memref<3x640x128xf32, #tpu.memory_space<vmem>>, vector<1x640x128xf32>
    %51 = vector.shape_cast %50 : vector<1x640x128xf32> to vector<640x128xf32>
    %cst_51 = arith.constant dense<0.000000e+00> : vector<1x128xf32>
    %52 = tpu.matmul %49, %51, %cst_51 {dimension_numbers = #tpu.dot_dimension_numbers<[1], [0], [0], [1], [0, 0, 1, 1], [], []>} : vector<1x640xf32>, vector<640x128xf32>, vector<1x128xf32> -> vector<1x128xf32>
    %53 = arith.addf %18, %43 : vector<16x16xf32>
    %54 = arith.addf %27, %52 : vector<1x128xf32>
    %c2 = arith.constant 2 : index
    %c0_52 = arith.constant 0 : index
    %c0_53 = arith.constant 0 : index
    %55 = vector.load %arg2[%c2, %c0_52, %c0_53] : memref<3x20x16xf32, #tpu.memory_space<vmem>>, vector<1x20x16xf32>
    %56 = vector.shape_cast %55 : vector<1x20x16xf32> to vector<20x16xf32>
    %cst_54 = arith.constant dense<0.000000e+00> : vector<20x64xf32>
    %57 = tpu.matmul %56, %1, %cst_54 {dimension_numbers = #tpu.dot_dimension_numbers<[1], [0], [0], [1], [0, 0, 1, 1], [], []>} : vector<20x16xf32>, vector<16x64xf32>, vector<20x64xf32> -> vector<20x64xf32>
    %c2_55 = arith.constant 2 : index
    %c0_56 = arith.constant 0 : index
    %c0_57 = arith.constant 0 : index
    %58 = vector.load %arg3[%c2_55, %c0_56, %c0_57] : memref<3x64x640xf32, #tpu.memory_space<vmem>>, vector<1x64x640xf32>
    %59 = vector.shape_cast %58 : vector<1x64x640xf32> to vector<64x640xf32>
    %cst_58 = arith.constant dense<0.000000e+00> : vector<20x640xf32>
    %60 = tpu.matmul %57, %59, %cst_58 {dimension_numbers = #tpu.dot_dimension_numbers<[1], [0], [0], [1], [0, 0, 1, 1], [], []>} : vector<20x64xf32>, vector<64x640xf32>, vector<20x640xf32> -> vector<20x640xf32>
    %61 = vector.broadcast %2 : vector<1x640xf32> to vector<20x640xf32>
    %62 = arith.addf %60, %61 : vector<20x640xf32>
    %cst_59 = arith.constant 0.000000e+00 : f32
    %63 = vector.broadcast %cst_59 : f32 to vector<20x640xf32>
    %64 = arith.maximumf %62, %63 : vector<20x640xf32>
    %c2_60 = arith.constant 2 : index
    %c0_61 = arith.constant 0 : index
    %c0_62 = arith.constant 0 : index
    %65 = vector.load %arg5[%c2_60, %c0_61, %c0_62] : memref<3x640x16xf32, #tpu.memory_space<vmem>>, vector<1x640x16xf32>
    %66 = vector.shape_cast %65 : vector<1x640x16xf32> to vector<640x16xf32>
    %cst_63 = arith.constant dense<0.000000e+00> : vector<20x16xf32>
    %67 = tpu.matmul %64, %66, %cst_63 {dimension_numbers = #tpu.dot_dimension_numbers<[1], [0], [0], [1], [0, 0, 1, 1], [], []>} : vector<20x640xf32>, vector<640x16xf32>, vector<20x16xf32> -> vector<20x16xf32>
    %c2_64 = arith.constant 2 : index
    %c0_65 = arith.constant 0 : index
    %c0_66 = arith.constant 0 : index
    %68 = vector.load %arg6[%c2_64, %c0_65, %c0_66] : memref<3x16x20xf32, #tpu.memory_space<vmem>>, vector<1x16x20xf32>
    %69 = vector.shape_cast %68 : vector<1x16x20xf32> to vector<16x20xf32>
    %cst_67 = arith.constant dense<0.000000e+00> : vector<16x16xf32>
    %70 = tpu.matmul %69, %67, %cst_67 {dimension_numbers = #tpu.dot_dimension_numbers<[1], [0], [0], [1], [0, 0, 1, 1], [], []>} : vector<16x20xf32>, vector<20x16xf32>, vector<16x16xf32> -> vector<16x16xf32>
    %c2_68 = arith.constant 2 : index
    %c0_69 = arith.constant 0 : index
    %c0_70 = arith.constant 0 : index
    %71 = vector.load %arg7[%c2_68, %c0_69, %c0_70] : memref<3x20x1xf32, #tpu.memory_space<vmem>>, vector<1x20x1xf32>
    %72 = vector.shape_cast %71 : vector<1x20x1xf32> to vector<20x1xf32>
    %73 = vector.broadcast %72 : vector<20x1xf32> to vector<20x640xf32>
    %74 = arith.mulf %64, %73 : vector<20x640xf32>
    %cst_71 = arith.constant dense<0.000000e+00> : vector<640xf32>
    %75 = vector.multi_reduction <add>, %74, %cst_71 [0] : vector<20x640xf32> to vector<640xf32>
    %76 = vector.shape_cast %75 : vector<640xf32> to vector<1x640xf32>
    %c2_72 = arith.constant 2 : index
    %c0_73 = arith.constant 0 : index
    %c0_74 = arith.constant 0 : index
    %77 = vector.load %arg8[%c2_72, %c0_73, %c0_74] : memref<3x640x128xf32, #tpu.memory_space<vmem>>, vector<1x640x128xf32>
    %78 = vector.shape_cast %77 : vector<1x640x128xf32> to vector<640x128xf32>
    %cst_75 = arith.constant dense<0.000000e+00> : vector<1x128xf32>
    %79 = tpu.matmul %76, %78, %cst_75 {dimension_numbers = #tpu.dot_dimension_numbers<[1], [0], [0], [1], [0, 0, 1, 1], [], []>} : vector<1x640xf32>, vector<640x128xf32>, vector<1x128xf32> -> vector<1x128xf32>
    %80 = arith.addf %53, %70 : vector<16x16xf32>
    %81 = arith.addf %54, %79 : vector<1x128xf32>
    %c0_76 = arith.constant 0 : index
    %c0_77 = arith.constant 0 : index
    %82 = vector.load %arg9[%c0_76, %c0_77] : memref<1x1xf32, #tpu.memory_space<vmem>>, vector<1x1xf32>
    %83 = vector.broadcast %82 : vector<1x1xf32> to vector<16x16xf32>
    %84 = arith.addf %80, %83 : vector<16x16xf32>
    %c0_78 = arith.constant 0 : index
    %c0_79 = arith.constant 0 : index
    %c0_80 = arith.constant 0 : index
    %85 = vector.load %arg11[%c0_78, %c0_79, %c0_80] : memref<1x16x16xf32, #tpu.memory_space<vmem>>, vector<1x16x16xf32>
    %86 = vector.shape_cast %85 : vector<1x16x16xf32> to vector<16x16xf32>
    %87 = vector.shape_cast %84 : vector<16x16xf32> to vector<1x16x16xf32>
    tpu.vector_store %arg11[%c0_78, %c0_79, %c0_80], %87 {strides = array<i32>} : memref<1x16x16xf32, #tpu.memory_space<vmem>>, vector<1x16x16xf32>,
    %c0_81 = arith.constant 0 : index
    %c0_82 = arith.constant 0 : index
    %88 = vector.load %arg10[%c0_81, %c0_82] : memref<1x128xf32, #tpu.memory_space<vmem>>, vector<1x128xf32>
    %89 = arith.addf %81, %88 : vector<1x128xf32>
    %c0_83 = arith.constant 0 : index
    %c0_84 = arith.constant 0 : index
    %c0_85 = arith.constant 0 : index
    %90 = vector.load %arg12[%c0_83, %c0_84, %c0_85] : memref<1x1x128xf32, #tpu.memory_space<vmem>>, vector<1x1x128xf32>
    %91 = vector.shape_cast %90 : vector<1x1x128xf32> to vector<1x128xf32>
    %92 = vector.shape_cast %89 : vector<1x128xf32> to vector<1x1x128xf32>
    tpu.vector_store %arg12[%c0_83, %c0_84, %c0_85], %92 {strides = array<i32>} : memref<1x1x128xf32, #tpu.memory_space<vmem>>, vector<1x1x128xf32>,
    return
  }
  func.func @transform_0(%arg0: i32) -> (i32, i32, i32) {
    %c0_i32 = arith.constant 0 : i32
    %c0_i32_0 = arith.constant 0 : i32
    %c0_i32_1 = arith.constant 0 : i32
    return %arg0, %c0_i32, %c0_i32_0 : i32, i32, i32
  }
  func.func @transform_1(%arg0: i32) -> (i32, i32, i32) {
    %c0_i32 = arith.constant 0 : i32
    %c0_i32_0 = arith.constant 0 : i32
    %c0_i32_1 = arith.constant 0 : i32
    %c0_i32_2 = arith.constant 0 : i32
    return %c0_i32, %c0_i32_0, %c0_i32_1 : i32, i32, i32
  }
  func.func @transform_2(%arg0: i32) -> (i32, i32, i32) {
    %c0_i32 = arith.constant 0 : i32
    %c0_i32_0 = arith.constant 0 : i32
    %c0_i32_1 = arith.constant 0 : i32
    %c0_i32_2 = arith.constant 0 : i32
    return %c0_i32, %c0_i32_0, %c0_i32_1 : i32, i32, i32
  }
  func.func @transform_3(%arg0: i32) -> (i32, i32) {
    %c0_i32 = arith.constant 0 : i32
    %c0_i32_0 = arith.constant 0 : i32
    %c0_i32_1 = arith.constant 0 : i32
    return %c0_i32, %c0_i32_0 : i32, i32
  }
  func.func @transform_4(%arg0: i32) -> (i32, i32, i32) {
    %c0_i32 = arith.constant 0 : i32
    %c0_i32_0 = arith.constant 0 : i32
    %c0_i32_1 = arith.constant 0 : i32
    %c0_i32_2 = arith.constant 0 : i32
    return %c0_i32, %c0_i32_0, %c0_i32_1 : i32, i32, i32
  }
  func.func @transform_5(%arg0: i32) -> (i32, i32, i32) {
    %c0_i32 = arith.constant 0 : i32
    %c0_i32_0 = arith.constant 0 : i32
    %c0_i32_1 = arith.constant 0 : i32
    %c0_i32_2 = arith.constant 0 : i32
    return %c0_i32, %c0_i32_0, %c0_i32_1 : i32, i32, i32
  }
  func.func @transform_6(%arg0: i32) -> (i32, i32, i32) {
    %c0_i32 = arith.constant 0 : i32
    %c0_i32_0 = arith.constant 0 : i32
    %c0_i32_1 = arith.constant 0 : i32
    %c0_i32_2 = arith.constant 0 : i32
    return %c0_i32, %c0_i32_0, %c0_i32_1 : i32, i32, i32
  }
  func.func @transform_7(%arg0: i32) -> (i32, i32, i32) {
    %c0_i32 = arith.constant 0 : i32
    %c0_i32_0 = arith.constant 0 : i32
    %c0_i32_1 = arith.constant 0 : i32
    %c0_i32_2 = arith.constant 0 : i32
    return %c0_i32, %c0_i32_0, %c0_i32_1 : i32, i32, i32
  }
  func.func @transform_8(%arg0: i32) -> (i32, i32) {
    %c0_i32 = arith.constant 0 : i32
    %c0_i32_0 = arith.constant 0 : i32
    %c0_i32_1 = arith.constant 0 : i32
    return %c0_i32, %c0_i32_0 : i32, i32
  }
  func.func @transform_9(%arg0: i32) -> (i32, i32) {
    %c0_i32 = arith.constant 0 : i32
    %c0_i32_0 = arith.constant 0 : i32
    %c0_i32_1 = arith.constant 0 : i32
    return %c0_i32, %c0_i32_0 : i32, i32
  }
  func.func @transform_10(%arg0: i32) -> (i32, i32, i32) {
    %c0_i32 = arith.constant 0 : i32
    %c0_i32_0 = arith.constant 0 : i32
    %c0_i32_1 = arith.constant 0 : i32
    return %arg0, %c0_i32, %c0_i32_0 : i32, i32, i32
  }
  func.func @transform_11(%arg0: i32) -> (i32, i32, i32) {
    %c0_i32 = arith.constant 0 : i32
    %c0_i32_0 = arith.constant 0 : i32
    %c0_i32_1 = arith.constant 0 : i32
    return %arg0, %c0_i32, %c0_i32_0 : i32, i32, i32
  }
}

</mosaic_0001>

<bundles_post_ra>
// kernel: tpu_custom_call.1
= control target key start
LH: loop header
LB: loop body
LE: loop exit
PB: predicated region body
PF: predicated region fallthrough
CT: control target
= control target key end

     0   :  { %s8649_s0 = inlined_call_operand.vmem [shape: f32[2,16,64], index: 0, kind: input, shape index: {}]   ;;  %s8650_s1 = inlined_call_operand.vmem [shape: f32[3,20,16], index: 1, kind: input, shape index: {}]   ;;  %s8651_s2 = inlined_call_operand.hbm [shape: f32[3,64,640], index: 2, kind: input, shape index: {}]   ;;  %s8652_s3 = inlined_call_operand.vmem [shape: f32[1,640], index: 3, kind: input, shape index: {}]   ;;  %s8653_s4 = inlined_call_operand.vmem [shape: f32[3,640,16], index: 4, kind: input, shape index: {}]   ;;  %s8654_s5 = inlined_call_operand.vmem [shape: f32[3,16,20], index: 5, kind: input, shape index: {}]   ;;  %s8655_s6 = inlined_call_operand.vmem [shape: f32[3,20,1], index: 6, kind: input, shape index: {}]   ;;  %s8656_s7 = inlined_call_operand.vmem [shape: f32[3,640,128], index: 7, kind: input, shape index: {}]   ;;  %s8657_s8 = inlined_call_operand.<no memory space> [shape: f32[1,1], index: 8, kind: input, shape index: {}]   ;;  %s8658_s9 = inlined_call_operand.vmem [shape: f32[1,128], index: 9, kind: input, shape index: {}]   ;;  %s8659_s10 = inlined_call_operand.hbm [shape: f32[2,16,16], index: 10, kind: output, shape index: {0}]   ;;  %s8660_s11 = inlined_call_operand.hbm [shape: f32[2,1,128], index: 11, kind: output, shape index: {1}]  }
   0x1   :  { %8664 = sst [smem:[#allocation12_spill]] %s8649_s0  ;;  %v17_v0 = vstv %s8657_s8 }
   0x2   :  { %18 = vst [vmem:[#allocation2] sm:$0x1] %v17_v0 }
   0x3   :  { %19 = vsyncpa [#allocation4], 0 }
   0x4   :  { %20 = vsyncpa [#allocation5], 0 }
   0x5   :  { %22 = vsyncpa [#allocation5 + $0x1], 0 }
   0x6   :  { %23 = vsyncpa [#allocation8], 0 }
   0x7   :  { %25 = vsyncpa [#allocation8 + $0x1], 0  ;;  %s6485_s19 = smov 0   ;;  %s6487_s20 = smov 0  }
   0x8   :  { %s6489_s21 = smov 0   ;;  %s6491_s22 = smov 0  }
   0x9 LB: > { %s6506_s8 = sadd.s32 4294967295, %s6409_s22   ;;  %s4138_s23 = sadd.s32 4294967294, %s6409_s22   ;;  %s6409_s22 = sphi %s6491_s22, %s8678_s22   ;;  %s6405_s21 = sphi %s6489_s21, %s8677_s21   ;;  %s6401_s20 = sphi %s6487_s20, %s8676_s20   ;;  %s6397_s19 = sphi %s6485_s19, %s8675_s19  }
   0xa   : > { %s6510_s24 = sadd.s32 1, %s6409_s22   ;;  %s253_s25 = sadd.s32 1, %s6405_s21 }
   0xb   : > { %s250_s26 = ssub.s32 %s6409_s22, %s6510_s24  ;;  %p263_p0 = scmp.ne.s32.totalorder %s6405_s21, %s6401_s20 }
   0xc   : > { %p251_p1 = scmp.eq.s32.totalorder %s250_s26, 0  ;;  %p264_p2 = scmp.eq.s32.totalorder %s6506_s8, 1 }
   0xd   : > { %p269_p3 = scmp.ne.s32.totalorder %s6401_s20, %s6397_s19  ;;  %p270_p4 = scmp.eq.s32.totalorder %s4138_s23, 1 }
   0xe   : > { %s6521_s27 = scalar_select %p251_p1, %s6405_s21, %s253_s25  }
   0xf   : > { %p6523_p5 = por %p264_p2, %p263_p0  ;;  %p6527_p6 = por %p270_p4, %p269_p3 }
  0x10   : > { %p4139_p7 = scmp.ge.s32.totalorder %s6409_s22, 1  ;;  %p303_p8 = scmp.lt.s32.totalorder %s6409_s22, 3 }
  0x11   : > { %s8665_s28 = scalar_select %p6523_p5, 1, 0 }
  0x12   : > { %s8666_s29 = scalar_select %p6527_p6, 1, 0 }
  0x13   : > { %p8661_p9 = scmp.eq.s32.totalorder %s6506_s8, 0  ;;  %p6534_p10 = pnand %p4139_p7, %p303_p8 }
  0x14   : > { %s6411_s12 = smov [#allocation3]   ;;  %s6283_s17 = scalar_lea.hbm %s8651_s2, 15360 }
  0x15   : > { %s8667_s30 = scalar_select %p6534_p10, 1, 0 }
  0x16   : > { %s318_s13 = sshll.u32 %s6411_s12, 4  ;;  %p6226_p11 = pneg %p6534_p10  ;;  %s319_s13 = int_to_ptr.vmem [resolvable:$true] %s318_s13 }
  0x17   : > { %p6284_p13 = scmp.ne.s32.totalorder %s8651_s2, %s6283_s17  ;;  %p6290_p3 = scmp.lt.u32.totalorder %s6283_s17, %s8651_s2 }
  0x18   : > { %p6542_p12 = pnand %p8661_p9, %p6226_p11 }
  0x1a   : > { %p6285_p0 = pneg %p6542_p12 }
  0x1c   : > { %p6286_p1 = pnand %p6285_p0, %p6284_p13 }
  0x1e   : > { %p6287_p2 = pneg %p6286_p1 }
  0x20   : > { %p6292_p4 = pnand %p6290_p3, %p6287_p2 }
  0x22   : > { %6295 = shalt.err (!%p6292_p4)
}
  0x23   : > { %s6296_s12 = scalar_lea.vmem %s319_s13, 15360  ;;  %p6304_p9 = scmp.lt.s32.totalorder %s319_s13, %s319_s13 }
  0x24   : > { %p6297_p7 = scmp.ne.s32.totalorder %s319_s13, %s6296_s12  ;;  %p6305_p6 = scmp.lt.s32.totalorder %s6296_s12, %s6296_s12 }
  0x26   : > { %p6299_p8 = pnand %p6297_p7, %p6285_p0  ;;  %p6306_p5 = por %p6305_p6, %p6304_p9 }
  0x28   : > { %p6300_p11 = pneg %p6299_p8 }
  0x2a   : > { %p6307_p10 = pnand %p6306_p5, %p6300_p11 }
  0x2c   : > { %6310 = shalt.err (!%p6307_p10)
}
  0x2d   : > { %s6412_s15 = smov 640   ;;  %s6413_s16 = smov 40  }
  0x2e   : > { %6229 = dma.hbm_to_vmem [thread:$0]  (!%p6542_p12), %s8651_s2, 15360, %s319_s13, [#allocation4], %s6412_s15, %s6412_s15, %s6413_s16  }
  0x2f   : > { %p8669_p13 = scmp.ne.s32.totalorder %s8667_s30, 0 }
  0x30   : > { %p8670_p1 = scmp.eq.s32.totalorder (!%p8669_p13), %s6506_s8, 0 }
  0x31   : > { %363 = sbr.rel (%p8669_p13) target bundleno = 2322 (0x912), region = 60 }
  0x38   : > { %6384 = dma.done.wait (%p8670_p1), [#allocation4], 15360   ;;  %p8671_p0 = pmov %p8670_p1 }
  0x39   : > { %p407_p5 = scmp.lt.s32.totalorder %s6506_s8, 1  ;;  %v6414_v1 = vmov 0.0|0.0   ;;  %vm6415_vm0 = vmmov 0   ;;  %v6416_v2 = vmov 0.0   ;;  %s8672_s0 = sld [smem:[#allocation12_spill]]  ;;  %v415_v6 = vld [vmem:[%s8650_s1] sm:$0xff] }
  0x3a   : > { %6386 = vsyncadd (%p8671_p0), [#allocation4], 4294951936  ;;  %5533 = vmatprep.subr.bf16.mxu0 %v6414_v1  ;;  %5168 = vmatprep.mubr.msk.f32.mxu0 %vm6415_vm0, %v6416_v2  ;;  %v509_v7 = vld [vmem:[#allocation3 + $0x8] sm:$0xff]  ;;  %v514_v8 = vld [vmem:[#allocation3 + $0x30] sm:$0xff]  ;;  %vm418_vm1 = vcmask 130048   ;;  %v6417_v59 = vmov 0  }
  0x3b   : > { %s408_s13 = scalar_select %p407_p5, %s6506_s8, 1  ;;  %648 = vmatprep.mubr.f32.mxu1 %v6416_v2  ;;  %v508_v9 = vld [vmem:[#allocation3] sm:$0xff]  ;;  %v513_v10 = vld [vmem:[#allocation3 + $0x28] sm:$0xff]  ;;  %v5536_v11 = vpack.c.bf16 %v514_v8, %v509_v7  ;;  %v511_v13 = vld [vmem:[#allocation3 + $0x18] sm:$0xff]  ;;  %6282 = vset.pattern.permute.xlu1 %v6417_v59  ;;  %vm574_vm2 = vcmask 523264   ;;  %vm1201_vm3 = vcmask 1043456  }
  0x3c   : > { %v5538_v12 = vpack.c.bf16 %v513_v10, %v508_v9  ;;  %v516_v14 = vld [vmem:[#allocation3 + $0x40] sm:$0xff]  ;;  %v510_v15 = vld [vmem:[#allocation3 + $0x10] sm:$0xff]  ;;  %v515_v17 = vld [vmem:[#allocation3 + $0x38] sm:$0xff]  ;;  %6281 = vset.pattern.permute.xlu0 %v6417_v59  ;;  %vm2054_vm4 = vcmask 162816   ;;  %s8559_s17 = sand.u32 1, %s6401_s20   ;;  %s4536_s15 = sshll.u32 %s6506_s8, 8 }
  0x3d   : > { %s4535_s30 = sshll.u32 %s408_s13, 4  ;;  %v5552_v16 = vpack.c.bf16 %v516_v14, %v511_v13  ;;  %v519_v18 = vld [vmem:[#allocation3 + $0x58] sm:$0xff]  ;;  %v524_v19 = vld [vmem:[#allocation3 + $0x80] sm:$0xff]  ;;  %5537 = vmatprep.subr.bf16.mxu1 %v5536_v11  ;;  %v5554_v21 = vpack.c.bf16 %v515_v17, %v510_v15  ;;  %v518_v23 = vld [vmem:[#allocation3 + $0x50] sm:$0xff]  ;;  %s8568_s23 = scalar_lea.hbm %s8659_s10, %s4536_s15 }
  0x3e   : > { %v416_v20 = vld [vmem:[%s8650_s1 + $0x8] sm:$0xff]  ;;  %v5540_v22 = vpack.c.bf16 %v524_v19, %v519_v18  ;;  %v523_v24 = vld [vmem:[#allocation3 + $0x78] sm:$0xff]  ;;  %5539 = vmatpush1.bf16.msra.mxu1 %v5538_v12  ;;  %v526_v27 = vld [vmem:[#allocation3 + $0x90] sm:$0xff]  ;;  %s4006_s13 = scalar_lea.sflag [#allocation5], %s8559_s17  ;;  %p8673_p9 = scmp.ne.s32.totalorder %s8665_s28, 0 }
  0x3f   : > { %s411_s25 = scalar_lea.vmem %s8672_s0, %s4535_s30  ;;  %v521_v25 = vld [vmem:[#allocation3 + $0x68] sm:$0xff]  ;;  %v5542_v26 = vpack.c.bf16 %v523_v24, %v518_v23  ;;  %v520_v28 = vld [vmem:[#allocation3 + $0x60] sm:$0xff]  ;;  %v534_v32 = vld [vmem:[#allocation3 + $0xd0] sm:$0xff]  ;;  %s6418_s14 = smov [#allocation6]  }
  0x40   : > { %v412_v3 = vld [vmem:[%s411_s25] sm:$0xff]  ;;  %v413_v4 = vld [vmem:[%s411_s25 + $0x8] sm:$0xff]  ;;  %v5556_v30 = vpack.c.bf16 %v526_v27, %v521_v25  ;;  %5541 = vmatprep.subr.bf16.mxu1 %v5540_v22  ;;  %v530_v40 = vld [vmem:[#allocation3 + $0xb0] sm:$0xff]  ;;  %s4144_s25 = sshll.u32 %s8559_s17, 4 }
  0x41   : > { %v6577_v5 = vpack.c.bf16 %v413_v4, %v412_v3  ;;  %v525_v29 = vld [vmem:[#allocation3 + $0x88] sm:$0xff]  ;;  %v528_v33 = vld [vmem:[#allocation3 + $0xa0] sm:$0xff]  ;;  %v531_v37 = vld [vmem:[#allocation3 + $0xb8] sm:$0xff]  ;;  %s400_s26 = scalar_lea.vmem [#allocation6], %s4144_s25  ;;  %s6315_s25 = sshll.u32 %s6418_s14, 4  ;;  %s6316_s25 = int_to_ptr.vmem [resolvable:$false] %s6315_s25 }
  0x42   : > { %v529_v31 = vld [vmem:[#allocation3 + $0xa8] sm:$0xff]  ;;  %v5558_v34 = vpack.c.bf16 %v525_v29, %v520_v28  ;;  %v536_v38 = vld [vmem:[#allocation3 + $0xe0] sm:$0xff]  ;;  %v535_v41 = vld [vmem:[#allocation3 + $0xd8] sm:$0xff]  ;;  %5543 = vmatpush1.bf16.msra.mxu1 %v5542_v26  ;;  %s4023_s12 = sshll.u32 %s400_s26, 4  ;;  %s6317_s0 = scalar_lea.vmem %s6316_s25, 512  ;;  %s8563_s12 = int_to_ptr.vmem [resolvable:$true] %s4023_s12 }
  0x43   : > { %5535 = vmatpush3.bf16.msra.mxu0 %v6577_v5  ;;  %v5544_v35 = vpack.c.bf16 %v534_v32, %v529_v31  ;;  %v533_v36 = vld [vmem:[#allocation3 + $0xc8] sm:$0xff]  ;;  %v5560_v39 = vpack.c.bf16 %v536_v38, %v531_v37  ;;  %v539_v42 = vld [vmem:[#allocation3 + $0xf8] sm:$0xff]  ;;  %v544_v45 = vld [vmem:[#allocation3 + $0x120] sm:$0xff]  ;;  %v5562_v51 = vpack.c.bf16 %v535_v41, %v530_v40  ;;  %s6311_s30 = scalar_lea.vmem %s8563_s12, 256  ;;  %p6318_p2 = scmp.lt.s32.totalorder %s8563_s12, %s6316_s25 }
  0x44   : > { %5553 = vmatprep.subr.bf16.mxu0 %v5552_v16  ;;  %v417_v43 = vld [vmem:[%s8650_s1 + $0x10] sm:$0xf]  ;;  %v5546_v44 = vpack.c.bf16 %v533_v36, %v528_v33  ;;  %v5548_v47 = vpack.c.bf16 %v544_v45, %v539_v42  ;;  %v543_v48 = vld [vmem:[#allocation3 + $0x118] sm:$0xff]  ;;  %v540_v53 = vld [vmem:[#allocation3 + $0x100] sm:$0xff]  ;;  %p6312_p6 = scmp.ne.s32.totalorder %s8563_s12, %s6311_s30  ;;  %p6319_p3 = scmp.lt.s32.totalorder %s6317_s0, %s6311_s30 }
  0x45   : > { %v538_v46 = vld [vmem:[#allocation3 + $0xf0] sm:$0xff]  ;;  %5545 = vmatprep.subr.bf16.mxu1 %v5544_v35  ;;  %v541_v49 = vld [vmem:[#allocation3 + $0x108] sm:$0xff]  ;;  %v861_v60 = vld [vmem:[%s8653_s4 + $0x80] sm:$0xff] }
  0x46   : > { %5169 = vmatmul.mubr.msk.f32.vlgmr.msra.gmra.mrb[0].mxu0 %vm418_vm1, %v415_v6  ;;  %v546_v50 = vld [vmem:[#allocation3 + $0x130] sm:$0xff]  ;;  %v545_v54 = vld [vmem:[#allocation3 + $0x128] sm:$0xff]  ;;  %5547 = vmatpush1.bf16.msra.mxu1 %v5546_v44  ;;  %v5550_v55 = vpack.c.bf16 %v543_v48, %v538_v46  ;;  %v4260_v62 = vld [vmem:[%s8655_s6 + $0x20] sm:$0xff]  ;;  %p6313_p10 = pnand %p6312_p6, %p8673_p9  ;;  %p6320_p4 = por %p6319_p3, %p6318_p2 }
  0x47   : > { %5171 = vmatprep.mubr.msk.f32.mxu0 %vm6415_vm0, %v6416_v2  ;;  %5555 = vmatpush1.bf16.msra.mxu0 %v5554_v21  ;;  %v5564_v52 = vpack.c.bf16 %v546_v50, %v541_v49  ;;  %v5566_v56 = vpack.c.bf16 %v545_v54, %v540_v53  ;;  %v4261_v57 = vld [vmem:[%s8655_s6 + $0x28] sm:$0xf]  ;;  %v4259_v58 = vld [vmem:[%s8655_s6 + $0x18] sm:$0xff]  ;;  %v1167_v63 = vld [vmem:[%s8655_s6] sm:$0xff] }
  0x48   : > { %5557 = vmatprep.subr.bf16.mxu0 %v5556_v30  ;;  %5549 = vmatprep.subr.bf16.mxu1 %v5548_v47  ;;  %v862_v61 = vld [vmem:[%s8653_s4 + $0x88] sm:$0xff]  ;;  %v1169_v4 = vld [vmem:[%s8655_s6 + $0x10] sm:$0xf]  ;;  %v845_v8 = vld [vmem:[%s8653_s4] sm:$0xff]  ;;  %p6314_p12 = pneg %p6313_p10 }
  0x49   : > { %2155 = vperm.xlu1 %6282, %v4261_v57   ;;  %2145 = vperm.xlu0 %6281, %v4259_v58   ;;  %v5580_v0 = vpack.c.bf16 %v862_v61, %v861_v60  ;;  %v1168_v3 = vld [vmem:[%s8655_s6 + $0x8] sm:$0xff]  ;;  %v522_v11 = vld [vmem:[#allocation3 + $0x70] sm:$0xff]  ;;  %v527_v12 = vld [vmem:[#allocation3 + $0x98] sm:$0xff] }
  0x4a   : > { %5172 = vmatmul.mubr.msk.f32.gmra.mrb[2].mxu0 %vm418_vm1, %v416_v20  ;;  %5551 = vmatpush1.bf16.msra.mxu1 %v5550_v55  ;;  %v512_v6 = vld [vmem:[#allocation3 + $0x20] sm:$0xff]  ;;  %v517_v7 = vld [vmem:[#allocation3 + $0x48] sm:$0xff]  ;;  %v864_v17 = vld [vmem:[%s8653_s4 + $0x98] sm:$0xff]  ;;  %v5572_v18 = vpack.c.bf16 %v527_v12, %v522_v11  ;;  %p6321_p7 = pnand %p6320_p4, %p6314_p12 }
  0x4b   : > { %5174 = vmatprep.mubr.msk.f32.mxu0 %vm6415_vm0, %v6416_v2  ;;  %5559 = vmatpush1.bf16.msra.mxu0 %v5558_v34  ;;  %v846_v9 = vld [vmem:[%s8653_s4 + $0x8] sm:$0xff]  ;;  %v5569_v10 = vpack.c.bf16 %v517_v7, %v512_v6  ;;  %v863_v16 = vld [vmem:[%s8653_s4 + $0x90] sm:$0xff]  ;;  %v848_v24 = vld [vmem:[%s8653_s4 + $0x18] sm:$0xff] }
  0x4c   : > { %5561 = vmatprep.subr.bf16.mxu0 %v5560_v39  ;;  %5568 = vmatprep.subr.bf16.mxu1 %v6414_v1  ;;  %v5582_v14 = vpack.c.bf16 %v846_v9, %v845_v8  ;;  %v532_v19 = vld [vmem:[#allocation3 + $0xc0] sm:$0xff]  ;;  %v537_v20 = vld [vmem:[#allocation3 + $0xe8] sm:$0xff]  ;;  %v5584_v22 = vpack.c.bf16 %v864_v17, %v863_v16  ;;  %v542_v29 = vld [vmem:[#allocation3 + $0x110] sm:$0xff] }
  0x4d   : > { %2150 = vperm.xlu0 %6281, %v4260_v62   ;;  %1172 = vperm.xlu1 %6282, %v1167_v63   ;;  %v847_v23 = vld [vmem:[%s8653_s4 + $0x10] sm:$0xff]  ;;  %v865_v26 = vld [vmem:[%s8653_s4 + $0xa0] sm:$0xff]  ;;  %v866_v27 = vld [vmem:[%s8653_s4 + $0xa8] sm:$0xff]  ;;  %v5575_v28 = vpack.c.bf16 %v537_v20, %v532_v19 }
  0x4e   : > { %5175 = vmatmul.mubr.msk.f32.gmra.mrb[4].mxu0 %vm418_vm1, %v417_v43  ;;  %v547_v30 = vld [vmem:[#allocation3 + $0x138] sm:$0xff]  ;;  %v5586_v32 = vpack.c.bf16 %v848_v24, %v847_v23  ;;  %v894_v34 = vld [vmem:[%s8653_s4 + $0x188] sm:$0xff]  ;;  %v5588_v35 = vpack.c.bf16 %v866_v27, %v865_v26  ;;  %v867_v39 = vld [vmem:[%s8653_s4 + $0xb0] sm:$0xff] }
  0x4f   : > { %731 = vmatprep.mubr.f32.mxu0 %v6416_v2  ;;  %5563 = vmatpush1.bf16.msra.mxu0 %v5562_v51  ;;  %v893_v31 = vld [vmem:[%s8653_s4 + $0x180] sm:$0xff]  ;;  %v850_v37 = vld [vmem:[%s8653_s4 + $0x28] sm:$0xff]  ;;  %v868_v40 = vld [vmem:[%s8653_s4 + $0xb8] sm:$0xff]  ;;  %v5578_v41 = vpack.c.bf16 %v547_v30, %v542_v29 }
  0x50   : > { %5565 = vmatprep.subr.bf16.mxu0 %v5564_v52  ;;  %v849_v36 = vld [vmem:[%s8653_s4 + $0x20] sm:$0xff]  ;;  %v5612_v42 = vpack.c.bf16 %v894_v34, %v893_v31  ;;  %v878_v44 = vld [vmem:[%s8653_s4 + $0x108] sm:$0xff]  ;;  %v895_v45 = vld [vmem:[%s8653_s4 + $0x190] sm:$0xff]  ;;  %v5592_v48 = vpack.c.bf16 %v868_v40, %v867_v39 }
  0x51   : > { %1177 = vperm.xlu0 %6281, %v1168_v3   ;;  %1182 = vperm.xlu1 %6282, %v1169_v4   ;;  %v877_v43 = vld [vmem:[%s8653_s4 + $0x100] sm:$0xff]  ;;  %v5590_v46 = vpack.c.bf16 %v850_v37, %v849_v36  ;;  %v896_v47 = vld [vmem:[%s8653_s4 + $0x198] sm:$0xff]  ;;  %v851_v49 = vld [vmem:[%s8653_s4 + $0x30] sm:$0xff] }
  0x52   : > { %v852_v50 = vld [vmem:[%s8653_s4 + $0x38] sm:$0xff]  ;;  %v869_v51 = vld [vmem:[%s8653_s4 + $0xc0] sm:$0xff]  ;;  %v870_v52 = vld [vmem:[%s8653_s4 + $0xc8] sm:$0xff]  ;;  %v5614_v53 = vpack.c.bf16 %v878_v44, %v877_v43  ;;  %v5616_v54 = vpack.c.bf16 %v896_v47, %v895_v45 }
  0x53   : > { %5567 = vmatpush1.bf16.msra.mxu0 %v5566_v56  ;;  %v879_v55 = vld [vmem:[%s8653_s4 + $0x110] sm:$0xff]  ;;  %v880_v56 = vld [vmem:[%s8653_s4 + $0x118] sm:$0xff]  ;;  %v897_v57 = vld [vmem:[%s8653_s4 + $0x1a0] sm:$0xff]  ;;  %v5594_v58 = vpack.c.bf16 %v852_v50, %v851_v49  ;;  %v5596_v60 = vpack.c.bf16 %v870_v52, %v869_v51 }
  0x54   : > { %5581 = vmatprep.subr.bf16.mxu0 %v5580_v0  ;;  %v898_v59 = vld [vmem:[%s8653_s4 + $0x1a8] sm:$0xff]  ;;  %v853_v61 = vld [vmem:[%s8653_s4 + $0x40] sm:$0xff]  ;;  %v871_v63 = vld [vmem:[%s8653_s4 + $0xd0] sm:$0xff]  ;;  %v5618_v3 = vpack.c.bf16 %v880_v56, %v879_v55  ;;  %v549_v56 = vlaneseq }
  0x55   : > { %v854_v62 = vld [vmem:[%s8653_s4 + $0x48] sm:$0xff]  ;;  %v872_v0 = vld [vmem:[%s8653_s4 + $0xd8] sm:$0xff]  ;;  %v5620_v4 = vpack.c.bf16 %v898_v59, %v897_v57  ;;  %v881_v6 = vld [vmem:[%s8653_s4 + $0x120] sm:$0xff] }
  0x56   : > { %v882_v7 = vld [vmem:[%s8653_s4 + $0x128] sm:$0xff]  ;;  %v899_v8 = vld [vmem:[%s8653_s4 + $0x1b0] sm:$0xff]  ;;  %v5598_v9 = vpack.c.bf16 %v854_v62, %v853_v61  ;;  %v5600_v11 = vpack.c.bf16 %v872_v0, %v871_v63  ;;  %v884_v19 = vld [vmem:[%s8653_s4 + $0x138] sm:$0xff]  ;;  %v6846_v57 = vshrl.u32 %v549_v56, 7 }
  0x57   : > { %v855_v12 = vld [vmem:[%s8653_s4 + $0x50] sm:$0xff]  ;;  %v5622_v16 = vpack.c.bf16 %v882_v7, %v881_v6  ;;  %v901_v20 = vld [vmem:[%s8653_s4 + $0x1c0] sm:$0xff]  ;;  %v886_v29 = vld [vmem:[%s8653_s4 + $0x148] sm:$0xff] }
  0x58   : > { %v857_v24 = vld [vmem:[%s8653_s4 + $0x60] sm:$0xff]  ;;  %v903_v31 = vld [vmem:[%s8653_s4 + $0x1d0] sm:$0xff]  ;;  %v888_v36 = vld [vmem:[%s8653_s4 + $0x158] sm:$0xff]  ;;  %v551_v59 = vsub.s32 0, %v6846_v57  ;;  %v555_v62 = vsub.s32 1, %v6846_v57  ;;  %v563_v63 = vsub.s32 3, %v6846_v57 }
  0x59   : > { %v905_v37 = vld [vmem:[%s8653_s4 + $0x1e0] sm:$0xff]  ;;  %v875_v44 = vld [vmem:[%s8653_s4 + $0xf0] sm:$0xff]  ;;  %v876_v45 = vld [vmem:[%s8653_s4 + $0xf8] sm:$0xff] }
  0x5a   : > { %v859_v47 = vld [vmem:[%s8653_s4 + $0x70] sm:$0xff]  ;;  %v908_v51 = vld [vmem:[%s8653_s4 + $0x1f8] sm:$0xff]  ;;  %v6855_v61 = vld [vmem:[%s8652_s3] sm:$0x1f] }
  0x5b   : > { %v907_v49 = vld [vmem:[%s8653_s4 + $0x1f0] sm:$0xff]  ;;  %v6868_v6 = vrot.slane %v6855_v61, %v555_v62  ;;  %v6871_v7 = vrot.slane %v6855_v61, %v563_v63 }
  0x5c   : > { %v891_v52 = vld [vmem:[%s8653_s4 + $0x170] sm:$0xff] }
  0xc8   : > { %v6859_v0 = vpop.permute.xlu1 %2155 }
 0x119   : > { %v6628_v13 = vpop.f32.mrb[0].mxu0 }
 0x11a   : > { %v5170_v15 = vpop.f32.mrb[1].mxu0  ;;  %4150 = vmatmul.mubr.msk.f32.vlgmr.msra.gmra.mrb[0].mxu1 %vm574_vm2, %v6628_v13  ;;  %4153 = vmatmul.mubr.msk.f32.vlgmr.msra.gmra.mrb[6].mxu0 %vm574_vm2, %v6628_v13 }
 0x11b   : > { %5570 = vmatpush3.bf16.msra.mxu1 %v5569_v10  ;;  %654 = vmatprep.mubr.f32.mxu1 %v6416_v2  ;;  %v900_v10 = vld [vmem:[%s8653_s4 + $0x1b8] sm:$0xff]  ;;  %v874_v15 = vld [vmem:[%s8653_s4 + $0xe8] sm:$0xff] }
 0x11c   : > { %737 = vmatprep.mubr.f32.mxu0 %v6416_v2  ;;  %5571 = vmatprep.subr.bf16.mxu1 %v6414_v1  ;;  %v5624_v17 = vpack.c.bf16 %v900_v10, %v899_v8 }
 0x11d   : > { %v6643_v21 = vpop.f32.mrb[2].mxu0  ;;  %5583 = vmatpush3.bf16.msra.mxu0 %v5582_v14  ;;  %v873_v14 = vld [vmem:[%s8653_s4 + $0xe0] sm:$0xff] }
 0x11e   : > { %4151 = vmatmul.mubr.msk.f32.gmra.mrb[2].mxu1 %vm574_vm2, %v6643_v21  ;;  %4154 = vmatmul.mubr.msk.f32.gmra.mrb[8].mxu0 %vm574_vm2, %v6643_v21  ;;  %v5173_v25 = vpop.f32.mrb[3].mxu0  ;;  %v5604_v23 = vpack.c.bf16 %v874_v15, %v873_v14  ;;  %v909_v15 = vld [vmem:[%s8653_s4 + $0x200] sm:$0xff] }
 0x11f   : > { %5573 = vmatpush3.bf16.msra.mxu1 %v5572_v18  ;;  %660 = vmatprep.mubr.f32.mxu1 %v6416_v2  ;;  %v883_v18 = vld [vmem:[%s8653_s4 + $0x130] sm:$0xff]  ;;  %v858_v25 = vld [vmem:[%s8653_s4 + $0x68] sm:$0xff] }
 0x120   : > { %743 = vmatprep.mubr.f32.mxu0 %v6416_v2  ;;  %5574 = vmatprep.subr.bf16.mxu1 %v6414_v1  ;;  %v5626_v26 = vpack.c.bf16 %v884_v19, %v883_v18  ;;  %v5606_v30 = vpack.c.bf16 %v858_v25, %v857_v24  ;;  %v911_v19 = vld [vmem:[%s8653_s4 + $0x210] sm:$0xff]  ;;  %v6896_v24 = vld [vmem:[%s8653_s4 + $0x220] sm:$0xff]  ;;  %v6901_v25 = vld [vmem:[%s8653_s4 + $0x228] sm:$0xff] }
 0x121   : > { %v6667_v33 = vpop.f32.mrb[4].mxu0  ;;  %5585 = vmatprep.subr.bf16.mxu0 %v5584_v22  ;;  %v902_v22 = vld [vmem:[%s8653_s4 + $0x1c8] sm:$0xff] }
 0x122   : > { %4152 = vmatmul.mubr.msk.f32.gmra.mrb[4].mxu1 %vm574_vm2, %v6667_v33  ;;  %4155 = vmatmul.mubr.msk.f32.gmra.mrb[10].mxu0 %vm574_vm2, %v6667_v33  ;;  %v5176_v38 = vpop.f32.mrb[5].mxu0  ;;  %v5628_v27 = vpack.c.bf16 %v902_v22, %v901_v20  ;;  %v912_v20 = vld [vmem:[%s8653_s4 + $0x218] sm:$0xff] }
 0x123   : > { %5576 = vmatpush3.bf16.msra.mxu1 %v5575_v28  ;;  %5193 = vmatprep.mubr.msk.f32.mxu1 %vm6415_vm0, %v6416_v2  ;;  %v885_v28 = vld [vmem:[%s8653_s4 + $0x140] sm:$0xff]  ;;  %v906_v38 = vld [vmem:[%s8653_s4 + $0x1e8] sm:$0xff] }
 0x124   : > { %5577 = vmatprep.subr.bf16.mxu1 %v6414_v1  ;;  %5587 = vmatpush3.bf16.msra.mxu0 %v5586_v32  ;;  %v904_v32 = vld [vmem:[%s8653_s4 + $0x1d8] sm:$0xff]  ;;  %v5636_v40 = vpack.c.bf16 %v906_v38, %v905_v37 }
 0x125   : > { %5589 = vmatprep.subr.bf16.mxu0 %v5588_v35  ;;  %v5632_v34 = vpack.c.bf16 %v904_v32, %v903_v31  ;;  %v887_v35 = vld [vmem:[%s8653_s4 + $0x150] sm:$0xff] }
 0x126   : > { %v5634_v39 = vpack.c.bf16 %v888_v36, %v887_v35  ;;  %v5648_v35 = vpack.c.bf16 %v912_v20, %v911_v19 }
 0x127   : > { %5579 = vmatpush3.bf16.msra.mxu1 %v5578_v41  ;;  %v889_v41 = vld [vmem:[%s8653_s4 + $0x160] sm:$0xff] }
 0x128   : > { %5613 = vmatprep.subr.bf16.mxu1 %v5612_v42  ;;  %5591 = vmatpush3.bf16.msra.mxu0 %v5590_v46  ;;  %v890_v42 = vld [vmem:[%s8653_s4 + $0x168] sm:$0xff]  ;;  %v5608_v46 = vpack.c.bf16 %v876_v45, %v875_v44 }
 0x129   : > { %5593 = vmatprep.subr.bf16.mxu0 %v5592_v48  ;;  %v5638_v43 = vpack.c.bf16 %v890_v42, %v889_v41  ;;  %v860_v48 = vld [vmem:[%s8653_s4 + $0x78] sm:$0xff] }
 0x12a   : > { %5194 = vmatmul.mubr.msk.f32.vlgmr.msra.gmra.mrb[6].mxu1 %vm574_vm2, %v6628_v13  ;;  %v856_v13 = vld [vmem:[%s8653_s4 + $0x58] sm:$0xff]  ;;  %v5610_v50 = vpack.c.bf16 %v860_v48, %v859_v47 }
 0x12b   : > { %5196 = vmatprep.mubr.msk.f32.mxu1 %vm6415_vm0, %v6416_v2  ;;  %5615 = vmatpush3.bf16.msra.mxu1 %v5614_v53  ;;  %v892_v53 = vld [vmem:[%s8653_s4 + $0x178] sm:$0xff] }
 0x12c   : > { %5617 = vmatprep.subr.bf16.mxu1 %v5616_v54  ;;  %5595 = vmatpush3.bf16.msra.mxu0 %v5594_v58  ;;  %v5640_v54 = vpack.c.bf16 %v908_v51, %v907_v49  ;;  %v5642_v55 = vpack.c.bf16 %v892_v53, %v891_v52  ;;  %v6848_v58 = vpop.permute.xlu0 %2145 }
 0x12d   : > { %5597 = vmatprep.subr.bf16.mxu0 %v5596_v60  ;;  %v559_v60 = vsub.s32 2, %v6846_v57 }
 0x12e   : > { %5197 = vmatmul.mubr.msk.f32.gmra.mrb[8].mxu1 %vm574_vm2, %v6643_v21  ;;  %v5602_v21 = vpack.c.bf16 %v856_v13, %v855_v12 }
 0x12f   : > { %5199 = vmatprep.mubr.msk.f32.mxu1 %vm6415_vm0, %v6416_v2  ;;  %5619 = vmatpush3.bf16.msra.mxu1 %v5618_v3  ;;  %v6862_v3 = vrot.slane %v6855_v61, %v551_v59 }
 0x130   : > { %5621 = vmatprep.subr.bf16.mxu1 %v5620_v4  ;;  %5599 = vmatpush3.bf16.msra.mxu0 %v5598_v9  ;;  %v6865_v4 = vrot.slane %v6855_v61, %v559_v60  ;;  %v6873_v8 = vpop.permute.xlu0 %2150 }
 0x131   : > { %5601 = vmatprep.subr.bf16.mxu0 %v5600_v11 }
 0x132   : > { %5200 = vmatmul.mubr.msk.f32.gmra.mrb[10].mxu1 %vm574_vm2, %v6667_v33  ;;  %v5630_v33 = vpack.c.bf16 %v886_v29, %v885_v28 }
 0x133   : > { %5623 = vmatpush3.bf16.msra.mxu1 %v5622_v16  ;;  %v910_v16 = vld [vmem:[%s8653_s4 + $0x208] sm:$0xff] }
 0x134   : > { %5625 = vmatprep.subr.bf16.mxu1 %v5624_v17  ;;  %5603 = vmatpush3.bf16.msra.mxu0 %v5602_v21  ;;  %v6907_v38 = vpop.permute.xlu0 %1177 }
 0x135   : > { %5605 = vmatprep.subr.bf16.mxu0 %v5604_v23  ;;  %v6891_v23 = vpop.permute.xlu1 %1172 }
 0x137   : > { %5627 = vmatpush3.bf16.msra.mxu1 %v5626_v26 }
 0x138   : > { %5629 = vmatprep.subr.bf16.mxu1 %v5628_v27  ;;  %5607 = vmatpush3.bf16.msra.mxu0 %v5606_v30  ;;  %v5645_v30 = vpack.c.bf16 %v910_v16, %v909_v15 }
 0x139   : > { %5609 = vmatprep.subr.bf16.mxu0 %v5608_v46  ;;  %v6925_v63 = vpop.permute.xlu1 %1182 }
 0x13b   : > { %5631 = vmatpush3.bf16.msra.mxu1 %v5630_v33 }
 0x13c   : > { %5633 = vmatprep.subr.bf16.mxu1 %v5632_v34  ;;  %5611 = vmatpush3.bf16.msra.mxu0 %v5610_v50 }
 0x13d   : > { %5644 = vmatprep.subr.bf16.mxu0 %v6414_v1 }
 0x13f   : > { %5635 = vmatpush3.bf16.msra.mxu1 %v5634_v39  ;;  %v567_v39 = vsub.s32 4, %v6846_v57 }
 0x140   : > { %5637 = vmatprep.subr.bf16.mxu1 %v5636_v40  ;;  %v5651_v40 = vpack.c.bf16 %v6901_v25, %v6896_v24 }
 0x143   : > { %5639 = vmatpush3.bf16.msra.mxu1 %v5638_v43 }
 0x144   : > { %5641 = vmatprep.subr.bf16.mxu1 %v5640_v54 }
 0x147   : > { %5643 = vmatpush3.bf16.msra.mxu1 %v5642_v55 }
 0x1ed   : > { %v650_v9 = vpop.f32.mrb[0].mxu1  ;;  %v733_v10 = vpop.f32.mrb[6].mxu0 }
 0x1ee   : > { %v651_v11 = vadd.f32 %v650_v9, %v6862_v3  ;;  %v734_v12 = vadd.f32 %v733_v10, %v6865_v4  ;;  %v652_v13 = vpop.f32.mrb[1].mxu1  ;;  %v735_v14 = vpop.f32.mrb[7].mxu0 }
 0x1ef   : > { %v653_v17 = vadd.f32 %v652_v13, %v6868_v6  ;;  %v736_v18 = vadd.f32 %v735_v14, %v6871_v7 }
 0x1f0   : > { %v830_v21 = vmax.f32 %v651_v11, 0.0  ;;  %v832_v22 = vmax.f32 %v734_v12, 0.0 }
 0x1f1   : > { %v831_v26 = vmax.f32 %v653_v17, 0.0  ;;  %v833_v27 = vmax.f32 %v736_v18, 0.0  ;;  %v656_v28 = vpop.f32.mrb[2].mxu1  ;;  %v739_v29 = vpop.f32.mrb[8].mxu0  ;;  %v915_v17 = vld [vmem:[%s8653_s4 + $0x230] sm:$0xff]  ;;  %v916_v18 = vld [vmem:[%s8653_s4 + $0x238] sm:$0xff] }
 0x1f2   : > { %v657_v31 = vadd.f32 %v656_v28, %v6862_v3  ;;  %v740_v32 = vadd.f32 %v739_v29, %v6865_v4  ;;  %v658_v33 = vpop.f32.mrb[3].mxu1  ;;  %v741_v34 = vpop.f32.mrb[9].mxu0  ;;  %v1185_v41 = vmul.f32 %v6891_v23, %v830_v21  ;;  %v1187_v42 = vmul.f32 %v6891_v23, %v832_v22 }
 0x1f3   : > { %v659_v36 = vadd.f32 %v658_v33, %v6868_v6  ;;  %v742_v37 = vadd.f32 %v741_v34, %v6871_v7  ;;  %989 = vmatprep.mubr.f32.mxu0 %v831_v26  ;;  %1069 = vmatprep.mubr.f32.mxu1 %v833_v27  ;;  %v1186_v45 = vmul.f32 %v6891_v23, %v831_v26  ;;  %v917_v34 = vld [vmem:[%s8653_s4 + $0x240] sm:$0xff] }
 0x1f4   : > { %v835_v43 = vmax.f32 %v657_v31, 0.0  ;;  %v837_v44 = vmax.f32 %v740_v32, 0.0  ;;  %990 = vmatmul.mubr.f32.vlgmr.msra.gmra.mrb[12].mxu0 %v830_v21  ;;  %v1188_v46 = vmul.f32 %v6891_v23, %v833_v27  ;;  %1070 = vmatmul.mubr.f32.vlgmr.msra.gmra.mrb[12].mxu1 %v832_v22  ;;  %v6937_v21 = vrot.slane %v6855_v61, %v567_v39 }
 0x1f5   : > { %v836_v47 = vmax.f32 %v659_v36, 0.0  ;;  %v838_v48 = vmax.f32 %v742_v37, 0.0  ;;  %5646 = vmatpush3.bf16.msra.mxu0 %v5645_v30  ;;  %v662_v49 = vpop.f32.mrb[4].mxu1  ;;  %v745_v50 = vpop.f32.mrb[10].mxu0  ;;  %v5654_v27 = vpack.c.bf16 %v916_v18, %v915_v17  ;;  %v1423_v17 = vld [vmem:[#allocation3 + $0x158] sm:$0xff]  ;;  %v1428_v18 = vld [vmem:[#allocation3 + $0x180] sm:$0xff] }
 0x1f6   : > { %v1190_v51 = vmul.f32 %v6907_v38, %v835_v43  ;;  %v1192_v52 = vmul.f32 %v6907_v38, %v837_v44  ;;  %v663_v53 = vadd.f32 %v662_v49, %v6862_v3  ;;  %v746_v54 = vadd.f32 %v745_v50, %v6865_v4  ;;  %v664_v55 = vpop.f32.mrb[5].mxu1  ;;  %v747_v56 = vpop.f32.mrb[11].mxu0  ;;  %5647 = vmatprep.subr.bf16.mxu0 %v6414_v1 }
 0x1f7   : > { %v1191_v57 = vmul.f32 %v6907_v38, %v836_v47  ;;  %v1193_v59 = vmul.f32 %v6907_v38, %v838_v48  ;;  %v665_v60 = vadd.f32 %v664_v55, %v6868_v6  ;;  %v748_v62 = vadd.f32 %v747_v56, %v6871_v7  ;;  %994 = vmatprep.mubr.f32.mxu0 %v836_v47 }
 0x1f8   : > { %v1200_v9 = vadd.f32 %v1190_v51, %v1185_v41  ;;  %v1219_v10 = vadd.f32 %v1192_v52, %v1187_v42  ;;  %v840_v11 = vmax.f32 %v663_v53, 0.0  ;;  %v842_v12 = vmax.f32 %v746_v54, 0.0  ;;  %1074 = vmatprep.mubr.f32.mxu1 %v838_v48  ;;  %995 = vmatmul.mubr.f32.gmra.mrb[14].mxu0 %v835_v43  ;;  %v921_v53 = vld [vmem:[%s8653_s4 + $0x260] sm:$0xff]  ;;  %v922_v54 = vld [vmem:[%s8653_s4 + $0x268] sm:$0xff] }
 0x1f9   : > { %v1210_v13 = vadd.f32 %v1191_v57, %v1186_v45  ;;  %v1228_v14 = vadd.f32 %v1193_v59, %v1188_v46  ;;  %v841_v15 = vmax.f32 %v665_v60, 0.0  ;;  %v843_v16 = vmax.f32 %v748_v62, 0.0  ;;  %5649 = vmatpush3.bf16.msra.mxu0 %v5648_v35  ;;  %1075 = vmatmul.mubr.f32.gmra.mrb[14].mxu1 %v837_v44  ;;  %v918_v35 = vld [vmem:[%s8653_s4 + $0x248] sm:$0xff]  ;;  %v919_v44 = vld [vmem:[%s8653_s4 + $0x250] sm:$0xff]  ;;  %v920_v45 = vld [vmem:[%s8653_s4 + $0x258] sm:$0xff] }
 0x1fa   : > { %v1195_v19 = vmul.f32 %v6925_v63, %v840_v11  ;;  %v1197_v20 = vmul.f32 %v6925_v63, %v842_v12  ;;  %5650 = vmatprep.subr.bf16.mxu0 %v6414_v1  ;;  %v5660_v48 = vpack.c.bf16 %v920_v45, %v919_v44  ;;  %v5663_v57 = vpack.c.bf16 %v922_v54, %v921_v53  ;;  %v924_v59 = vld [vmem:[%s8653_s4 + $0x278] sm:$0xff]  ;;  %v1440_v45 = vld [vmem:[#allocation3 + $0x1e0] sm:$0xff] }
 0x1fb   : > { %v1196_v22 = vmul.f32 %v6925_v63, %v841_v15  ;;  %v1198_v24 = vmul.f32 %v6925_v63, %v843_v16  ;;  %999 = vmatprep.mubr.f32.mxu0 %v841_v15  ;;  %1079 = vmatprep.mubr.f32.mxu1 %v843_v16  ;;  %v1425_v16 = vld [vmem:[#allocation3 + $0x168] sm:$0xff]  ;;  %v1451_v54 = vld [vmem:[#allocation3 + $0x238] sm:$0xff] }
 0x1fc   : > { %v1202_v25 = vsel %vm1201_vm3, %v1195_v19, 0.0  ;;  %v1220_v26 = vsel %vm1201_vm3, %v1197_v20, 0.0  ;;  %1000 = vmatmul.mubr.f32.gmra.mrb[16].mxu0 %v840_v11  ;;  %v4161_v11 = vld [vmem:[%s8650_s1 + $0x28] sm:$0xf]  ;;  %v5687_v20 = vpack.c.bf16 %v1428_v18, %v1423_v17 }
 0x1fd   : > { %v6943_v28 = vadd.f32 %v1202_v25, %v1200_v9  ;;  %v1211_v29 = vsel %vm1201_vm3, %v1196_v22, 0.0  ;;  %v6946_v30 = vadd.f32 %v1220_v26, %v1219_v10  ;;  %v1229_v61 = vsel %vm1201_vm3, %v1198_v24, 0.0  ;;  %v816_v31 = vpop.f32.mrb[6].mxu1  ;;  %5652 = vmatpush3.bf16.msra.mxu0 %v5651_v40  ;;  %1080 = vmatmul.mubr.f32.gmra.mrb[16].mxu1 %v842_v12  ;;  %v4160_v10 = vld [vmem:[%s8650_s1 + $0x20] sm:$0xff]  ;;  %v1421_v12 = vld [vmem:[#allocation3 + $0x148] sm:$0xff]  ;;  %v1422_v22 = vld [vmem:[#allocation3 + $0x150] sm:$0xff] }
 0x1fe   : > { %v817_v32 = vadd.f32 %v816_v31, %v6937_v21  ;;  %v5195_v33 = vpop.f32.mrb[7].mxu1  ;;  %5653 = vmatprep.subr.bf16.mxu0 %v6414_v1  ;;  %5234 = vmatprep.mubr.msk.f32.mxu0 %vm6415_vm0, %v6416_v2  ;;  %v6959_v36 = vadd.f32 %v1211_v29, %v1210_v13  ;;  %v6961_v37 = vadd.f32 %v1229_v61, %v1228_v14  ;;  %v1426_v13 = vld [vmem:[#allocation3 + $0x170] sm:$0xff]  ;;  %v1420_v14 = vld [vmem:[#allocation3 + $0x140] sm:$0xff]  ;;  %v1427_v24 = vld [vmem:[#allocation3 + $0x178] sm:$0xff] }
 0x1ff   : > { %1533 = vmatprep.mubr.f32.mxu1 %v6416_v2  ;;  %v5657_v40 = vpack.c.bf16 %v918_v35, %v917_v34  ;;  %v5671_v15 = vpack.c.bf16 %v1426_v13, %v1421_v12  ;;  %v5673_v19 = vpack.c.bf16 %v1425_v16, %v1420_v14  ;;  %v5689_v25 = vpack.c.bf16 %v1427_v24, %v1422_v22  ;;  %v1431_v26 = vld [vmem:[#allocation3 + $0x198] sm:$0xff]  ;;  %v1430_v61 = vld [vmem:[#allocation3 + $0x190] sm:$0xff]  ;;  %v1432_v35 = vld [vmem:[#allocation3 + $0x1a0] sm:$0xff] }
 0x200   : > { %v834_v41 = vmax.f32 %v817_v32, 0.0  ;;  %v1435_v31 = vld [vmem:[#allocation3 + $0x1b8] sm:$0xff]  ;;  %v1433_v32 = vld [vmem:[#allocation3 + $0x1a8] sm:$0xff]  ;;  %v1438_v34 = vld [vmem:[#allocation3 + $0x1d0] sm:$0xff] }
 0x201   : > { %v821_v39 = vpop.f32.mrb[8].mxu1  ;;  %5655 = vmatpush3.bf16.msra.mxu0 %v5654_v27  ;;  %5672 = vmatprep.subr.bf16.mxu1 %v5671_v15  ;;  %v1436_v27 = vld [vmem:[#allocation3 + $0x1c0] sm:$0xff]  ;;  %v5677_v33 = vpack.c.bf16 %v1435_v31, %v1430_v61 }
 0x202   : > { %v822_v42 = vadd.f32 %v821_v39, %v6937_v21  ;;  %v5198_v43 = vpop.f32.mrb[9].mxu1  ;;  %5656 = vmatprep.subr.bf16.mxu0 %v6414_v1  ;;  %v1189_v49 = vmul.f32 %v6891_v23, %v834_v41  ;;  %5674 = vmatpush1.bf16.msra.mxu1 %v5673_v19  ;;  %v5675_v29 = vpack.c.bf16 %v1436_v27, %v1431_v26  ;;  %v1437_v39 = vld [vmem:[#allocation3 + $0x1c8] sm:$0xff]  ;;  %v4190_v12 = vld [vmem:[%s8653_s4 + $0x300] sm:$0xff] }
 0x203   : > { %v1446_v43 = vld [vmem:[#allocation3 + $0x210] sm:$0xff]  ;;  %v4191_v13 = vld [vmem:[%s8653_s4 + $0x308] sm:$0xff] }
 0x204   : > { %v839_v46 = vmax.f32 %v822_v42, 0.0  ;;  %5676 = vmatprep.subr.bf16.mxu1 %v5675_v29  ;;  %v1441_v42 = vld [vmem:[#allocation3 + $0x1e8] sm:$0xff]  ;;  %v5715_v14 = vpack.c.bf16 %v4191_v13, %v4190_v12 }
 0x205   : > { %v826_v47 = vpop.f32.mrb[10].mxu1  ;;  %5658 = vmatpush3.bf16.msra.mxu0 %v5657_v40  ;;  %v5691_v40 = vpack.c.bf16 %v1438_v34, %v1433_v32  ;;  %v5679_v44 = vpack.c.bf16 %v1446_v43, %v1441_v42  ;;  %v1449_v12 = vld [vmem:[#allocation3 + $0x228] sm:$0xff] }
 0x206   : > { %v1194_v50 = vmul.f32 %v6907_v38, %v839_v46  ;;  %v827_v51 = vadd.f32 %v826_v47, %v6937_v21  ;;  %5659 = vmatprep.subr.bf16.mxu0 %v6414_v1  ;;  %v5201_v52 = vpop.f32.mrb[11].mxu1  ;;  %v923_v38 = vld [vmem:[%s8653_s4 + $0x270] sm:$0xff]  ;;  %5678 = vmatpush1.bf16.msra.mxu1 %v5677_v33  ;;  %v1443_v47 = vld [vmem:[#allocation3 + $0x1f8] sm:$0xff] }
 0x207   : > { %v5666_v9 = vpack.c.bf16 %v924_v59, %v923_v38  ;;  %5680 = vmatprep.subr.bf16.mxu1 %v5679_v44  ;;  %v1453_v38 = vld [vmem:[#allocation3 + $0x248] sm:$0xff] }
 0x208   : > { %v1237_v55 = vadd.f32 %v1194_v50, %v1189_v49  ;;  %v844_v56 = vmax.f32 %v827_v51, 0.0  ;;  %v1448_v49 = vld [vmem:[#allocation3 + $0x220] sm:$0xff]  ;;  %v1442_v50 = vld [vmem:[#allocation3 + $0x1f0] sm:$0xff]  ;;  %v1447_v51 = vld [vmem:[#allocation3 + $0x218] sm:$0xff] }
 0x209   : > { %5661 = vmatpush3.bf16.msra.mxu0 %v5660_v48  ;;  %v5695_v52 = vpack.c.bf16 %v1448_v49, %v1443_v47  ;;  %v5697_v53 = vpack.c.bf16 %v1447_v51, %v1442_v50  ;;  %v1424_v49 = vld [vmem:[#allocation3 + $0x160] sm:$0xff]  ;;  %v1429_v50 = vld [vmem:[#allocation3 + $0x188] sm:$0xff] }
 0x20a   : > { %v1199_v23 = vmul.f32 %v6925_v63, %v844_v56  ;;  %5662 = vmatprep.subr.bf16.mxu0 %v6414_v1  ;;  %v4159_v63 = vld [vmem:[%s8650_s1 + $0x18] sm:$0xff] }
 0x20c   : > { %v1238_v60 = vsel %vm1201_vm3, %v1199_v23, 0.0  ;;  %v1455_v23 = vld [vmem:[#allocation3 + $0x258] sm:$0xff] }
 0x20d   : > { %v6991_v62 = vadd.f32 %v1238_v60, %v1237_v55  ;;  %5664 = vmatpush3.bf16.msra.mxu0 %v5663_v57  ;;  %v1456_v55 = vld [vmem:[#allocation3 + $0x260] sm:$0xff]  ;;  %v1450_v57 = vld [vmem:[#allocation3 + $0x230] sm:$0xff] }
 0x20e   : > { %5665 = vmatprep.subr.bf16.mxu0 %v6414_v1  ;;  %v5685_v59 = vpack.c.bf16 %v1455_v23, %v1450_v57  ;;  %v1458_v60 = vld [vmem:[#allocation3 + $0x270] sm:$0xff]  ;;  %v1439_v23 = vld [vmem:[#allocation3 + $0x1d8] sm:$0xff] }
 0x20f   : > { %v1434_v57 = vld [vmem:[#allocation3 + $0x1b0] sm:$0xff] }
 0x211   : > { %5667 = vmatpush3.bf16.msra.mxu0 %v5666_v9  ;;  %v1452_v9 = vld [vmem:[#allocation3 + $0x240] sm:$0xff] }
 0x212   : > { %5668 = vmatprep.subr.bf16.mxu0 %v6414_v1 }
 0x214   : > { %5235 = vmatmul.mubr.f32.vlgmr.msra.gmra.mrb[18].mxu0 %v834_v41  ;;  %v5693_v41 = vpack.c.bf16 %v1437_v39, %v1432_v35 }
 0x215   : > { %5237 = vmatprep.mubr.msk.f32.mxu0 %vm6415_vm0, %v6416_v2  ;;  %5670 = vmatpush3.bf16.msra.mxu0 %v6577_v5 }
 0x216   : > { %5688 = vmatprep.subr.bf16.mxu0 %v5687_v20 }
 0x218   : > { %5238 = vmatmul.mubr.f32.gmra.mrb[20].mxu0 %v839_v46  ;;  %v1445_v46 = vld [vmem:[#allocation3 + $0x208] sm:$0xff] }
 0x219   : > { %5240 = vmatprep.mubr.msk.f32.mxu0 %vm6415_vm0, %v6416_v2  ;;  %v5681_v48 = vpack.c.bf16 %v1445_v46, %v1440_v45 }
 0x21b   : > { %5682 = vmatpush1.bf16.msra.mxu1 %v5681_v48 }
 0x21c   : > { %5241 = vmatmul.mubr.f32.gmra.mrb[22].mxu0 %v844_v56  ;;  %v5683_v56 = vpack.c.bf16 %v1456_v55, %v1451_v54  ;;  %v4174_v54 = vld [vmem:[%s8653_s4 + $0x280] sm:$0xff]  ;;  %v4175_v55 = vld [vmem:[%s8653_s4 + $0x288] sm:$0xff] }
 0x21d   : > { %5247 = vmatprep.mubr.msk.f32.mxu0 %vm6415_vm0, %v6416_v2 }
 0x21e   : > { %5684 = vmatprep.subr.bf16.mxu1 %v5683_v56  ;;  %v5704_v56 = vpack.c.bf16 %v1429_v50, %v1424_v49  ;;  %v4181_v49 = vld [vmem:[%s8653_s4 + $0x2b8] sm:$0xff]  ;;  %v4198_v50 = vld [vmem:[%s8653_s4 + $0x340] sm:$0xff] }
 0x21f   : > { %5686 = vmatpush1.bf16.msra.mxu1 %v5685_v59  ;;  %v5717_v59 = vpack.c.bf16 %v4175_v55, %v4174_v54  ;;  %v4208_v55 = vld [vmem:[%s8653_s4 + $0x390] sm:$0xff] }
 0x220   : > { %5248 = vmatmul.mubr.msk.f32.vlgmr.msra.gmra.mrb[24].mxu0 %vm418_vm1, %v4159_v63  ;;  %v1457_v63 = vld [vmem:[#allocation3 + $0x268] sm:$0xff]  ;;  %5703 = vmatprep.subr.bf16.mxu1 %v6414_v1 }
 0x221   : > { %5250 = vmatprep.mubr.msk.f32.mxu0 %vm6415_vm0, %v6416_v2  ;;  %5690 = vmatpush1.bf16.msra.mxu0 %v5689_v25 }
 0x222   : > { %5692 = vmatprep.subr.bf16.mxu0 %v5691_v40 }
 0x224   : > { %5251 = vmatmul.mubr.msk.f32.gmra.mrb[26].mxu0 %vm418_vm1, %v4160_v10  ;;  %v5699_v10 = vpack.c.bf16 %v1458_v60, %v1453_v38 }
 0x225   : > { %5253 = vmatprep.mubr.msk.f32.mxu0 %vm6415_vm0, %v6416_v2  ;;  %5694 = vmatpush1.bf16.msra.mxu0 %v5693_v41 }
 0x226   : > { %5696 = vmatprep.subr.bf16.mxu0 %v5695_v52 }
 0x228   : > { %5254 = vmatmul.mubr.msk.f32.gmra.mrb[28].mxu0 %vm418_vm1, %v4161_v11  ;;  %v5701_v11 = vpack.c.bf16 %v1457_v63, %v1452_v9  ;;  %v4192_v9 = vld [vmem:[%s8653_s4 + $0x310] sm:$0xff]  ;;  %v4193_v63 = vld [vmem:[%s8653_s4 + $0x318] sm:$0xff] }
 0x229   : > { %1616 = vmatprep.mubr.f32.mxu0 %v6416_v2  ;;  %5698 = vmatpush1.bf16.msra.mxu0 %v5697_v53 }
 0x22a   : > { %5700 = vmatprep.subr.bf16.mxu0 %v5699_v10  ;;  %v5707_v10 = vpack.c.bf16 %v1439_v23, %v1434_v57  ;;  %v4226_v57 = vld [vmem:[%s8653_s4 + $0x420] sm:$0xff] }
 0x22d   : > { %5702 = vmatpush1.bf16.msra.mxu0 %v5701_v11  ;;  %v1444_v11 = vld [vmem:[#allocation3 + $0x200] sm:$0xff] }
 0x22e   : > { %5716 = vmatprep.subr.bf16.mxu0 %v5715_v14  ;;  %v5719_v14 = vpack.c.bf16 %v4193_v63, %v4192_v9  ;;  %v4182_v9 = vld [vmem:[%s8653_s4 + $0x2c0] sm:$0xff]  ;;  %v4183_v63 = vld [vmem:[%s8653_s4 + $0x2c8] sm:$0xff] }
 0x2c7   : > { %v4585_v15 = vpop.f32.mrb[12].mxu0  ;;  %v4626_v16 = vpop.f32.mrb[12].mxu1 }
 0x2c8   : > { %v4586_v17 = vpop.f32.mrb[13].mxu0  ;;  %v4627_v19 = vpop.f32.mrb[13].mxu1 }
 0x2c9   : > { %v4587_v18 = vadd.f32 %v4586_v17, %v4585_v15  ;;  %v4628_v20 = vadd.f32 %v4627_v19, %v4626_v16  ;;  %v4176_v15 = vld [vmem:[%s8653_s4 + $0x290] sm:$0xff]  ;;  %v4177_v16 = vld [vmem:[%s8653_s4 + $0x298] sm:$0xff]  ;;  %v4195_v19 = vld [vmem:[%s8653_s4 + $0x328] sm:$0xff] }
 0x2cb   : > { %v4588_v22 = vpop.f32.mrb[14].mxu0  ;;  %v1072_v26 = vadd.f32 %v4628_v20, %v4587_v18  ;;  %v4194_v18 = vld [vmem:[%s8653_s4 + $0x320] sm:$0xff]  ;;  %v5710_v20 = vpack.c.bf16 %v1449_v12, %v1444_v11  ;;  %v4201_v11 = vld [vmem:[%s8653_s4 + $0x358] sm:$0xff] }
 0x2cc   : > { %v4629_v24 = vpop.f32.mrb[14].mxu1  ;;  %v4589_v25 = vpop.f32.mrb[15].mxu0 }
 0x2cd   : > { %v4590_v27 = vadd.f32 %v4589_v25, %v4588_v22  ;;  %v4630_v29 = vpop.f32.mrb[15].mxu1  ;;  %v1454_v22 = vld [vmem:[#allocation3 + $0x250] sm:$0xff]  ;;  %v4222_v25 = vld [vmem:[%s8653_s4 + $0x400] sm:$0xff] }
 0x2ce   : > { %v4631_v61 = vadd.f32 %v4630_v29, %v4629_v24  ;;  %v1459_v24 = vld [vmem:[#allocation3 + $0x278] sm:$0xff]  ;;  %v4223_v29 = vld [vmem:[%s8653_s4 + $0x408] sm:$0xff] }
 0x2cf   : > { %v4591_v31 = vpop.f32.mrb[16].mxu0 }
 0x2d0   : > { %v4632_v32 = vpop.f32.mrb[16].mxu1  ;;  %v4592_v33 = vpop.f32.mrb[17].mxu0  ;;  %v1077_v34 = vadd.f32 %v4631_v61, %v4590_v27  ;;  %v5723_v61 = vpack.c.bf16 %v4195_v19, %v4194_v18  ;;  %v4229_v18 = vld [vmem:[%s8653_s4 + $0x438] sm:$0xff] }
 0x2d1   : > { %v4593_v35 = vadd.f32 %v4592_v33, %v4591_v31  ;;  %v4633_v39 = vpop.f32.mrb[17].mxu1  ;;  %v4178_v31 = vld [vmem:[%s8653_s4 + $0x2a0] sm:$0xff] }
 0x2d2   : > { %v4634_v40 = vadd.f32 %v4633_v39, %v4632_v32  ;;  %v4179_v32 = vld [vmem:[%s8653_s4 + $0x2a8] sm:$0xff]  ;;  %v5713_v39 = vpack.c.bf16 %v1459_v24, %v1454_v22  ;;  %v4185_v22 = vld [vmem:[%s8653_s4 + $0x2d8] sm:$0xff]  ;;  %v4202_v24 = vld [vmem:[%s8653_s4 + $0x360] sm:$0xff] }
 0x2d4   : > { %v1082_v41 = vadd.f32 %v4634_v40, %v4593_v35  ;;  %v4197_v35 = vld [vmem:[%s8653_s4 + $0x338] sm:$0xff]  ;;  %v5747_v40 = vpack.c.bf16 %v4223_v29, %v4222_v25  ;;  %v4203_v25 = vld [vmem:[%s8653_s4 + $0x368] sm:$0xff] }
 0x2e7   : > { %v1151_v42 = vpop.f32.mrb[18].mxu0 }
 0x2e8   : > { %v1152_v43 = vadd.f32 %v1151_v42, %v1072_v26  ;;  %v5236_v44 = vpop.f32.mrb[19].mxu0  ;;  %v5721_v26 = vpack.c.bf16 %v4177_v16, %v4176_v15  ;;  %v4207_v42 = vld [vmem:[%s8653_s4 + $0x388] sm:$0xff]  ;;  %v4210_v15 = vld [vmem:[%s8653_s4 + $0x3a0] sm:$0xff]  ;;  %v4228_v16 = vld [vmem:[%s8653_s4 + $0x430] sm:$0xff] }
 0x2e9   : > { %v5725_v44 = vpack.c.bf16 %v4179_v32, %v4178_v31  ;;  %v5759_v29 = vpack.c.bf16 %v4229_v18, %v4228_v16  ;;  %v4230_v31 = vld [vmem:[%s8653_s4 + $0x440] sm:$0xff] }
 0x2eb   : > { %v1156_v45 = vpop.f32.mrb[20].mxu0 }
 0x2ec   : > { %v1157_v46 = vadd.f32 %v1156_v45, %v1077_v34  ;;  %v5239_v47 = vpop.f32.mrb[21].mxu0  ;;  %v4196_v34 = vld [vmem:[%s8653_s4 + $0x330] sm:$0xff]  ;;  %v4225_v45 = vld [vmem:[%s8653_s4 + $0x418] sm:$0xff] }
 0x2ed   : > { %v4180_v47 = vld [vmem:[%s8653_s4 + $0x2b0] sm:$0xff] }
 0x2ee   : > { %v7026_v48 = vpack.c.bf16 %v1157_v46, %v1152_v43  ;;  %v4224_v43 = vld [vmem:[%s8653_s4 + $0x410] sm:$0xff]  ;;  %v5727_v46 = vpack.c.bf16 %v4197_v35, %v4196_v34  ;;  %v5729_v23 = vpack.c.bf16 %v4181_v49, %v4180_v47  ;;  %v5739_v34 = vpack.c.bf16 %v4203_v25, %v4202_v24  ;;  %v4186_v35 = vld [vmem:[%s8653_s4 + $0x2e0] sm:$0xff] }
 0x2ef   : > { %v1161_v51 = vpop.f32.mrb[22].mxu0  ;;  %v5751_v54 = vpack.c.bf16 %v4225_v45, %v4224_v43  ;;  %v4215_v43 = vld [vmem:[%s8653_s4 + $0x3c8] sm:$0xff]  ;;  %v4232_v45 = vld [vmem:[%s8653_s4 + $0x450] sm:$0xff] }
 0x2f0   : > { %v7028_v52 = vadd.f32 %v1161_v51, %v1082_v41  ;;  %v5242_v53 = vpop.f32.mrb[23].mxu0  ;;  %v4206_v41 = vld [vmem:[%s8653_s4 + $0x380] sm:$0xff]  ;;  %v4199_v51 = vld [vmem:[%s8653_s4 + $0x348] sm:$0xff]  ;;  %v4216_v49 = vld [vmem:[%s8653_s4 + $0x3d0] sm:$0xff] }
 0x2f1   : > { %v5749_v53 = vpack.c.bf16 %v4207_v42, %v4206_v41  ;;  %v4214_v42 = vld [vmem:[%s8653_s4 + $0x3c0] sm:$0xff] }
 0x2f3   : > { %v7036_v38 = vpop.f32.mrb[24].mxu0 }
 0x2f4   : > { %v5249_v60 = vpop.f32.mrb[25].mxu0  ;;  %4165 = vmatmul.mubr.msk.f32.vlgmr.msra.gmra.mrb[18].mxu1 %vm574_vm2, %v7036_v38  ;;  %4168 = vmatmul.mubr.msk.f32.vlgmr.msra.gmra.mrb[30].mxu0 %vm574_vm2, %v7036_v38 }
 0x2f5   : > { %5705 = vmatpush3.bf16.msra.mxu1 %v5704_v56  ;;  %1539 = vmatprep.mubr.f32.mxu1 %v6416_v2  ;;  %v4209_v56 = vld [vmem:[%s8653_s4 + $0x398] sm:$0xff]  ;;  %v5731_v60 = vpack.c.bf16 %v4199_v51, %v4198_v50  ;;  %v4234_v51 = vld [vmem:[%s8653_s4 + $0x460] sm:$0xff] }
 0x2f6   : > { %1622 = vmatprep.mubr.f32.mxu0 %v6416_v2  ;;  %5706 = vmatprep.subr.bf16.mxu1 %v6414_v1  ;;  %v5753_v12 = vpack.c.bf16 %v4209_v56, %v4208_v55  ;;  %v4217_v50 = vld [vmem:[%s8653_s4 + $0x3d8] sm:$0xff]  ;;  %v4218_v56 = vld [vmem:[%s8653_s4 + $0x3e0] sm:$0xff] }
 0x2f7   : > { %v7051_v13 = vpop.f32.mrb[26].mxu0  ;;  %5718 = vmatpush3.bf16.msra.mxu0 %v5717_v59  ;;  %v4227_v59 = vld [vmem:[%s8653_s4 + $0x428] sm:$0xff] }
 0x2f8   : > { %4166 = vmatmul.mubr.msk.f32.gmra.mrb[20].mxu1 %vm574_vm2, %v7051_v13  ;;  %4169 = vmatmul.mubr.msk.f32.gmra.mrb[32].mxu0 %vm574_vm2, %v7051_v13  ;;  %v5252_v17 = vpop.f32.mrb[27].mxu0 }
 0x2f9   : > { %5708 = vmatpush3.bf16.msra.mxu1 %v5707_v10  ;;  %1545 = vmatprep.mubr.f32.mxu1 %v6416_v2  ;;  %v4200_v10 = vld [vmem:[%s8653_s4 + $0x350] sm:$0xff]  ;;  %v5733_v17 = vpack.c.bf16 %v4183_v63, %v4182_v9 }
 0x2fa   : > { %1628 = vmatprep.mubr.f32.mxu0 %v6416_v2  ;;  %5709 = vmatprep.subr.bf16.mxu1 %v6414_v1  ;;  %v5735_v19 = vpack.c.bf16 %v4201_v11, %v4200_v10  ;;  %v4188_v63 = vld [vmem:[%s8653_s4 + $0x2f0] sm:$0xff]  ;;  %v4189_v10 = vld [vmem:[%s8653_s4 + $0x2f8] sm:$0xff] }
 0x2fb   : > { %v7075_v27 = vpop.f32.mrb[28].mxu0  ;;  %5720 = vmatprep.subr.bf16.mxu0 %v5719_v14  ;;  %v5755_v14 = vpack.c.bf16 %v4227_v59, %v4226_v57  ;;  %v4219_v57 = vld [vmem:[%s8653_s4 + $0x3e8] sm:$0xff]  ;;  %v4204_v59 = vld [vmem:[%s8653_s4 + $0x370] sm:$0xff] }
 0x2fc   : > { %4167 = vmatmul.mubr.msk.f32.gmra.mrb[22].mxu1 %vm574_vm2, %v7075_v27  ;;  %4170 = vmatmul.mubr.msk.f32.gmra.mrb[34].mxu0 %vm574_vm2, %v7075_v27  ;;  %v5255_v33 = vpop.f32.mrb[29].mxu0  ;;  %v4236_v11 = vld [vmem:[%s8653_s4 + $0x470] sm:$0xff] }
 0x2fd   : > { %5711 = vmatpush3.bf16.msra.mxu1 %v5710_v20  ;;  %5272 = vmatprep.mubr.msk.f32.mxu1 %vm6415_vm0, %v6416_v2  ;;  %v4184_v20 = vld [vmem:[%s8653_s4 + $0x2d0] sm:$0xff]  ;;  %v4231_v33 = vld [vmem:[%s8653_s4 + $0x448] sm:$0xff] }
 0x2fe   : > { %5712 = vmatprep.subr.bf16.mxu1 %v6414_v1  ;;  %5722 = vmatpush3.bf16.msra.mxu0 %v5721_v26  ;;  %v5737_v32 = vpack.c.bf16 %v4185_v22, %v4184_v20  ;;  %v5763_v41 = vpack.c.bf16 %v4231_v33, %v4230_v31  ;;  %v4240_v31 = vld [vmem:[%s8653_s4 + $0x490] sm:$0xff] }
 0x2ff   : > { %5724 = vmatprep.subr.bf16.mxu0 %v5723_v61  ;;  %v4212_v61 = vld [vmem:[%s8653_s4 + $0x3b0] sm:$0xff] }
 0x301   : > { %5714 = vmatpush3.bf16.msra.mxu1 %v5713_v39  ;;  %v4187_v39 = vld [vmem:[%s8653_s4 + $0x2e8] sm:$0xff] }
 0x302   : > { %5748 = vmatprep.subr.bf16.mxu1 %v5747_v40  ;;  %5726 = vmatpush3.bf16.msra.mxu0 %v5725_v44  ;;  %v5741_v44 = vpack.c.bf16 %v4187_v39, %v4186_v35  ;;  %v7273_v35 = vld [vmem:[%s8653_s4 + $0x4a0] sm:$0xff]  ;;  %v7278_v39 = vld [vmem:[%s8653_s4 + $0x4a8] sm:$0xff] }
 0x303   : > { %5728 = vmatprep.subr.bf16.mxu0 %v5727_v46  ;;  %v5765_v46 = vpack.c.bf16 %v4215_v43, %v4214_v42 }
 0x304   : > { %5273 = vmatmul.mubr.msk.f32.vlgmr.msra.gmra.mrb[24].mxu1 %vm574_vm2, %v7036_v38  ;;  %v4211_v38 = vld [vmem:[%s8653_s4 + $0x3a8] sm:$0xff] }
 0x305   : > { %5275 = vmatprep.mubr.msk.f32.mxu1 %vm6415_vm0, %v6416_v2  ;;  %5750 = vmatpush3.bf16.msra.mxu1 %v5749_v53  ;;  %v5757_v26 = vpack.c.bf16 %v4211_v38, %v4210_v15  ;;  %v4235_v53 = vld [vmem:[%s8653_s4 + $0x468] sm:$0xff]  ;;  %v4220_v15 = vld [vmem:[%s8653_s4 + $0x3f0] sm:$0xff]  ;;  %v4221_v38 = vld [vmem:[%s8653_s4 + $0x3f8] sm:$0xff] }
 0x306   : > { %5752 = vmatprep.subr.bf16.mxu1 %v5751_v54  ;;  %5730 = vmatpush3.bf16.msra.mxu0 %v5729_v23  ;;  %v5769_v54 = vpack.c.bf16 %v4217_v50, %v4216_v49  ;;  %v5771_v55 = vpack.c.bf16 %v4235_v53, %v4234_v51  ;;  %v5773_v23 = vpack.c.bf16 %v4219_v57, %v4218_v56 }
 0x307   : > { %5732 = vmatprep.subr.bf16.mxu0 %v5731_v60  ;;  %v4205_v60 = vld [vmem:[%s8653_s4 + $0x378] sm:$0xff]  ;;  %v5786_v53 = vpack.c.bf16 %v7278_v39, %v7273_v35 }
 0x308   : > { %5276 = vmatmul.mubr.msk.f32.gmra.mrb[26].mxu1 %vm574_vm2, %v7051_v13  ;;  %v4213_v13 = vld [vmem:[%s8653_s4 + $0x3b8] sm:$0xff]  ;;  %v5743_v9 = vpack.c.bf16 %v4205_v60, %v4204_v59 }
 0x309   : > { %5278 = vmatprep.mubr.msk.f32.mxu1 %vm6415_vm0, %v6416_v2  ;;  %5754 = vmatpush3.bf16.msra.mxu1 %v5753_v12  ;;  %v5761_v40 = vpack.c.bf16 %v4213_v13, %v4212_v61  ;;  %v5745_v12 = vpack.c.bf16 %v4189_v10, %v4188_v63  ;;  %v4446_v35 = vld [vmem:[%s8655_s6 + $0x38] sm:$0xff] }
 0x30a   : > { %5756 = vmatprep.subr.bf16.mxu1 %v5755_v14  ;;  %5734 = vmatpush3.bf16.msra.mxu0 %v5733_v17  ;;  %v4237_v14 = vld [vmem:[%s8653_s4 + $0x478] sm:$0xff]  ;;  %v5777_v17 = vpack.c.bf16 %v4221_v38, %v4220_v15 }
 0x30b   : > { %5736 = vmatprep.subr.bf16.mxu0 %v5735_v19  ;;  %v5775_v16 = vpack.c.bf16 %v4237_v14, %v4236_v11  ;;  %3626 = vperm.xlu1 %6282, %v4446_v35  }
 0x30c   : > { %5279 = vmatmul.mubr.msk.f32.gmra.mrb[28].mxu1 %vm574_vm2, %v7075_v27  ;;  %v4233_v27 = vld [vmem:[%s8653_s4 + $0x458] sm:$0xff] }
 0x30d   : > { %5758 = vmatpush3.bf16.msra.mxu1 %v5757_v26  ;;  %v5767_v47 = vpack.c.bf16 %v4233_v27, %v4232_v45  ;;  %v4238_v26 = vld [vmem:[%s8653_s4 + $0x480] sm:$0xff] }
 0x30e   : > { %5760 = vmatprep.subr.bf16.mxu1 %v5759_v29  ;;  %5738 = vmatpush3.bf16.msra.mxu0 %v5737_v32  ;;  %v4239_v29 = vld [vmem:[%s8653_s4 + $0x488] sm:$0xff] }
 0x30f   : > { %5740 = vmatprep.subr.bf16.mxu0 %v5739_v34  ;;  %v4241_v34 = vld [vmem:[%s8653_s4 + $0x498] sm:$0xff] }
 0x310   : > { %v5783_v51 = vpack.c.bf16 %v4241_v34, %v4240_v31  ;;  %v4245_v34 = vld [vmem:[%s8653_s4 + $0x4b8] sm:$0xff] }
 0x311   : > { %5762 = vmatpush3.bf16.msra.mxu1 %v5761_v40 }
 0x312   : > { %5764 = vmatprep.subr.bf16.mxu1 %v5763_v41  ;;  %5742 = vmatpush3.bf16.msra.mxu0 %v5741_v44  ;;  %v5780_v44 = vpack.c.bf16 %v4239_v29, %v4238_v26 }
 0x313   : > { %5744 = vmatprep.subr.bf16.mxu0 %v5743_v9 }
 0x315   : > { %5766 = vmatpush3.bf16.msra.mxu1 %v5765_v46 }
 0x316   : > { %5768 = vmatprep.subr.bf16.mxu1 %v5767_v47  ;;  %5746 = vmatpush3.bf16.msra.mxu0 %v5745_v12 }
 0x317   : > { %5779 = vmatprep.subr.bf16.mxu0 %v6414_v1 }
 0x319   : > { %5770 = vmatpush3.bf16.msra.mxu1 %v5769_v54 }
 0x31a   : > { %5772 = vmatprep.subr.bf16.mxu1 %v5771_v55 }
 0x31d   : > { %5774 = vmatpush3.bf16.msra.mxu1 %v5773_v23 }
 0x31e   : > { %5776 = vmatprep.subr.bf16.mxu1 %v5775_v16 }
 0x321   : > { %5778 = vmatpush3.bf16.msra.mxu1 %v5777_v17 }
 0x3c7   : > { %v1535_v18 = vpop.f32.mrb[18].mxu1  ;;  %v1618_v19 = vpop.f32.mrb[30].mxu0 }
 0x3c8   : > { %v1536_v20 = vadd.f32 %v1535_v18, %v6862_v3  ;;  %v1619_v22 = vadd.f32 %v1618_v19, %v6865_v4  ;;  %v1537_v24 = vpop.f32.mrb[19].mxu1  ;;  %v1620_v25 = vpop.f32.mrb[31].mxu0 }
 0x3c9   : > { %v1538_v61 = vadd.f32 %v1537_v24, %v6868_v6  ;;  %v1621_v13 = vadd.f32 %v1620_v25, %v6871_v7 }
 0x3ca   : > { %v1715_v32 = vmax.f32 %v1536_v20, 0.0  ;;  %v1717_v33 = vmax.f32 %v1619_v22, 0.0  ;;  %v4445_v22 = vld [vmem:[%s8655_s6 + $0x30] sm:$0xff] }
 0x3cb   : > { %v1716_v40 = vmax.f32 %v1538_v61, 0.0  ;;  %v1718_v41 = vmax.f32 %v1621_v13, 0.0  ;;  %v1541_v42 = vpop.f32.mrb[20].mxu1  ;;  %v1624_v43 = vpop.f32.mrb[32].mxu0  ;;  %3621 = vperm.xlu0 %6281, %v4445_v22   ;;  %v4250_v22 = vld [vmem:[%s8653_s4 + $0x4e0] sm:$0xff] }
 0x3cc   : > { %v1542_v45 = vadd.f32 %v1541_v42, %v6862_v3  ;;  %v1625_v27 = vadd.f32 %v1624_v43, %v6865_v4  ;;  %v1543_v46 = vpop.f32.mrb[21].mxu1  ;;  %v1626_v47 = vpop.f32.mrb[33].mxu0  ;;  %v2158_v54 = vmul.f32 %v6848_v58, %v1715_v32  ;;  %v2160_v55 = vmul.f32 %v6848_v58, %v1717_v33 }
 0x3cd   : > { %v1544_v49 = vadd.f32 %v1543_v46, %v6868_v6  ;;  %v1627_v50 = vadd.f32 %v1626_v47, %v6871_v7  ;;  %1875 = vmatprep.mubr.f32.mxu0 %v1716_v40  ;;  %1955 = vmatprep.mubr.f32.mxu1 %v1718_v41  ;;  %v2159_v23 = vmul.f32 %v6848_v58, %v1716_v40 }
 0x3ce   : > { %v1720_v56 = vmax.f32 %v1542_v45, 0.0  ;;  %v1722_v57 = vmax.f32 %v1625_v27, 0.0  ;;  %1876 = vmatmul.mubr.f32.vlgmr.msra.gmra.mrb[36].mxu0 %v1715_v32  ;;  %v2161_v59 = vmul.f32 %v6848_v58, %v1718_v41  ;;  %1956 = vmatmul.mubr.f32.vlgmr.msra.gmra.mrb[30].mxu1 %v1717_v33  ;;  %v4244_v33 = vld [vmem:[%s8653_s4 + $0x4b0] sm:$0xff]  ;;  %v4447_v27 = vld [vmem:[%s8655_s6 + $0x40] sm:$0xf] }
 0x3cf   : > { %v1721_v60 = vmax.f32 %v1544_v49, 0.0  ;;  %v1723_v9 = vmax.f32 %v1627_v50, 0.0  ;;  %5781 = vmatpush3.bf16.msra.mxu0 %v5780_v44  ;;  %v1547_v63 = vpop.f32.mrb[22].mxu1  ;;  %v1630_v10 = vpop.f32.mrb[34].mxu0  ;;  %v5789_v45 = vpack.c.bf16 %v4245_v34, %v4244_v33  ;;  %3631 = vperm.xlu0 %6281, %v4447_v27  }
 0x3d0   : > { %v2163_v11 = vmul.f32 %v6873_v8, %v1720_v56  ;;  %v2165_v12 = vmul.f32 %v6873_v8, %v1722_v57  ;;  %v1548_v14 = vadd.f32 %v1547_v63, %v6862_v3  ;;  %v1631_v15 = vadd.f32 %v1630_v10, %v6865_v4  ;;  %v1549_v38 = vpop.f32.mrb[23].mxu1  ;;  %v1632_v16 = vpop.f32.mrb[35].mxu0  ;;  %5782 = vmatprep.subr.bf16.mxu0 %v6414_v1 }
 0x3d1   : > { %v2164_v17 = vmul.f32 %v6873_v8, %v1721_v60  ;;  %v2166_v18 = vmul.f32 %v6873_v8, %v1723_v9  ;;  %v1550_v19 = vadd.f32 %v1549_v38, %v6868_v6  ;;  %v1633_v20 = vadd.f32 %v1632_v16, %v6871_v7  ;;  %1880 = vmatprep.mubr.f32.mxu0 %v1721_v60  ;;  %v4247_v60 = vld [vmem:[%s8653_s4 + $0x4c8] sm:$0xff] }
 0x3d2   : > { %v2173_v24 = vadd.f32 %v2163_v11, %v2158_v54  ;;  %v2191_v25 = vadd.f32 %v2165_v12, %v2160_v55  ;;  %v1725_v26 = vmax.f32 %v1548_v14, 0.0  ;;  %v1727_v29 = vmax.f32 %v1631_v15, 0.0  ;;  %1960 = vmatprep.mubr.f32.mxu1 %v1723_v9  ;;  %1881 = vmatmul.mubr.f32.gmra.mrb[38].mxu0 %v1720_v56  ;;  %v4528_v54 = vld [vmem:[#allocation2] ss:$0 sm:$0xff]  ;;  %v4248_v12 = vld [vmem:[%s8653_s4 + $0x4d0] sm:$0xff]  ;;  %v4249_v14 = vld [vmem:[%s8653_s4 + $0x4d8] sm:$0xff] }
 0x3d3   : > { %v2182_v61 = vadd.f32 %v2164_v17, %v2159_v23  ;;  %v2200_v13 = vadd.f32 %v2166_v18, %v2161_v59  ;;  %v1726_v31 = vmax.f32 %v1550_v19, 0.0  ;;  %v1728_v32 = vmax.f32 %v1633_v20, 0.0  ;;  %5784 = vmatpush3.bf16.msra.mxu0 %v5783_v51  ;;  %1961 = vmatmul.mubr.f32.gmra.mrb[32].mxu1 %v1722_v57  ;;  %v4246_v59 = vld [vmem:[%s8653_s4 + $0x4c0] sm:$0xff] }
 0x3d4   : > { %v2168_v39 = vmul.f32 %v6859_v0, %v1725_v26  ;;  %v2170_v40 = vmul.f32 %v6859_v0, %v1727_v29  ;;  %5785 = vmatprep.subr.bf16.mxu0 %v6414_v1  ;;  %3995 = vperm.xlu1 %6282, %v4528_v54   ;;  %v5792_v9 = vpack.c.bf16 %v4247_v60, %v4246_v59  ;;  %v4315_v54 = vld [vmem:[%s8656_s7 + $0x428] sm:$0xff]  ;;  %v4298_v59 = vld [vmem:[%s8656_s7 + $0x3a0] sm:$0xff] }
 0x3d5   : > { %v2169_v41 = vmul.f32 %v6859_v0, %v1726_v31  ;;  %v2171_v42 = vmul.f32 %v6859_v0, %v1728_v32  ;;  %1885 = vmatprep.mubr.f32.mxu0 %v1726_v31  ;;  %1965 = vmatprep.mubr.f32.mxu1 %v1728_v32  ;;  %v5795_v16 = vpack.c.bf16 %v4249_v14, %v4248_v12  ;;  %v4310_v31 = vld [vmem:[%s8656_s7 + $0x400] sm:$0xff]  ;;  %v4311_v32 = vld [vmem:[%s8656_s7 + $0x408] sm:$0xff]  ;;  %v4300_v12 = vld [vmem:[%s8656_s7 + $0x3b0] sm:$0xff] }
 0x3d6   : > { %v2174_v43 = vsel %vm1201_vm3, %v2168_v39, 0.0  ;;  %v2192_v44 = vsel %vm1201_vm3, %v2170_v40, 0.0  ;;  %1886 = vmatmul.mubr.f32.gmra.mrb[40].mxu0 %v1725_v26  ;;  %v5839_v39 = vpack.c.bf16 %v4311_v32, %v4310_v31  ;;  %v4294_v40 = vld [vmem:[%s8656_s7 + $0x380] sm:$0xff]  ;;  %v4299_v60 = vld [vmem:[%s8656_s7 + $0x3a8] sm:$0xff]  ;;  %v4301_v14 = vld [vmem:[%s8656_s7 + $0x3b8] sm:$0xff] }
 0x3d7   : > { %v7321_v46 = vadd.f32 %v2174_v43, %v2173_v24  ;;  %v7323_v47 = vadd.f32 %v2192_v44, %v2191_v25  ;;  %v2183_v49 = vsel %vm1201_vm3, %v2169_v41, 0.0  ;;  %v2201_v50 = vsel %vm1201_vm3, %v2171_v42, 0.0  ;;  %v1701_v51 = vpop.f32.mrb[24].mxu1  ;;  %5787 = vmatpush3.bf16.msra.mxu0 %v5786_v53  ;;  %1966 = vmatmul.mubr.f32.gmra.mrb[34].mxu1 %v1727_v29  ;;  %v4251_v24 = vld [vmem:[%s8653_s4 + $0x4e8] sm:$0xff]  ;;  %v4312_v42 = vld [vmem:[%s8656_s7 + $0x410] sm:$0xff]  ;;  %v4313_v43 = vld [vmem:[%s8656_s7 + $0x418] sm:$0xff] }
 0x3d8   : > { %v7327_v55 = vadd.f32 %v2183_v49, %v2182_v61  ;;  %v2202_v56 = vadd.f32 %v2201_v50, %v2200_v13  ;;  %v1702_v57 = vadd.f32 %v1701_v51, %v6937_v21  ;;  %v5274_v23 = vpop.f32.mrb[25].mxu1  ;;  %5788 = vmatprep.subr.bf16.mxu0 %v6414_v1  ;;  %5313 = vmatprep.mubr.msk.f32.mxu0 %vm6415_vm0, %v6416_v2  ;;  %v4252_v61 = vld [vmem:[%s8653_s4 + $0x4f0] sm:$0xff]  ;;  %v4253_v13 = vld [vmem:[%s8653_s4 + $0x4f8] sm:$0xff]  ;;  %v4295_v41 = vld [vmem:[%s8656_s7 + $0x388] sm:$0xff] }
 0x3d9   : > { %v5801_v35 = vpack.c.bf16 %v4253_v13, %v4252_v61  ;;  %v5843_v27 = vpack.c.bf16 %v4313_v43, %v4312_v42  ;;  %v4296_v49 = vld [vmem:[%s8656_s7 + $0x390] sm:$0xff]  ;;  %v4297_v50 = vld [vmem:[%s8656_s7 + $0x398] sm:$0xff]  ;;  %v4314_v51 = vld [vmem:[%s8656_s7 + $0x420] sm:$0xff] }
 0x3da   : > { %v1719_v63 = vmax.f32 %v1702_v57, 0.0  ;;  %v2203_v25 = vrot.slane %v2202_v56, 4  ;;  %v5845_v57 = vpack.c.bf16 %v4297_v50, %v4296_v49  ;;  %v5847_v23 = vpack.c.bf16 %v4315_v54, %v4314_v51  ;;  %v4304_v61 = vld [vmem:[%s8656_s7 + $0x3d0] sm:$0xff]  ;;  %v4305_v13 = vld [vmem:[%s8656_s7 + $0x3d8] sm:$0xff]  ;;  %v4322_v31 = vld [vmem:[%s8656_s7 + $0x460] sm:$0xff] }
 0x3db   : > { %v1706_v53 = vpop.f32.mrb[26].mxu1  ;;  %5790 = vmatpush3.bf16.msra.mxu0 %v5789_v45  ;;  %v5841_v45 = vpack.c.bf16 %v4295_v41, %v4294_v40  ;;  %v4323_v32 = vld [vmem:[%s8656_s7 + $0x468] sm:$0xff]  ;;  %v4324_v41 = vld [vmem:[%s8656_s7 + $0x470] sm:$0xff]  ;;  %v4309_v49 = vld [vmem:[%s8656_s7 + $0x3f8] sm:$0xff] }
 0x3dc   : > { %v1707_v10 = vadd.f32 %v1706_v53, %v6937_v21  ;;  %v5277_v11 = vpop.f32.mrb[27].mxu1  ;;  %5791 = vmatprep.subr.bf16.mxu0 %v6414_v1  ;;  %v2162_v17 = vmul.f32 %v6848_v58, %v1719_v63  ;;  %v5798_v58 = vpack.c.bf16 %v4251_v24, %v4250_v22  ;;  %v2204_v33 = vadd.f32 %v2203_v25, %v2202_v56  ;;  %v4303_v22 = vld [vmem:[%s8656_s7 + $0x3c8] sm:$0xff]  ;;  %v4320_v24 = vld [vmem:[%s8656_s7 + $0x450] sm:$0xff]  ;;  %v4321_v25 = vld [vmem:[%s8656_s7 + $0x458] sm:$0xff] }
 0x3dd   : > { %v4307_v40 = vld [vmem:[%s8656_s7 + $0x3e8] sm:$0xff]  ;;  %v1262_v50 = vld [vmem:[%s8656_s7 + $0x80] sm:$0xff] }
 0x3de   : > { %v1724_v15 = vmax.f32 %v1707_v10, 0.0  ;;  %v2205_v44 = vrot.slane %v2204_v33, 2  ;;  %v5849_v10 = vpack.c.bf16 %v4299_v60, %v4298_v59  ;;  %v1263_v51 = vld [vmem:[%s8656_s7 + $0x88] sm:$0xff]  ;;  %v1246_v59 = vld [vmem:[%s8656_s7] sm:$0xff] }
 0x3df   : > { %v1711_v38 = vpop.f32.mrb[28].mxu1  ;;  %5793 = vmatpush3.bf16.msra.mxu0 %v5792_v9  ;;  %v4316_v9 = vld [vmem:[%s8656_s7 + $0x430] sm:$0xff]  ;;  %v1247_v60 = vld [vmem:[%s8656_s7 + $0x8] sm:$0xff] }
 0x3e0   : > { %v2167_v18 = vmul.f32 %v6873_v8, %v1724_v15  ;;  %v1712_v19 = vadd.f32 %v1711_v38, %v6937_v21  ;;  %5794 = vmatprep.subr.bf16.mxu0 %v6414_v1  ;;  %v5280_v20 = vpop.f32.mrb[29].mxu1  ;;  %v2206_v56 = vadd.f32 %v2205_v44, %v2204_v33  ;;  %v5861_v33 = vpack.c.bf16 %v4305_v13, %v4304_v61  ;;  %v1270_v61 = vld [vmem:[%s8656_s7 + $0xc0] sm:$0xff]  ;;  %v1271_v13 = vld [vmem:[%s8656_s7 + $0xc8] sm:$0xff] }
 0x3e1   : > { %v4302_v20 = vld [vmem:[%s8656_s7 + $0x3c0] sm:$0xff] }
 0x3e2   : > { %v2209_v26 = vadd.f32 %v2167_v18, %v2162_v17  ;;  %v1729_v29 = vmax.f32 %v1712_v19, 0.0  ;;  %v2207_v53 = vrot.slane %v2206_v56, 1  ;;  %v5853_v17 = vpack.c.bf16 %v4301_v14, %v4300_v12  ;;  %v1248_v14 = vld [vmem:[%s8656_s7 + $0x10] sm:$0xff] }
 0x3e3   : > { %5796 = vmatpush3.bf16.msra.mxu0 %v5795_v16  ;;  %v4319_v16 = vld [vmem:[%s8656_s7 + $0x448] sm:$0xff]  ;;  %v2194_v18 = vrot.slane %v7323_v47, 4 }
 0x3e4   : > { %v2172_v8 = vmul.f32 %v6859_v0, %v1729_v29  ;;  %5797 = vmatprep.subr.bf16.mxu0 %v6414_v1  ;;  %v2208_v38 = vadd.f32 %v2207_v53, %v2206_v56 }
 0x3e6   : > { %v2210_v0 = vsel %vm1201_vm3, %v2172_v8, 0.0  ;;  %v5859_v8 = vpack.c.bf16 %v4321_v25, %v4320_v24  ;;  %v1268_v24 = vld [vmem:[%s8656_s7 + $0xb0] sm:$0xff]  ;;  %v1269_v25 = vld [vmem:[%s8656_s7 + $0xb8] sm:$0xff] }
 0x3e7   : > { %v7372_v34 = vadd.f32 %v2210_v0, %v2209_v26  ;;  %5799 = vmatpush3.bf16.msra.mxu0 %v5798_v58  ;;  %v1213_v26 = vrot.slane %v6959_v36, 4  ;;  %v2195_v58 = vadd.f32 %v2194_v18, %v7323_v47 }
 0x3e8   : > { %5800 = vmatprep.subr.bf16.mxu0 %v6414_v1 }
 0x3e9   : > { %v1214_v47 = vadd.f32 %v1213_v26, %v6959_v36  ;;  %v2196_v0 = vrot.slane %v2195_v58, 2  ;;  %v4325_v36 = vld [vmem:[%s8656_s7 + $0x478] sm:$0xff] }
 0x3eb   : > { %5802 = vmatpush3.bf16.msra.mxu0 %v5801_v35  ;;  %v5863_v35 = vpack.c.bf16 %v4323_v32, %v4322_v31  ;;  %v1215_v42 = vrot.slane %v1214_v47, 2  ;;  %v2197_v44 = vadd.f32 %v2196_v0, %v2195_v58  ;;  %v1252_v58 = vld [vmem:[%s8656_s7 + $0x30] sm:$0xff]  ;;  %v5915_v32 = vpack.c.bf16 %v1271_v13, %v1270_v61  ;;  %v1321_v13 = vld [vmem:[%s8656_s7 + $0x258] sm:$0xff] }
 0x3ec   : > { %5840 = vmatprep.subr.bf16.mxu0 %v5839_v39  ;;  %v4306_v39 = vld [vmem:[%s8656_s7 + $0x3e0] sm:$0xff]  ;;  %v1204_v0 = vrot.slane %v6943_v28, 4  ;;  %v1320_v61 = vld [vmem:[%s8656_s7 + $0x250] sm:$0xff] }
 0x3ed   : > { %v5865_v43 = vpack.c.bf16 %v4307_v40, %v4306_v39  ;;  %v1216_v54 = vadd.f32 %v1215_v42, %v1214_v47  ;;  %v1254_v47 = vld [vmem:[%s8656_s7 + $0x40] sm:$0xff]  ;;  %v1273_v39 = vld [vmem:[%s8656_s7 + $0xd8] sm:$0xff] }
 0x3ee   : > { %5314 = vmatmul.mubr.f32.vlgmr.msra.gmra.mrb[42].mxu0 %v1719_v63  ;;  %v4317_v63 = vld [vmem:[%s8656_s7 + $0x438] sm:$0xff] }
 0x3ef   : > { %5842 = vmatpush3.bf16.msra.mxu0 %v5841_v45  ;;  %5316 = vmatprep.mubr.msk.f32.mxu0 %vm6415_vm0, %v6416_v2  ;;  %v5851_v11 = vpack.c.bf16 %v4317_v63, %v4316_v9  ;;  %v5867_v45 = vpack.c.bf16 %v4325_v36, %v4324_v41  ;;  %v1217_v53 = vrot.slane %v1216_v54, 1  ;;  %v1264_v9 = vld [vmem:[%s8656_s7 + $0x90] sm:$0xff]  ;;  %v1265_v63 = vld [vmem:[%s8656_s7 + $0x98] sm:$0xff] }
 0x3f0   : > { %5844 = vmatprep.subr.bf16.mxu0 %v5843_v27  ;;  %v4308_v27 = vld [vmem:[%s8656_s7 + $0x3f0] sm:$0xff]  ;;  %v5903_v12 = vpack.c.bf16 %v1265_v63, %v1264_v9  ;;  %v1257_v42 = vld [vmem:[%s8656_s7 + $0x58] sm:$0xff] }
 0x3f1   : > { %v5869_v56 = vpack.c.bf16 %v4309_v49, %v4308_v27  ;;  %v1256_v36 = vld [vmem:[%s8656_s7 + $0x50] sm:$0xff] }
 0x3f2   : > { %5317 = vmatmul.mubr.f32.gmra.mrb[44].mxu0 %v1724_v15  ;;  %v4318_v15 = vld [vmem:[%s8656_s7 + $0x440] sm:$0xff]  ;;  %v5921_v27 = vpack.c.bf16 %v1257_v42, %v1256_v36  ;;  %v4254_v42 = vld [vmem:[%s8654_s5 + $0x10] sm:$0xff] }
 0x3f3   : > { %5846 = vmatpush3.bf16.msra.mxu0 %v5845_v57  ;;  %5319 = vmatprep.mubr.msk.f32.mxu0 %vm6415_vm0, %v6416_v2  ;;  %v5855_v19 = vpack.c.bf16 %v4319_v16, %v4318_v15  ;;  %v2198_v57 = vrot.slane %v2197_v44, 1  ;;  %v1218_v15 = vadd.f32 %v1217_v53, %v1216_v54  ;;  %v1266_v16 = vld [vmem:[%s8656_s7 + $0xa0] sm:$0xff]  ;;  %v1276_v54 = vld [vmem:[%s8656_s7 + $0xf0] sm:$0xff] }
 0x3f4   : > { %5848 = vmatprep.subr.bf16.mxu0 %v5847_v23  ;;  %v5899_v23 = vpack.c.bf16 %v1263_v51, %v1262_v50  ;;  %v1258_v50 = vld [vmem:[%s8656_s7 + $0x60] sm:$0xff]  ;;  %5328 = vmatprep.mubr.msk.f32.mxu1 %vm2054_vm4, %v4254_v42 }
 0x3f5   : > { %v4282_v42 = vld [vmem:[%s8656_s7 + $0x320] sm:$0xff] }
 0x3f6   : > { %5320 = vmatmul.mubr.f32.gmra.mrb[46].mxu0 %v1729_v29  ;;  %v5857_v29 = vpack.c.bf16 %v4303_v22, %v4302_v20  ;;  %v1250_v20 = vld [vmem:[%s8656_s7 + $0x20] sm:$0xff]  ;;  %v1251_v22 = vld [vmem:[%s8656_s7 + $0x28] sm:$0xff] }
 0x3f7   : > { %5850 = vmatpush3.bf16.msra.mxu0 %v5849_v10  ;;  %2433 = vmatprep.mubr.f32.mxu0 %v2208_v38  ;;  %v5901_v10 = vpack.c.bf16 %v1247_v60, %v1246_v59  ;;  %v1249_v38 = vld [vmem:[%s8656_s7 + $0x18] sm:$0xff]  ;;  %v5909_v26 = vpack.c.bf16 %v1251_v22, %v1250_v20  ;;  %v1260_v59 = vld [vmem:[%s8656_s7 + $0x70] sm:$0xff] }
 0x3f8   : > { %5852 = vmatprep.subr.bf16.mxu0 %v5851_v11  ;;  %v2199_v11 = vadd.f32 %v2198_v57, %v2197_v44  ;;  %v5905_v18 = vpack.c.bf16 %v1249_v38, %v1248_v14  ;;  %v1274_v44 = vld [vmem:[%s8656_s7 + $0xe0] sm:$0xff]  ;;  %v1261_v60 = vld [vmem:[%s8656_s7 + $0x78] sm:$0xff]  ;;  %v1312_v38 = vld [vmem:[%s8656_s7 + $0x210] sm:$0xff] }
 0x3f9   : > { %v5929_v9 = vpack.c.bf16 %v1261_v60, %v1260_v59  ;;  %v1316_v20 = vld [vmem:[%s8656_s7 + $0x230] sm:$0xff]  ;;  %v1317_v22 = vld [vmem:[%s8656_s7 + $0x238] sm:$0xff] }
 0x3fb   : > { %5854 = vmatpush3.bf16.msra.mxu0 %v5853_v17  ;;  %v1267_v17 = vld [vmem:[%s8656_s7 + $0xa8] sm:$0xff] }
 0x3fc   : > { %5856 = vmatprep.subr.bf16.mxu0 %v5855_v19  ;;  %v5907_v19 = vpack.c.bf16 %v1267_v17, %v1266_v16  ;;  %v1314_v17 = vld [vmem:[%s8656_s7 + $0x220] sm:$0xff] }
 0x3ff   : > { %5858 = vmatpush3.bf16.msra.mxu0 %v5857_v29  ;;  %v5911_v29 = vpack.c.bf16 %v1269_v25, %v1268_v24  ;;  %v5973_v24 = vpack.c.bf16 %v1317_v22, %v1316_v20  ;;  %v1240_v25 = vrot.slane %v6991_v62, 4 }
 0x400   : > { %5860 = vmatprep.subr.bf16.mxu0 %v5859_v8  ;;  %v1253_v8 = vld [vmem:[%s8656_s7 + $0x38] sm:$0xff] }
 0x401   : > { %v5913_v31 = vpack.c.bf16 %v1253_v8, %v1252_v58  ;;  %v1241_v8 = vadd.f32 %v1240_v25, %v6991_v62  ;;  %v1323_v62 = vld [vmem:[%s8656_s7 + $0x268] sm:$0xff] }
 0x403   : > { %5862 = vmatpush3.bf16.msra.mxu0 %v5861_v33  ;;  %v1255_v33 = vld [vmem:[%s8656_s7 + $0x48] sm:$0xff] }
 0x404   : > { %5864 = vmatprep.subr.bf16.mxu0 %v5863_v35  ;;  %v1272_v35 = vld [vmem:[%s8656_s7 + $0xd0] sm:$0xff]  ;;  %v5917_v40 = vpack.c.bf16 %v1255_v33, %v1254_v47  ;;  %v1322_v47 = vld [vmem:[%s8656_s7 + $0x260] sm:$0xff] }
 0x405   : > { %v5919_v41 = vpack.c.bf16 %v1273_v39, %v1272_v35  ;;  %v5982_v33 = vpack.c.bf16 %v1323_v62, %v1322_v47  ;;  %v1325_v35 = vld [vmem:[%s8656_s7 + $0x278] sm:$0xff]  ;;  %v4280_v47 = vld [vmem:[%s8656_s7 + $0x310] sm:$0xff] }
 0x406   : > { %v4281_v62 = vld [vmem:[%s8656_s7 + $0x318] sm:$0xff] }
 0x407   : > { %5866 = vmatpush3.bf16.msra.mxu0 %v5865_v43  ;;  %v1205_v43 = vadd.f32 %v1204_v0, %v6943_v28  ;;  %v1259_v28 = vld [vmem:[%s8656_s7 + $0x68] sm:$0xff]  ;;  %v1324_v0 = vld [vmem:[%s8656_s7 + $0x270] sm:$0xff] }
 0x408   : > { %5868 = vmatprep.subr.bf16.mxu0 %v5867_v45  ;;  %v1275_v45 = vld [vmem:[%s8656_s7 + $0xe8] sm:$0xff]  ;;  %v5925_v57 = vpack.c.bf16 %v1259_v28, %v1258_v50 }
 0x409   : > { %v5923_v49 = vpack.c.bf16 %v1275_v45, %v1274_v44  ;;  %v1206_v51 = vrot.slane %v1205_v43, 2 }
 0x40b   : > { %5870 = vmatpush3.bf16.msra.mxu0 %v5869_v56  ;;  %v1277_v56 = vld [vmem:[%s8656_s7 + $0xf8] sm:$0xff]  ;;  %v1207_v53 = vadd.f32 %v1206_v51, %v1205_v43 }
 0x40c   : > { %5900 = vmatprep.subr.bf16.mxu0 %v5899_v23  ;;  %v5927_v23 = vpack.c.bf16 %v1277_v56, %v1276_v54 }
 0x40d   : > { %v1208_v63 = vrot.slane %v1207_v53, 1 }
 0x40e   : > { %2434 = vmatmul.mubr.f32.vlgmr.msra.gmra.mrb[48].mxu0 %v2199_v11  ;;  %v1311_v11 = vld [vmem:[%s8656_s7 + $0x208] sm:$0xff] }
 0x40f   : > { %5902 = vmatpush3.bf16.msra.mxu0 %v5901_v10  ;;  %2657 = vmatprep.mubr.f32.mxu0 %v1218_v15  ;;  %v1310_v10 = vld [vmem:[%s8656_s7 + $0x200] sm:$0xff]  ;;  %v1209_v14 = vadd.f32 %v1208_v63, %v1207_v53  ;;  %v1313_v15 = vld [vmem:[%s8656_s7 + $0x218] sm:$0xff] }
 0x410   : > { %5904 = vmatprep.subr.bf16.mxu0 %v5903_v12  ;;  %v5964_v12 = vpack.c.bf16 %v1311_v11, %v1310_v10  ;;  %v5967_v16 = vpack.c.bf16 %v1313_v15, %v1312_v38  ;;  %v2185_v38 = vrot.slane %v7327_v55, 4 }
 0x412   : > { %v2186_v15 = vadd.f32 %v2185_v38, %v7327_v55 }
 0x413   : > { %5906 = vmatpush3.bf16.msra.mxu0 %v5905_v18  ;;  %v1315_v18 = vld [vmem:[%s8656_s7 + $0x228] sm:$0xff] }
 0x414   : > { %5908 = vmatprep.subr.bf16.mxu0 %v5907_v19  ;;  %v5970_v19 = vpack.c.bf16 %v1315_v18, %v1314_v17 }
 0x417   : > { %5910 = vmatpush3.bf16.msra.mxu0 %v5909_v26  ;;  %v1318_v26 = vld [vmem:[%s8656_s7 + $0x240] sm:$0xff] }
 0x418   : > { %5912 = vmatprep.subr.bf16.mxu0 %v5911_v29  ;;  %v1319_v29 = vld [vmem:[%s8656_s7 + $0x248] sm:$0xff] }
 0x419   : > { %v5976_v58 = vpack.c.bf16 %v1319_v29, %v1318_v26 }
 0x41b   : > { %5914 = vmatpush3.bf16.msra.mxu0 %v5913_v31  ;;  %v5979_v31 = vpack.c.bf16 %v1321_v13, %v1320_v61  ;;  %v4262_v13 = vld [vmem:[%s8656_s7 + $0x280] sm:$0xff] }
 0x41c   : > { %5916 = vmatprep.subr.bf16.mxu0 %v5915_v32  ;;  %v1242_v32 = vrot.slane %v1241_v8, 2 }
 0x41e   : > { %v1243_v39 = vadd.f32 %v1242_v32, %v1241_v8  ;;  %v4279_v8 = vld [vmem:[%s8656_s7 + $0x308] sm:$0xff] }
 0x41f   : > { %5918 = vmatpush3.bf16.msra.mxu0 %v5917_v40  ;;  %v5985_v40 = vpack.c.bf16 %v1325_v35, %v1324_v0  ;;  %v4255_v0 = vld [vmem:[%s8654_s5 + $0x18] sm:$0xff] }
 0x420   : > { %5920 = vmatprep.subr.bf16.mxu0 %v5919_v41  ;;  %v1244_v41 = vrot.slane %v1243_v39, 1 }
 0x422   : > { %v1245_v36 = vadd.f32 %v1244_v41, %v1243_v39  ;;  %v5811_v39 = vpack.c.bf16 %v4281_v62, %v4280_v47  ;;  %v4265_v41 = vld [vmem:[%s8656_s7 + $0x298] sm:$0xff] }
 0x423   : > { %5922 = vmatpush3.bf16.msra.mxu0 %v5921_v27 }
 0x424   : > { %5924 = vmatprep.subr.bf16.mxu0 %v5923_v49 }
 0x427   : > { %5926 = vmatpush3.bf16.msra.mxu0 %v5925_v57 }
 0x428   : > { %5928 = vmatprep.subr.bf16.mxu0 %v5927_v23 }
 0x42b   : > { %5930 = vmatpush3.bf16.msra.mxu0 %v5929_v9 }
 0x42c   : > { %5963 = vmatprep.subr.bf16.mxu0 %v6414_v1 }
 0x42e   : > { %2658 = vmatmul.mubr.f32.vlgmr.msra.gmra.mrb[50].mxu0 %v1209_v14 }
 0x42f   : > { %5965 = vmatpush3.bf16.msra.mxu0 %v5964_v12  ;;  %5407 = vmatprep.mubr.msk.f32.mxu0 %vm6415_vm0, %v6416_v2 }
 0x430   : > { %5966 = vmatprep.subr.bf16.mxu0 %v6414_v1 }
 0x433   : > { %5968 = vmatpush3.bf16.msra.mxu0 %v5967_v16 }
 0x434   : > { %5969 = vmatprep.subr.bf16.mxu0 %v6414_v1 }
 0x437   : > { %5971 = vmatpush3.bf16.msra.mxu0 %v5970_v19  ;;  %v2187_v19 = vrot.slane %v2186_v15, 2 }
 0x438   : > { %5972 = vmatprep.subr.bf16.mxu0 %v6414_v1 }
 0x439   : > { %v2188_v25 = vadd.f32 %v2187_v19, %v2186_v15  ;;  %v4291_v19 = vld [vmem:[%s8656_s7 + $0x368] sm:$0xff] }
 0x43b   : > { %5974 = vmatpush3.bf16.msra.mxu0 %v5973_v24  ;;  %v2189_v32 = vrot.slane %v2188_v25, 1 }
 0x43c   : > { %5975 = vmatprep.subr.bf16.mxu0 %v6414_v1 }
 0x43f   : > { %5977 = vmatpush3.bf16.msra.mxu0 %v5976_v58  ;;  %v4278_v58 = vld [vmem:[%s8656_s7 + $0x300] sm:$0xff] }
 0x440   : > { %5978 = vmatprep.subr.bf16.mxu0 %v6414_v1 }
 0x443   : > { %5980 = vmatpush3.bf16.msra.mxu0 %v5979_v31  ;;  %v4263_v31 = vld [vmem:[%s8656_s7 + $0x288] sm:$0xff] }
 0x444   : > { %5981 = vmatprep.subr.bf16.mxu0 %v6414_v1  ;;  %v5809_v35 = vpack.c.bf16 %v4263_v31, %v4262_v13  ;;  %v4276_v31 = vld [vmem:[%s8656_s7 + $0x2f0] sm:$0xff] }
 0x447   : > { %5983 = vmatpush3.bf16.msra.mxu0 %v5982_v33  ;;  %v5807_v33 = vpack.c.bf16 %v4279_v8, %v4278_v58  ;;  %v4292_v8 = vld [vmem:[%s8656_s7 + $0x370] sm:$0xff] }
 0x448   : > { %5984 = vmatprep.subr.bf16.mxu0 %v6414_v1 }
 0x44b   : > { %5986 = vmatpush3.bf16.msra.mxu0 %v5985_v40  ;;  %v4264_v40 = vld [vmem:[%s8656_s7 + $0x290] sm:$0xff] }
 0x44e   : > { %5408 = vmatmul.mubr.f32.vlgmr.msra.gmra.mrb[52].mxu0 %v1245_v36  ;;  %v2190_v36 = vadd.f32 %v2189_v32, %v2188_v25  ;;  %v4277_v32 = vld [vmem:[%s8656_s7 + $0x2f8] sm:$0xff] }
 0x44f   : > { %3093 = vmatprep.mubr.f32.mxu0 %v6416_v2  ;;  %v5837_v62 = vpack.c.bf16 %v4277_v32, %v4276_v31  ;;  %v1166_v31 = vld [vmem:[%s8654_s5 + $0x8] sm:$0xff] }
 0x4a1   : > { %v4702_v43 = vpop.f32.mrb[36].mxu0  ;;  %v4743_v44 = vpop.f32.mrb[30].mxu1 }
 0x4a2   : > { %v4703_v45 = vpop.f32.mrb[37].mxu0  ;;  %v4744_v49 = vpop.f32.mrb[31].mxu1 }
 0x4a3   : > { %v4704_v27 = vadd.f32 %v4703_v45, %v4702_v43  ;;  %v4745_v50 = vadd.f32 %v4744_v49, %v4743_v44  ;;  %v4283_v43 = vld [vmem:[%s8656_s7 + $0x328] sm:$0xff]  ;;  %v5813_v44 = vpack.c.bf16 %v4265_v41, %v4264_v40  ;;  %v4328_v41 = vld [vmem:[%s8656_s7 + $0x490] sm:$0xff] }
 0x4a4   : > { %v5815_v45 = vpack.c.bf16 %v4283_v43, %v4282_v42  ;;  %v4267_v49 = vld [vmem:[%s8656_s7 + $0x2a8] sm:$0xff]  ;;  %v4330_v43 = vld [vmem:[%s8656_s7 + $0x4a0] sm:$0xff] }
 0x4a5   : > { %v4705_v28 = vpop.f32.mrb[38].mxu0  ;;  %v1958_v56 = vadd.f32 %v4745_v50, %v4704_v27  ;;  %v4266_v27 = vld [vmem:[%s8656_s7 + $0x2a0] sm:$0xff]  ;;  %v4284_v50 = vld [vmem:[%s8656_s7 + $0x330] sm:$0xff] }
 0x4a6   : > { %v4746_v51 = vpop.f32.mrb[32].mxu1  ;;  %v4706_v54 = vpop.f32.mrb[39].mxu0 }
 0x4a7   : > { %v4707_v57 = vadd.f32 %v4706_v54, %v4705_v28  ;;  %v4747_v23 = vpop.f32.mrb[33].mxu1  ;;  %v4285_v28 = vld [vmem:[%s8656_s7 + $0x338] sm:$0xff] }
 0x4a8   : > { %v4748_v59 = vadd.f32 %v4747_v23, %v4746_v51  ;;  %v5817_v51 = vpack.c.bf16 %v4267_v49, %v4266_v27  ;;  %v5819_v54 = vpack.c.bf16 %v4285_v28, %v4284_v50  ;;  %v4286_v23 = vld [vmem:[%s8656_s7 + $0x340] sm:$0xff]  ;;  %v4332_v27 = vld [vmem:[%s8656_s7 + $0x4b0] sm:$0xff]  ;;  %v4333_v49 = vld [vmem:[%s8656_s7 + $0x4b8] sm:$0xff]  ;;  %v2212_v28 = vrot.slane %v7372_v34, 4 }
 0x4a9   : > { %v4708_v60 = vpop.f32.mrb[40].mxu0  ;;  %v5881_v50 = vpack.c.bf16 %v4333_v49, %v4332_v27  ;;  %v1285_v27 = vld [vmem:[%s8656_s7 + $0x138] sm:$0xff]  ;;  %v1302_v49 = vld [vmem:[%s8656_s7 + $0x1c0] sm:$0xff] }
 0x4aa   : > { %v4749_v53 = vpop.f32.mrb[34].mxu1  ;;  %v4709_v9 = vpop.f32.mrb[41].mxu0  ;;  %v1963_v63 = vadd.f32 %v4748_v59, %v4707_v57  ;;  %v4269_v57 = vld [vmem:[%s8656_s7 + $0x2b8] sm:$0xff]  ;;  %v4287_v59 = vld [vmem:[%s8656_s7 + $0x348] sm:$0xff] }
 0x4ab   : > { %v4710_v10 = vadd.f32 %v4709_v9, %v4708_v60  ;;  %v4750_v11 = vpop.f32.mrb[35].mxu1  ;;  %v5823_v9 = vpack.c.bf16 %v4287_v59, %v4286_v23  ;;  %v4336_v23 = vld [vmem:[%s8656_s7 + $0x4d0] sm:$0xff]  ;;  %v4337_v59 = vld [vmem:[%s8656_s7 + $0x4d8] sm:$0xff] }
 0x4ac   : > { %v4751_v12 = vadd.f32 %v4750_v11, %v4749_v53  ;;  %v2176_v53 = vrot.slane %v7321_v46, 4  ;;  %v4288_v11 = vld [vmem:[%s8656_s7 + $0x350] sm:$0xff] }
 0x4ae   : > { %v1968_v14 = vadd.f32 %v4751_v12, %v4710_v10  ;;  %v4271_v10 = vld [vmem:[%s8656_s7 + $0x2c8] sm:$0xff]  ;;  %v4289_v12 = vld [vmem:[%s8656_s7 + $0x358] sm:$0xff]  ;;  %v2177_v38 = vadd.f32 %v2176_v53, %v7321_v46  ;;  %v5887_v53 = vpack.c.bf16 %v4337_v59, %v4336_v23  ;;  %v1304_v59 = vld [vmem:[%s8656_s7 + $0x1d0] sm:$0xff] }
 0x4af   : > { %v5827_v15 = vpack.c.bf16 %v4289_v12, %v4288_v11  ;;  %v4339_v11 = vld [vmem:[%s8656_s7 + $0x4e8] sm:$0xff] }
 0x4c1   : > { %v2037_v16 = vpop.f32.mrb[42].mxu0 }
 0x4c2   : > { %v2038_v17 = vadd.f32 %v2037_v16, %v1958_v56  ;;  %v5315_v18 = vpop.f32.mrb[43].mxu0  ;;  %v4268_v56 = vld [vmem:[%s8656_s7 + $0x2b0] sm:$0xff] }
 0x4c3   : > { %v5821_v60 = vpack.c.bf16 %v4269_v57, %v4268_v56  ;;  %v4272_v16 = vld [vmem:[%s8656_s7 + $0x2d0] sm:$0xff]  ;;  %v4290_v18 = vld [vmem:[%s8656_s7 + $0x360] sm:$0xff]  ;;  %v2213_v57 = vadd.f32 %v2212_v28, %v7372_v34 }
 0x4c4   : > { %v5831_v25 = vpack.c.bf16 %v4291_v19, %v4290_v18  ;;  %v4338_v34 = vld [vmem:[%s8656_s7 + $0x4e0] sm:$0xff] }
 0x4c5   : > { %v2042_v20 = vpop.f32.mrb[44].mxu0 }
 0x4c6   : > { %v2043_v22 = vadd.f32 %v2042_v20, %v1963_v63  ;;  %v5318_v24 = vpop.f32.mrb[45].mxu0  ;;  %v4270_v63 = vld [vmem:[%s8656_s7 + $0x2c0] sm:$0xff] }
 0x4c8   : > { %v5803_v26 = vpack.c.bf16 %v2043_v22, %v2038_v17  ;;  %v4273_v17 = vld [vmem:[%s8656_s7 + $0x2d8] sm:$0xff]  ;;  %v2178_v22 = vrot.slane %v2177_v38, 2 }
 0x4c9   : > { %v2047_v29 = vpop.f32.mrb[46].mxu0  ;;  %v5829_v20 = vpack.c.bf16 %v4273_v17, %v4272_v16  ;;  %v4341_v16 = vld [vmem:[%s8656_s7 + $0x4f8] sm:$0xff] }
 0x4ca   : > { %v2048_v61 = vadd.f32 %v2047_v29, %v1968_v14  ;;  %v5321_v55 = vpop.f32.mrb[47].mxu0  ;;  %5804 = vmatprep.subr.bf16.mxu1 %v5803_v26  ;;  %v5825_v14 = vpack.c.bf16 %v4271_v10, %v4270_v63  ;;  %v4275_v29 = vld [vmem:[%s8656_s7 + $0x2e8] sm:$0xff]  ;;  %v2179_v47 = vadd.f32 %v2178_v22, %v2177_v38  ;;  %v2214_v63 = vrot.slane %v2213_v57, 2  ;;  %v1165_v22 = vld [vmem:[%s8654_s5] sm:$0xff] }
 0x4cb   : > { %5806 = vmatpush3.bf16.msra.mxu1 %v5803_v26  ;;  %v4274_v26 = vld [vmem:[%s8656_s7 + $0x2e0] sm:$0xff] }
 0x4cc   : > { %5326 = vmatprep.subr.msk.mxu1 %vm1201_vm3, %v2048_v61  ;;  %v5833_v55 = vpack.c.bf16 %v4275_v29, %v4274_v26  ;;  %v2215_v17 = vadd.f32 %v2214_v63, %v2213_v57  ;;  %v1278_v26 = vld [vmem:[%s8656_s7 + $0x100] sm:$0xff]  ;;  %v1279_v29 = vld [vmem:[%s8656_s7 + $0x108] sm:$0xff]  ;;  %v1222_v57 = vrot.slane %v6946_v30, 4 }
 0x4cf   : > { %5327 = vmatpush3.msk.msra.mxu1 %vm1201_vm3, %v2048_v61  ;;  %v4293_v61 = vld [vmem:[%s8656_s7 + $0x378] sm:$0xff] }
 0x4d0   : > { %5329 = vmatmul.mubr.msk.f32.vlgmr.msra.gmra.mrb[36].mxu1 %vm2054_vm4, %v4255_v0  ;;  %5808 = vmatprep.subr.bf16.mxu1 %v5807_v33  ;;  %v5835_v13 = vpack.c.bf16 %v4293_v61, %v4292_v8  ;;  %v2180_v33 = vrot.slane %v2179_v47, 1  ;;  %v4326_v0 = vld [vmem:[%s8656_s7 + $0x480] sm:$0xff]  ;;  %v1296_v61 = vld [vmem:[%s8656_s7 + $0x190] sm:$0xff] }
 0x4d1   : > { %5810 = vmatpush3.bf16.msra.mxu1 %v5809_v35  ;;  %2363 = vmatprep.mubr.f32.mxu1 %v2190_v36  ;;  %v4327_v35 = vld [vmem:[%s8656_s7 + $0x488] sm:$0xff]  ;;  %v4329_v36 = vld [vmem:[%s8656_s7 + $0x498] sm:$0xff] }
 0x4d2   : > { %5812 = vmatprep.subr.bf16.mxu1 %v5811_v39  ;;  %v5872_v39 = vpack.c.bf16 %v4327_v35, %v4326_v0  ;;  %v2181_v40 = vadd.f32 %v2180_v33, %v2179_v47  ;;  %v5875_v42 = vpack.c.bf16 %v4329_v36, %v4328_v41  ;;  %v1280_v47 = vld [vmem:[%s8656_s7 + $0x110] sm:$0xff]  ;;  %v1298_v0 = vld [vmem:[%s8656_s7 + $0x1a0] sm:$0xff]  ;;  %v1299_v35 = vld [vmem:[%s8656_s7 + $0x1a8] sm:$0xff] }
 0x4d3   : > { %v1283_v41 = vld [vmem:[%s8656_s7 + $0x128] sm:$0xff]  ;;  %v1300_v36 = vld [vmem:[%s8656_s7 + $0x1b0] sm:$0xff] }
 0x4d5   : > { %5814 = vmatpush3.bf16.msra.mxu1 %v5813_v44  ;;  %v4331_v44 = vld [vmem:[%s8656_s7 + $0x4a8] sm:$0xff] }
 0x4d6   : > { %5816 = vmatprep.subr.bf16.mxu1 %v5815_v45  ;;  %v5878_v45 = vpack.c.bf16 %v4331_v44, %v4330_v43 }
 0x4d9   : > { %5818 = vmatpush3.bf16.msra.mxu1 %v5817_v51  ;;  %v4334_v51 = vld [vmem:[%s8656_s7 + $0x4c0] sm:$0xff] }
 0x4da   : > { %5820 = vmatprep.subr.bf16.mxu1 %v5819_v54  ;;  %v4335_v54 = vld [vmem:[%s8656_s7 + $0x4c8] sm:$0xff] }
 0x4db   : > { %v5884_v56 = vpack.c.bf16 %v4335_v54, %v4334_v51  ;;  %v1286_v54 = vld [vmem:[%s8656_s7 + $0x140] sm:$0xff] }
 0x4dd   : > { %5822 = vmatpush3.bf16.msra.mxu1 %v5821_v60 }
 0x4de   : > { %5824 = vmatprep.subr.bf16.mxu1 %v5823_v9  ;;  %v1231_v9 = vrot.slane %v6961_v37, 4 }
 0x4e0   : > { %v1232_v38 = vadd.f32 %v1231_v9, %v6961_v37 }
 0x4e1   : > { %5826 = vmatpush3.bf16.msra.mxu1 %v5825_v14  ;;  %v4843_v46 = vpop.f32.mrb[48].mxu0  ;;  %v5890_v14 = vpack.c.bf16 %v4339_v11, %v4338_v34  ;;  %v1289_v34 = vld [vmem:[%s8656_s7 + $0x158] sm:$0xff]  ;;  %v1223_v11 = vadd.f32 %v1222_v57, %v6946_v30  ;;  %v1291_v30 = vld [vmem:[%s8656_s7 + $0x168] sm:$0xff] }
 0x4e2   : > { %v4844_v24 = vpop.f32.mrb[49].mxu0  ;;  %5828 = vmatprep.subr.bf16.mxu1 %v5827_v15  ;;  %v4340_v15 = vld [vmem:[%s8656_s7 + $0x4f0] sm:$0xff]  ;;  %v1233_v19 = vrot.slane %v1232_v38, 2 }
 0x4e3   : > { %v7730_v58 = vadd.f32 %v4844_v24, %v4843_v46  ;;  %v5893_v18 = vpack.c.bf16 %v4341_v16, %v4340_v15  ;;  %v2216_v46 = vrot.slane %v2215_v17, 1  ;;  %v1294_v24 = vld [vmem:[%s8656_s7 + $0x180] sm:$0xff] }
 0x4e5   : > { %5830 = vmatpush3.bf16.msra.mxu1 %v5829_v20  ;;  %v1234_v20 = vadd.f32 %v1233_v19, %v1232_v38  ;;  %v2217_v37 = vadd.f32 %v2216_v46, %v2215_v17  ;;  %v1307_v38 = vld [vmem:[%s8656_s7 + $0x1e8] sm:$0xff]  ;;  %v1290_v17 = vld [vmem:[%s8656_s7 + $0x160] sm:$0xff]  ;;  %v1308_v19 = vld [vmem:[%s8656_s7 + $0x1f0] sm:$0xff] }
 0x4e6   : > { %5832 = vmatprep.subr.bf16.mxu1 %v5831_v25  ;;  %v1295_v25 = vld [vmem:[%s8656_s7 + $0x188] sm:$0xff]  ;;  %v1309_v46 = vld [vmem:[%s8656_s7 + $0x1f8] sm:$0xff] }
 0x4e7   : > { %v1235_v8 = vrot.slane %v1234_v20, 1 }
 0x4e9   : > { %5834 = vmatpush3.bf16.msra.mxu1 %v5833_v55  ;;  %v1297_v55 = vld [vmem:[%s8656_s7 + $0x198] sm:$0xff]  ;;  %v1236_v33 = vadd.f32 %v1235_v8, %v1234_v20  ;;  %v5957_v20 = vpack.c.bf16 %v1291_v30, %v1290_v17 }
 0x4ea   : > { %5836 = vmatprep.subr.bf16.mxu1 %v5835_v13  ;;  %v5931_v13 = vpack.c.bf16 %v1295_v25, %v1294_v24  ;;  %v5935_v32 = vpack.c.bf16 %v1297_v55, %v1296_v61  ;;  %v1293_v24 = vld [vmem:[%s8656_s7 + $0x178] sm:$0xff]  ;;  %v4345_v61 = vld [vmem:[%s8650_s1 + $0x30] sm:$0xff] }
 0x4eb   : > { %v4346_v55 = vld [vmem:[%s8650_s1 + $0x38] sm:$0xff] }
 0x4ec   : > { %v2927_v30 = vld [vmem:[#allocation3 + $0x370] sm:$0xff] }
 0x4ed   : > { %5838 = vmatpush3.bf16.msra.mxu1 %v5837_v62  ;;  %v1281_v62 = vld [vmem:[%s8656_s7 + $0x118] sm:$0xff] }
 0x4ee   : > { %5871 = vmatprep.subr.bf16.mxu1 %v6414_v1 }
 0x4f0   : > { %2364 = vmatmul.mubr.f32.vlgmr.msra.gmra.mrb[38].mxu1 %v2181_v40  ;;  %v5939_v40 = vpack.c.bf16 %v1299_v35, %v1298_v0 }
 0x4f1   : > { %5873 = vmatpush3.bf16.msra.mxu1 %v5872_v39  ;;  %5363 = vmatprep.mubr.msk.f32.mxu1 %vm6415_vm0, %v6416_v2  ;;  %v5937_v39 = vpack.c.bf16 %v1281_v62, %v1280_v47  ;;  %v2902_v47 = vld [vmem:[#allocation3 + $0x2a8] sm:$0xff]  ;;  %v2900_v62 = vld [vmem:[#allocation3 + $0x298] sm:$0xff] }
 0x4f2   : > { %5874 = vmatprep.subr.bf16.mxu1 %v6414_v1 }
 0x4f5   : > { %5876 = vmatpush3.bf16.msra.mxu1 %v5875_v42  ;;  %v1301_v42 = vld [vmem:[%s8656_s7 + $0x1b8] sm:$0xff] }
 0x4f6   : > { %5877 = vmatprep.subr.bf16.mxu1 %v6414_v1  ;;  %v5943_v44 = vpack.c.bf16 %v1301_v42, %v1300_v36  ;;  %v2913_v36 = vld [vmem:[#allocation3 + $0x300] sm:$0xff]  ;;  %v2907_v42 = vld [vmem:[#allocation3 + $0x2d0] sm:$0xff] }
 0x4f9   : > { %5879 = vmatpush3.bf16.msra.mxu1 %v5878_v45  ;;  %v1284_v45 = vld [vmem:[%s8656_s7 + $0x130] sm:$0xff] }
 0x4fa   : > { %5880 = vmatprep.subr.bf16.mxu1 %v6414_v1  ;;  %v5945_v28 = vpack.c.bf16 %v1285_v27, %v1284_v45  ;;  %v2910_v27 = vld [vmem:[#allocation3 + $0x2e8] sm:$0xff] }
 0x4fd   : > { %5882 = vmatpush3.bf16.msra.mxu1 %v5881_v50  ;;  %v1303_v50 = vld [vmem:[%s8656_s7 + $0x1c8] sm:$0xff] }
 0x4fe   : > { %5883 = vmatprep.subr.bf16.mxu1 %v6414_v1  ;;  %v5947_v51 = vpack.c.bf16 %v1303_v50, %v1302_v49  ;;  %v2915_v49 = vld [vmem:[#allocation3 + $0x310] sm:$0xff]  ;;  %v2909_v50 = vld [vmem:[#allocation3 + $0x2e0] sm:$0xff] }
 0x501   : > { %5885 = vmatpush3.bf16.msra.mxu1 %v5884_v56  ;;  %v4900_v60 = vpop.f32.mrb[50].mxu0  ;;  %v1287_v56 = vld [vmem:[%s8656_s7 + $0x148] sm:$0xff] }
 0x502   : > { %v4901_v10 = vpop.f32.mrb[51].mxu0  ;;  %5886 = vmatprep.subr.bf16.mxu1 %v6414_v1  ;;  %v5949_v9 = vpack.c.bf16 %v1287_v56, %v1286_v54  ;;  %v2918_v54 = vld [vmem:[#allocation3 + $0x328] sm:$0xff]  ;;  %v2923_v56 = vld [vmem:[#allocation3 + $0x350] sm:$0xff] }
 0x503   : > { %v7797_v12 = vadd.f32 %v4901_v10, %v4900_v60  ;;  %v1305_v60 = vld [vmem:[%s8656_s7 + $0x1d8] sm:$0xff]  ;;  %v1288_v10 = vld [vmem:[%s8656_s7 + $0x150] sm:$0xff] }
 0x504   : > { %v5951_v63 = vpack.c.bf16 %v1305_v60, %v1304_v59  ;;  %v5953_v15 = vpack.c.bf16 %v1289_v34, %v1288_v10  ;;  %v5998_v59 = vpack.c.bf16 %v2923_v56, %v2918_v54  ;;  %v2917_v60 = vld [vmem:[#allocation3 + $0x320] sm:$0xff]  ;;  %v2919_v10 = vld [vmem:[#allocation3 + $0x330] sm:$0xff]  ;;  %v2924_v34 = vld [vmem:[#allocation3 + $0x358] sm:$0xff] }
 0x505   : > { %5888 = vmatpush3.bf16.msra.mxu1 %v5887_v53 }
 0x506   : > { %5889 = vmatprep.subr.bf16.mxu1 %v6414_v1 }
 0x509   : > { %5891 = vmatpush3.bf16.msra.mxu1 %v5890_v14  ;;  %v1306_v14 = vld [vmem:[%s8656_s7 + $0x1e0] sm:$0xff] }
 0x50a   : > { %5892 = vmatprep.subr.bf16.mxu1 %v6414_v1  ;;  %v5955_v16 = vpack.c.bf16 %v1307_v38, %v1306_v14  ;;  %v6016_v38 = vpack.c.bf16 %v2924_v34, %v2919_v10  ;;  %v2936_v10 = vld [vmem:[#allocation3 + $0x3b8] sm:$0xff] }
 0x50b   : > { %v4408_v34 = vld [vmem:[%s8653_s4 + $0x680] sm:$0xff] }
 0x50d   : > { %5894 = vmatpush3.bf16.msra.mxu1 %v5893_v18  ;;  %v1224_v18 = vrot.slane %v1223_v11, 2 }
 0x50e   : > { %5896 = vmatprep.subr.bf16.mxu1 %v7026_v48 }
 0x50f   : > { %v1225_v25 = vadd.f32 %v1224_v18, %v1223_v11  ;;  %v2932_v18 = vld [vmem:[#allocation3 + $0x398] sm:$0xff] }
 0x510   : > { %5364 = vmatmul.mubr.f32.vlgmr.msra.gmra.mrb[40].mxu1 %v2217_v37  ;;  %v5959_v37 = vpack.c.bf16 %v1309_v46, %v1308_v19  ;;  %v2930_v19 = vld [vmem:[#allocation3 + $0x388] sm:$0xff]  ;;  %v6004_v46 = vpack.c.bf16 %v2932_v18, %v2927_v30 }
 0x511   : > { %5898 = vmatpush3.bf16.msra.mxu1 %v7026_v48  ;;  %5372 = vmatprep.mubr.msk.f32.mxu1 %vm2054_vm4, %v1165_v22  ;;  %v5933_v48 = vpack.c.bf16 %v1279_v29, %v1278_v26  ;;  %v1292_v22 = vld [vmem:[%s8656_s7 + $0x170] sm:$0xff]  ;;  %v1226_v29 = vrot.slane %v1225_v25, 1 }
 0x512   : > { %5370 = vmatprep.subr.msk.mxu1 %vm1201_vm3, %v7028_v52  ;;  %v5961_v26 = vpack.c.bf16 %v1293_v24, %v1292_v22  ;;  %v2934_v22 = vld [vmem:[#allocation3 + $0x3a8] sm:$0xff] }
 0x513   : > { %v1227_v8 = vadd.f32 %v1226_v29, %v1225_v25  ;;  %v4377_v29 = vld [vmem:[%s8653_s4 + $0x588] sm:$0xff]  ;;  %v4382_v18 = vld [vmem:[%s8653_s4 + $0x5b0] sm:$0xff] }
 0x515   : > { %5371 = vmatpush3.msk.msra.mxu1 %vm1201_vm3, %v7028_v52  ;;  %v1282_v52 = vld [vmem:[%s8656_s7 + $0x120] sm:$0xff] }
 0x516   : > { %5373 = vmatmul.mubr.msk.f32.vlgmr.msra.gmra.mrb[36].mxu1 %vm2054_vm4, %v1166_v31  ;;  %5932 = vmatprep.subr.bf16.mxu1 %v5931_v13  ;;  %v5941_v43 = vpack.c.bf16 %v1283_v41, %v1282_v52  ;;  %v2898_v13 = vld [vmem:[#allocation3 + $0x288] sm:$0xff]  ;;  %v2903_v31 = vld [vmem:[#allocation3 + $0x2b0] sm:$0xff]  ;;  %v2908_v52 = vld [vmem:[#allocation3 + $0x2d8] sm:$0xff] }
 0x517   : > { %5934 = vmatpush3.bf16.msra.mxu1 %v5933_v48  ;;  %2727 = vmatprep.mubr.f32.mxu1 %v1236_v33  ;;  %v2897_v48 = vld [vmem:[#allocation3 + $0x280] sm:$0xff] }
 0x518   : > { %5936 = vmatprep.subr.bf16.mxu1 %v5935_v32  ;;  %v5990_v32 = vpack.c.bf16 %v2903_v31, %v2898_v13  ;;  %v2905_v33 = vld [vmem:[#allocation3 + $0x2c0] sm:$0xff]  ;;  %v5992_v0 = vpack.c.bf16 %v2902_v47, %v2897_v48 }
 0x519   : > { %v6006_v35 = vpack.c.bf16 %v2905_v33, %v2900_v62  ;;  %v2901_v62 = vld [vmem:[#allocation3 + $0x2a0] sm:$0xff]  ;;  %v2906_v33 = vld [vmem:[#allocation3 + $0x2c8] sm:$0xff] }
 0x51b   : > { %5938 = vmatpush3.bf16.msra.mxu1 %v5937_v39  ;;  %v2899_v39 = vld [vmem:[#allocation3 + $0x290] sm:$0xff]  ;;  %6007 = vmatprep.subr.bf16.mxu0 %v6006_v35 }
 0x51c   : > { %5940 = vmatprep.subr.bf16.mxu1 %v5939_v40  ;;  %v2904_v40 = vld [vmem:[#allocation3 + $0x2b8] sm:$0xff] }
 0x51d   : > { %v6008_v41 = vpack.c.bf16 %v2904_v40, %v2899_v39  ;;  %v4360_v39 = vld [vmem:[%s8653_s4 + $0x500] sm:$0xff]  ;;  %v4361_v40 = vld [vmem:[%s8653_s4 + $0x508] sm:$0xff] }
 0x51f   : > { %5942 = vmatpush3.bf16.msra.mxu1 %v5941_v43  ;;  %v2912_v43 = vld [vmem:[#allocation3 + $0x2f8] sm:$0xff]  ;;  %6009 = vmatpush1.bf16.msra.mxu0 %v6008_v41  ;;  %v6023_v41 = vpack.c.bf16 %v2906_v33, %v2901_v62  ;;  %v4413_v33 = vld [vmem:[%s8653_s4 + $0x6a8] sm:$0xff] }
 0x520   : > { %5944 = vmatprep.subr.bf16.mxu1 %v5943_v44  ;;  %v5994_v44 = vpack.c.bf16 %v2913_v36, %v2908_v52  ;;  %v5996_v45 = vpack.c.bf16 %v2912_v43, %v2907_v42  ;;  %v2916_v36 = vld [vmem:[#allocation3 + $0x318] sm:$0xff] }
 0x521   : > { %v7883_v23 = vpop.f32.mrb[52].mxu0 }
 0x522   : > { %v5409_v53 = vpop.f32.mrb[53].mxu0 }
 0x523   : > { %5946 = vmatpush3.bf16.msra.mxu1 %v5945_v28  ;;  %v6010_v28 = vpack.c.bf16 %v2915_v49, %v2910_v27  ;;  %v2922_v53 = vld [vmem:[#allocation3 + $0x348] sm:$0xff]  ;;  %v4379_v27 = vld [vmem:[%s8653_s4 + $0x598] sm:$0xff] }
 0x524   : > { %5948 = vmatprep.subr.bf16.mxu1 %v5947_v51  ;;  %v2914_v51 = vld [vmem:[#allocation3 + $0x308] sm:$0xff]  ;;  %v6000_v11 = vpack.c.bf16 %v2922_v53, %v2917_v60  ;;  %v4380_v60 = vld [vmem:[%s8653_s4 + $0x5a0] sm:$0xff] }
 0x525   : > { %v6012_v57 = vpack.c.bf16 %v2914_v51, %v2909_v50  ;;  %6011 = vmatprep.subr.bf16.mxu0 %v6010_v28  ;;  %v2921_v28 = vld [vmem:[#allocation3 + $0x340] sm:$0xff]  ;;  %v2926_v51 = vld [vmem:[#allocation3 + $0x368] sm:$0xff] }
 0x526   : > { %v4381_v53 = vld [vmem:[%s8653_s4 + $0x5a8] sm:$0xff] }
 0x527   : > { %5950 = vmatpush3.bf16.msra.mxu1 %v5949_v9  ;;  %v2920_v9 = vld [vmem:[#allocation3 + $0x338] sm:$0xff]  ;;  %6013 = vmatpush1.bf16.msra.mxu0 %v6012_v57  ;;  %v4362_v57 = vld [vmem:[%s8653_s4 + $0x510] sm:$0xff] }
 0x528   : > { %5952 = vmatprep.subr.bf16.mxu1 %v5951_v63  ;;  %v2925_v63 = vld [vmem:[#allocation3 + $0x360] sm:$0xff] }
 0x529   : > { %v6014_v14 = vpack.c.bf16 %v2925_v63, %v2920_v9  ;;  %v6029_v9 = vpack.c.bf16 %v2926_v51, %v2921_v28  ;;  %v2931_v63 = vld [vmem:[#allocation3 + $0x390] sm:$0xff]  ;;  %v4388_v28 = vld [vmem:[%s8653_s4 + $0x5e0] sm:$0xff]  ;;  %v4389_v51 = vld [vmem:[%s8653_s4 + $0x5e8] sm:$0xff] }
 0x52b   : > { %5954 = vmatpush3.bf16.msra.mxu1 %v5953_v15  ;;  %6015 = vmatprep.subr.bf16.mxu0 %v6014_v14  ;;  %v2928_v15 = vld [vmem:[#allocation3 + $0x378] sm:$0xff] }
 0x52c   : > { %5956 = vmatprep.subr.bf16.mxu1 %v5955_v16  ;;  %6017 = vmatpush1.bf16.msra.mxu0 %v6016_v38  ;;  %v2933_v16 = vld [vmem:[#allocation3 + $0x3a0] sm:$0xff] }
 0x52d   : > { %v6002_v17 = vpack.c.bf16 %v2933_v16, %v2928_v15  ;;  %v4409_v38 = vld [vmem:[%s8653_s4 + $0x688] sm:$0xff]  ;;  %v6042_v15 = vpack.c.bf16 %v4381_v53, %v4380_v60  ;;  %v4364_v16 = vld [vmem:[%s8653_s4 + $0x520] sm:$0xff] }
 0x52e   : > { %v4417_v53 = vld [vmem:[%s8653_s4 + $0x6c8] sm:$0xff] }
 0x52f   : > { %5958 = vmatpush3.bf16.msra.mxu1 %v5957_v20  ;;  %v2935_v20 = vld [vmem:[#allocation3 + $0x3b0] sm:$0xff] }
 0x530   : > { %5960 = vmatprep.subr.bf16.mxu1 %v5959_v37  ;;  %v2929_v37 = vld [vmem:[#allocation3 + $0x380] sm:$0xff]  ;;  %v6018_v24 = vpack.c.bf16 %v2935_v20, %v2930_v19  ;;  %v4383_v19 = vld [vmem:[%s8653_s4 + $0x5b8] sm:$0xff]  ;;  %v6066_v20 = vpack.c.bf16 %v4409_v38, %v4408_v34 }
 0x531   : > { %v6020_v25 = vpack.c.bf16 %v2934_v22, %v2929_v37  ;;  %v4392_v37 = vld [vmem:[%s8653_s4 + $0x600] sm:$0xff]  ;;  %v4393_v22 = vld [vmem:[%s8653_s4 + $0x608] sm:$0xff] }
 0x532   : > { %6019 = vmatprep.subr.bf16.mxu0 %v6018_v24  ;;  %v4410_v24 = vld [vmem:[%s8653_s4 + $0x690] sm:$0xff]  ;;  %v4400_v38 = vld [vmem:[%s8653_s4 + $0x640] sm:$0xff] }
 0x533   : > { %5962 = vmatpush3.bf16.msra.mxu1 %v5961_v26  ;;  %6021 = vmatpush1.bf16.msra.mxu0 %v6020_v25  ;;  %v4376_v26 = vld [vmem:[%s8653_s4 + $0x580] sm:$0xff] }
 0x534   : > { %5987 = vmatprep.subr.bf16.mxu1 %v6414_v1 }
 0x536   : > { %2728 = vmatmul.mubr.f32.vlgmr.msra.gmra.mrb[42].mxu1 %v1227_v8  ;;  %v6034_v8 = vpack.c.bf16 %v4377_v29, %v4376_v26  ;;  %v4411_v26 = vld [vmem:[%s8653_s4 + $0x698] sm:$0xff]  ;;  %v6046_v29 = vpack.c.bf16 %v4383_v19, %v4382_v18  ;;  %v4402_v19 = vld [vmem:[%s8653_s4 + $0x650] sm:$0xff] }
 0x537   : > { %5989 = vmatpush3.bf16.msra.mxu1 %v6577_v5  ;;  %5414 = vmatprep.mubr.msk.f32.mxu1 %vm6415_vm0, %v6416_v2  ;;  %v4347_v5 = vld [vmem:[%s8650_s1 + $0x40] sm:$0xf] }
 0x538   : > { %5991 = vmatprep.subr.bf16.mxu1 %v5990_v32  ;;  %6035 = vmatprep.subr.bf16.mxu0 %v6034_v8  ;;  %v4366_v8 = vld [vmem:[%s8653_s4 + $0x530] sm:$0xff] }
 0x53a   : > { %5415 = vmatmul.mubr.msk.f32.vlgmr.msra.gmra.mrb[44].mxu1 %vm418_vm1, %v4345_v61 }
 0x53b   : > { %5417 = vmatprep.mubr.msk.f32.mxu1 %vm6415_vm0, %v6416_v2  ;;  %5993 = vmatpush1.bf16.msra.mxu1 %v5992_v0 }
 0x53c   : > { %5995 = vmatprep.subr.bf16.mxu1 %v5994_v44 }
 0x53e   : > { %5418 = vmatmul.mubr.msk.f32.gmra.mrb[46].mxu1 %vm418_vm1, %v4346_v55 }
 0x53f   : > { %5420 = vmatprep.mubr.msk.f32.mxu1 %vm6415_vm0, %v6416_v2  ;;  %5997 = vmatpush1.bf16.msra.mxu1 %v5996_v45  ;;  %v4378_v45 = vld [vmem:[%s8653_s4 + $0x590] sm:$0xff] }
 0x540   : > { %5999 = vmatprep.subr.bf16.mxu1 %v5998_v59  ;;  %v6038_v56 = vpack.c.bf16 %v4379_v27, %v4378_v45  ;;  %v4363_v59 = vld [vmem:[%s8653_s4 + $0x518] sm:$0xff]  ;;  %v4370_v27 = vld [vmem:[%s8653_s4 + $0x550] sm:$0xff] }
 0x542   : > { %5421 = vmatmul.mubr.msk.f32.gmra.mrb[48].mxu1 %vm418_vm1, %v4347_v5 }
 0x543   : > { %3010 = vmatprep.mubr.f32.mxu1 %v6416_v2  ;;  %6001 = vmatpush1.bf16.msra.mxu1 %v6000_v11  ;;  %v6040_v11 = vpack.c.bf16 %v4363_v59, %v4362_v57  ;;  %v4398_v59 = vld [vmem:[%s8653_s4 + $0x630] sm:$0xff] }
 0x544   : > { %6003 = vmatprep.subr.bf16.mxu1 %v6002_v17  ;;  %v4365_v17 = vld [vmem:[%s8653_s4 + $0x528] sm:$0xff] }
 0x545   : > { %v6044_v25 = vpack.c.bf16 %v4365_v17, %v4364_v16  ;;  %v4418_v17 = vld [vmem:[%s8653_s4 + $0x6d0] sm:$0xff] }
 0x547   : > { %6005 = vmatpush1.bf16.msra.mxu1 %v6004_v46  ;;  %v6032_v46 = vpack.c.bf16 %v2936_v10, %v2931_v63  ;;  %v4372_v63 = vld [vmem:[%s8653_s4 + $0x560] sm:$0xff]  ;;  %v4373_v10 = vld [vmem:[%s8653_s4 + $0x568] sm:$0xff] }
 0x548   : > { %6022 = vmatprep.subr.bf16.mxu1 %v6414_v1  ;;  %v6060_v16 = vpack.c.bf16 %v4373_v10, %v4372_v63  ;;  %v8207_v10 = vpop.permute.xlu0 %3621 }
 0x5c3   : > { %v4808_v61 = vpop.f32.mrb[38].mxu1 }
 0x5c4   : > { %v4809_v55 = vpop.f32.mrb[39].mxu1 }
 0x5c5   : > { %v4810_v5 = vadd.f32 %v4809_v55, %v4808_v61  ;;  %v4367_v61 = vld [vmem:[%s8653_s4 + $0x538] sm:$0xff]  ;;  %v4384_v55 = vld [vmem:[%s8653_s4 + $0x5c0] sm:$0xff] }
 0x5c6   : > { %v6048_v62 = vpack.c.bf16 %v4367_v61, %v4366_v8  ;;  %v4390_v8 = vld [vmem:[%s8653_s4 + $0x5f0] sm:$0xff]  ;;  %v4391_v61 = vld [vmem:[%s8653_s4 + $0x5f8] sm:$0xff] }
 0x5c7   : > { %v2436_v13 = vadd.f32 %v7730_v58, %v4810_v5  ;;  %v2911_v58 = vld [vmem:[#allocation3 + $0x2f0] sm:$0xff]  ;;  %v4385_v5 = vld [vmem:[%s8653_s4 + $0x5c8] sm:$0xff] }
 0x5c8   : > { %v6026_v49 = vpack.c.bf16 %v2916_v36, %v2911_v58  ;;  %v4396_v36 = vld [vmem:[%s8653_s4 + $0x620] sm:$0xff] }
 0x5e3   : > { %v2505_v31 = vpop.f32.mrb[40].mxu1 }
 0x5e4   : > { %v2506_v48 = vadd.f32 %v2505_v31, %v2436_v13  ;;  %v5365_v32 = vpop.f32.mrb[41].mxu1  ;;  %v6068_v13 = vpack.c.bf16 %v4393_v22, %v4392_v37  ;;  %v6070_v31 = vpack.c.bf16 %v4411_v26, %v4410_v24  ;;  %v4421_v37 = vld [vmem:[%s8653_s4 + $0x6e8] sm:$0xff] }
 0x5e5   : > { %v4395_v32 = vld [vmem:[%s8653_s4 + $0x618] sm:$0xff]  ;;  %v4405_v26 = vld [vmem:[%s8653_s4 + $0x668] sm:$0xff] }
 0x5e6   : > { %v2660_v47 = vadd.f32 %v7797_v12, %v2506_v48  ;;  %v6036_v12 = vpack.c.bf16 %v4361_v40, %v4360_v39  ;;  %v4394_v48 = vld [vmem:[%s8653_s4 + $0x610] sm:$0xff]  ;;  %v4369_v39 = vld [vmem:[%s8653_s4 + $0x548] sm:$0xff] }
 0x5e7   : > { %v4386_v40 = vld [vmem:[%s8653_s4 + $0x5d0] sm:$0xff] }
 0x609   : > { %v4935_v0 = vpop.f32.mrb[42].mxu1 }
 0x60a   : > { %v4936_v35 = vpop.f32.mrb[43].mxu1 }
 0x60b   : > { %v4937_v52 = vadd.f32 %v4936_v35, %v4935_v0  ;;  %v6050_v0 = vpack.c.bf16 %v4385_v5, %v4384_v55  ;;  %v4368_v35 = vld [vmem:[%s8653_s4 + $0x540] sm:$0xff]  ;;  %v6062_v55 = vpack.c.bf16 %v4391_v61, %v4390_v8  ;;  %v4374_v5 = vld [vmem:[%s8653_s4 + $0x570] sm:$0xff] }
 0x60d   : > { %v2730_v42 = vadd.f32 %v4937_v52, %v2660_v47  ;;  %v7958_v43 = vpop.f32.mrb[44].mxu1  ;;  %v4412_v47 = vld [vmem:[%s8653_s4 + $0x6a0] sm:$0xff]  ;;  %v4387_v52 = vld [vmem:[%s8653_s4 + $0x5d8] sm:$0xff] }
 0x60e   : > { %v5416_v44 = vpop.f32.mrb[45].mxu1  ;;  %4351 = vmatmul.mubr.msk.f32.vlgmr.msra.gmra.mrb[50].mxu1 %vm574_vm2, %v7958_v43  ;;  %4354 = vmatmul.mubr.msk.f32.vlgmr.msra.gmra.mrb[54].mxu0 %vm574_vm2, %v7958_v43  ;;  %v6074_v58 = vpack.c.bf16 %v4413_v33, %v4412_v47  ;;  %v6054_v45 = vpack.c.bf16 %v4387_v52, %v4386_v40  ;;  %v4406_v47 = vld [vmem:[%s8653_s4 + $0x670] sm:$0xff] }
 0x60f   : > { %6024 = vmatpush3.bf16.msra.mxu1 %v6023_v41  ;;  %3016 = vmatprep.mubr.f32.mxu1 %v6416_v2  ;;  %v7972_v50 = vadd.f32 %v7883_v23, %v2730_v42  ;;  %v6072_v41 = vpack.c.bf16 %v4395_v32, %v4394_v48  ;;  %v4397_v42 = vld [vmem:[%s8653_s4 + $0x628] sm:$0xff]  ;;  %v4415_v44 = vld [vmem:[%s8653_s4 + $0x6b8] sm:$0xff] }
 0x610   : > { %3099 = vmatprep.mubr.f32.mxu0 %v6416_v2  ;;  %6025 = vmatprep.subr.bf16.mxu1 %v6414_v1  ;;  %v4423_v32 = vld [vmem:[%s8653_s4 + $0x6f8] sm:$0xff] }
 0x611   : > { %v7976_v54 = vpop.f32.mrb[46].mxu1  ;;  %6037 = vmatpush3.bf16.msra.mxu0 %v6036_v12  ;;  %v6052_v12 = vpack.c.bf16 %v4369_v39, %v4368_v35 }
 0x612   : > { %4352 = vmatmul.mubr.msk.f32.gmra.mrb[52].mxu1 %vm574_vm2, %v7976_v54  ;;  %4355 = vmatmul.mubr.msk.f32.gmra.mrb[56].mxu0 %vm574_vm2, %v7976_v54  ;;  %v5419_v23 = vpop.f32.mrb[47].mxu1 }
 0x613   : > { %6027 = vmatpush3.bf16.msra.mxu1 %v6026_v49  ;;  %3022 = vmatprep.mubr.f32.mxu1 %v6416_v2  ;;  %v4371_v49 = vld [vmem:[%s8653_s4 + $0x558] sm:$0xff]  ;;  %v4416_v23 = vld [vmem:[%s8653_s4 + $0x6c0] sm:$0xff] }
 0x614   : > { %3105 = vmatprep.mubr.f32.mxu0 %v6416_v2  ;;  %6028 = vmatprep.subr.bf16.mxu1 %v6414_v1  ;;  %v6056_v60 = vpack.c.bf16 %v4371_v49, %v4370_v27  ;;  %v4427_v49 = vld [vmem:[%s8653_s4 + $0x718] sm:$0xff] }
 0x615   : > { %v8000_v14 = vpop.f32.mrb[48].mxu1  ;;  %6039 = vmatprep.subr.bf16.mxu0 %v6038_v56  ;;  %v6076_v56 = vpack.c.bf16 %v4397_v42, %v4396_v36  ;;  %v4424_v36 = vld [vmem:[%s8653_s4 + $0x700] sm:$0xff]  ;;  %v4425_v42 = vld [vmem:[%s8653_s4 + $0x708] sm:$0xff] }
 0x616   : > { %4353 = vmatmul.mubr.msk.f32.gmra.mrb[54].mxu1 %vm574_vm2, %v8000_v14  ;;  %4356 = vmatmul.mubr.msk.f32.gmra.mrb[58].mxu0 %vm574_vm2, %v8000_v14  ;;  %v5422_v30 = vpop.f32.mrb[49].mxu1 }
 0x617   : > { %6030 = vmatpush3.bf16.msra.mxu1 %v6029_v9  ;;  %5439 = vmatprep.mubr.msk.f32.mxu1 %vm6415_vm0, %v6416_v2  ;;  %v6058_v9 = vpack.c.bf16 %v4389_v51, %v4388_v28  ;;  %v8198_v28 = vld [vmem:[%s8653_s4 + $0x720] sm:$0xff]  ;;  %v8203_v51 = vld [vmem:[%s8653_s4 + $0x728] sm:$0xff] }
 0x618   : > { %6031 = vmatprep.subr.bf16.mxu1 %v6414_v1  ;;  %6041 = vmatpush3.bf16.msra.mxu0 %v6040_v11  ;;  %v6082_v11 = vpack.c.bf16 %v4417_v53, %v4416_v23  ;;  %v6099_v23 = vpack.c.bf16 %v4425_v42, %v4424_v36 }
 0x619   : > { %6043 = vmatprep.subr.bf16.mxu0 %v6042_v15  ;;  %v4401_v15 = vld [vmem:[%s8653_s4 + $0x648] sm:$0xff] }
 0x61a   : > { %v6084_v30 = vpack.c.bf16 %v4401_v15, %v4400_v38  ;;  %v6105_v15 = vpack.c.bf16 %v8203_v51, %v8198_v28 }
 0x61b   : > { %6033 = vmatpush3.bf16.msra.mxu1 %v6032_v46  ;;  %v4403_v46 = vld [vmem:[%s8653_s4 + $0x658] sm:$0xff] }
 0x61c   : > { %6067 = vmatprep.subr.bf16.mxu1 %v6066_v20  ;;  %6045 = vmatpush3.bf16.msra.mxu0 %v6044_v25  ;;  %v4420_v20 = vld [vmem:[%s8653_s4 + $0x6e0] sm:$0xff]  ;;  %v6088_v22 = vpack.c.bf16 %v4403_v46, %v4402_v19 }
 0x61d   : > { %6047 = vmatprep.subr.bf16.mxu0 %v6046_v29  ;;  %v6090_v24 = vpack.c.bf16 %v4421_v37, %v4420_v20  ;;  %v4404_v25 = vld [vmem:[%s8653_s4 + $0x660] sm:$0xff] }
 0x61e   : > { %5440 = vmatmul.mubr.msk.f32.vlgmr.msra.gmra.mrb[56].mxu1 %vm574_vm2, %v7958_v43  ;;  %v4414_v43 = vld [vmem:[%s8653_s4 + $0x6b0] sm:$0xff]  ;;  %v6092_v29 = vpack.c.bf16 %v4405_v26, %v4404_v25 }
 0x61f   : > { %5442 = vmatprep.mubr.msk.f32.mxu1 %vm6415_vm0, %v6416_v2  ;;  %6069 = vmatpush3.bf16.msra.mxu1 %v6068_v13  ;;  %v6078_v57 = vpack.c.bf16 %v4415_v44, %v4414_v43  ;;  %v4375_v13 = vld [vmem:[%s8653_s4 + $0x578] sm:$0xff]  ;;  %v4426_v44 = vld [vmem:[%s8653_s4 + $0x710] sm:$0xff] }
 0x620   : > { %6071 = vmatprep.subr.bf16.mxu1 %v6070_v31  ;;  %6049 = vmatpush3.bf16.msra.mxu0 %v6048_v62  ;;  %v4422_v31 = vld [vmem:[%s8653_s4 + $0x6f0] sm:$0xff]  ;;  %v6064_v48 = vpack.c.bf16 %v4375_v13, %v4374_v5  ;;  %v4407_v62 = vld [vmem:[%s8653_s4 + $0x678] sm:$0xff]  ;;  %v6102_v38 = vpack.c.bf16 %v4427_v49, %v4426_v44 }
 0x621   : > { %6051 = vmatprep.subr.bf16.mxu0 %v6050_v0  ;;  %v6094_v33 = vpack.c.bf16 %v4423_v32, %v4422_v31  ;;  %v6096_v0 = vpack.c.bf16 %v4407_v62, %v4406_v47 }
 0x622   : > { %5443 = vmatmul.mubr.msk.f32.gmra.mrb[58].mxu1 %vm574_vm2, %v7976_v54  ;;  %v4399_v54 = vld [vmem:[%s8653_s4 + $0x638] sm:$0xff] }
 0x623   : > { %5445 = vmatprep.mubr.msk.f32.mxu1 %vm6415_vm0, %v6416_v2  ;;  %6073 = vmatpush3.bf16.msra.mxu1 %v6072_v41  ;;  %v6080_v34 = vpack.c.bf16 %v4399_v54, %v4398_v59 }
 0x624   : > { %6075 = vmatprep.subr.bf16.mxu1 %v6074_v58  ;;  %6053 = vmatpush3.bf16.msra.mxu0 %v6052_v12 }
 0x625   : > { %6055 = vmatprep.subr.bf16.mxu0 %v6054_v45 }
 0x626   : > { %5446 = vmatmul.mubr.msk.f32.gmra.mrb[60].mxu1 %vm574_vm2, %v8000_v14  ;;  %v4419_v14 = vld [vmem:[%s8653_s4 + $0x6d8] sm:$0xff] }
 0x627   : > { %6077 = vmatpush3.bf16.msra.mxu1 %v6076_v56  ;;  %v6086_v18 = vpack.c.bf16 %v4419_v14, %v4418_v17 }
 0x628   : > { %6079 = vmatprep.subr.bf16.mxu1 %v6078_v57  ;;  %6057 = vmatpush3.bf16.msra.mxu0 %v6056_v60 }
 0x629   : > { %6059 = vmatprep.subr.bf16.mxu0 %v6058_v9 }
 0x62b   : > { %6081 = vmatpush3.bf16.msra.mxu1 %v6080_v34 }
 0x62c   : > { %6083 = vmatprep.subr.bf16.mxu1 %v6082_v11  ;;  %6061 = vmatpush3.bf16.msra.mxu0 %v6060_v16  ;;  %v8213_v16 = vpop.permute.xlu1 %3626 }
 0x62d   : > { %6063 = vmatprep.subr.bf16.mxu0 %v6062_v55 }
 0x62f   : > { %6085 = vmatpush3.bf16.msra.mxu1 %v6084_v30 }
 0x630   : > { %6087 = vmatprep.subr.bf16.mxu1 %v6086_v18  ;;  %6065 = vmatpush3.bf16.msra.mxu0 %v6064_v48 }
 0x631   : > { %6098 = vmatprep.subr.bf16.mxu0 %v6414_v1 }
 0x633   : > { %6089 = vmatpush3.bf16.msra.mxu1 %v6088_v22 }
 0x634   : > { %6091 = vmatprep.subr.bf16.mxu1 %v6090_v24 }
 0x637   : > { %6093 = vmatpush3.bf16.msra.mxu1 %v6092_v29 }
 0x638   : > { %6095 = vmatprep.subr.bf16.mxu1 %v6094_v33 }
 0x63b   : > { %6097 = vmatpush3.bf16.msra.mxu1 %v6096_v0 }
 0x6e1   : > { %v3012_v35 = vpop.f32.mrb[50].mxu1  ;;  %v3095_v39 = vpop.f32.mrb[54].mxu0 }
 0x6e2   : > { %v3013_v40 = vadd.f32 %v3012_v35, %v6862_v3  ;;  %v3096_v52 = vadd.f32 %v3095_v39, %v6865_v4  ;;  %v3014_v41 = vpop.f32.mrb[51].mxu1  ;;  %v3097_v58 = vpop.f32.mrb[55].mxu0 }
 0x6e3   : > { %v3015_v43 = vadd.f32 %v3014_v41, %v6868_v6  ;;  %v3098_v12 = vadd.f32 %v3097_v58, %v6871_v7 }
 0x6e4   : > { %v3192_v45 = vmax.f32 %v3013_v40, 0.0  ;;  %v3194_v27 = vmax.f32 %v3096_v52, 0.0  ;;  %v4430_v40 = vld [vmem:[%s8653_s4 + $0x730] sm:$0xff] }
 0x6e5   : > { %v3193_v56 = vmax.f32 %v3015_v43, 0.0  ;;  %v3195_v57 = vmax.f32 %v3098_v12, 0.0  ;;  %v3018_v59 = vpop.f32.mrb[52].mxu1  ;;  %v3101_v54 = vpop.f32.mrb[56].mxu0 }
 0x6e6   : > { %v3019_v60 = vadd.f32 %v3018_v59, %v6862_v3  ;;  %v3102_v53 = vadd.f32 %v3101_v54, %v6865_v4  ;;  %v3020_v9 = vpop.f32.mrb[53].mxu1  ;;  %v3103_v63 = vpop.f32.mrb[57].mxu0  ;;  %v3634_v17 = vmul.f32 %v8207_v10, %v3192_v45  ;;  %v3636_v14 = vmul.f32 %v8207_v10, %v3194_v27  ;;  %v4432_v59 = vld [vmem:[%s8653_s4 + $0x740] sm:$0xff]  ;;  %v4433_v54 = vld [vmem:[%s8653_s4 + $0x748] sm:$0xff] }
 0x6e7   : > { %v3021_v34 = vadd.f32 %v3020_v9, %v6868_v6  ;;  %v3104_v11 = vadd.f32 %v3103_v63, %v6871_v7  ;;  %3352 = vmatprep.mubr.f32.mxu0 %v3193_v56  ;;  %3432 = vmatprep.mubr.f32.mxu1 %v3195_v57  ;;  %v3635_v19 = vmul.f32 %v8207_v10, %v3193_v56 }
 0x6e8   : > { %v3197_v30 = vmax.f32 %v3019_v60, 0.0  ;;  %v3199_v18 = vmax.f32 %v3102_v53, 0.0  ;;  %3353 = vmatmul.mubr.f32.vlgmr.msra.gmra.mrb[60].mxu0 %v3192_v45  ;;  %v3637_v46 = vmul.f32 %v8207_v10, %v3195_v57  ;;  %3433 = vmatmul.mubr.f32.vlgmr.msra.gmra.mrb[62].mxu1 %v3194_v27  ;;  %v6111_v60 = vpack.c.bf16 %v4433_v54, %v4432_v59 }
 0x6e9   : > { %v3198_v20 = vmax.f32 %v3021_v34, 0.0  ;;  %v3200_v37 = vmax.f32 %v3104_v11, 0.0  ;;  %6100 = vmatpush3.bf16.msra.mxu0 %v6099_v23  ;;  %v3024_v22 = vpop.f32.mrb[54].mxu1  ;;  %v3107_v24 = vpop.f32.mrb[58].mxu0  ;;  %v4434_v34 = vld [vmem:[%s8653_s4 + $0x750] sm:$0xff]  ;;  %v4435_v11 = vld [vmem:[%s8653_s4 + $0x758] sm:$0xff] }
 0x6ea   : > { %v3639_v25 = vmul.f32 %v8213_v16, %v3197_v30  ;;  %v3641_v26 = vmul.f32 %v8213_v16, %v3199_v18  ;;  %v3025_v29 = vadd.f32 %v3024_v22, %v6862_v3  ;;  %v3108_v8 = vadd.f32 %v3107_v24, %v6865_v4  ;;  %v3026_v61 = vpop.f32.mrb[55].mxu1  ;;  %v3109_v55 = vpop.f32.mrb[59].mxu0  ;;  %6101 = vmatprep.subr.bf16.mxu0 %v6414_v1 }
 0x6eb   : > { %v3640_v5 = vmul.f32 %v8213_v16, %v3198_v20  ;;  %v3642_v13 = vmul.f32 %v8213_v16, %v3200_v37  ;;  %v3027_v31 = vadd.f32 %v3026_v61, %v6868_v6  ;;  %v3110_v48 = vadd.f32 %v3109_v55, %v6871_v7  ;;  %3357 = vmatprep.mubr.f32.mxu0 %v3198_v20  ;;  %v3632_v3 = vpop.permute.xlu0 %3631  ;;  %v4431_v6 = vld [vmem:[%s8653_s4 + $0x738] sm:$0xff]  ;;  %v4437_v20 = vld [vmem:[%s8653_s4 + $0x768] sm:$0xff] }
 0x6ec   : > { %v3649_v32 = vadd.f32 %v3639_v25, %v3634_v17  ;;  %v3667_v47 = vadd.f32 %v3641_v26, %v3636_v14  ;;  %v3202_v62 = vmax.f32 %v3025_v29, 0.0  ;;  %v3204_v33 = vmax.f32 %v3108_v8, 0.0  ;;  %3437 = vmatprep.mubr.f32.mxu1 %v3200_v37  ;;  %3358 = vmatmul.mubr.f32.gmra.mrb[62].mxu0 %v3197_v30  ;;  %v4496_v26 = vld [vmem:[%s8656_s7 + $0x680] sm:$0xff]  ;;  %v4497_v29 = vld [vmem:[%s8656_s7 + $0x688] sm:$0xff] }
 0x6ed   : > { %v3658_v4 = vadd.f32 %v3640_v5, %v3635_v19  ;;  %v3676_v0 = vadd.f32 %v3642_v13, %v3637_v46  ;;  %v3203_v35 = vmax.f32 %v3027_v31, 0.0  ;;  %v3205_v39 = vmax.f32 %v3110_v48, 0.0  ;;  %6103 = vmatpush3.bf16.msra.mxu0 %v6102_v38  ;;  %3438 = vmatmul.mubr.f32.gmra.mrb[64].mxu1 %v3199_v18  ;;  %v4436_v46 = vld [vmem:[%s8653_s4 + $0x760] sm:$0xff]  ;;  %v4481_v48 = vld [vmem:[%s8656_s7 + $0x608] sm:$0xff] }
 0x6ee   : > { %v3644_v7 = vmul.f32 %v3632_v3, %v3202_v62  ;;  %v3646_v52 = vmul.f32 %v3632_v3, %v3204_v33  ;;  %6104 = vmatprep.subr.bf16.mxu0 %v6414_v1  ;;  %v6108_v43 = vpack.c.bf16 %v4431_v6, %v4430_v40  ;;  %v6114_v17 = vpack.c.bf16 %v4435_v11, %v4434_v34  ;;  %v4480_v31 = vld [vmem:[%s8656_s7 + $0x600] sm:$0xff] }
 0x6ef   : > { %v3645_v41 = vmul.f32 %v3632_v3, %v3203_v35  ;;  %v3647_v58 = vmul.f32 %v3632_v3, %v3205_v39  ;;  %3362 = vmatprep.mubr.f32.mxu0 %v3203_v35  ;;  %3442 = vmatprep.mubr.f32.mxu1 %v3205_v39  ;;  %v6158_v13 = vpack.c.bf16 %v4497_v29, %v4496_v26  ;;  %v4500_v35 = vld [vmem:[%s8656_s7 + $0x6a0] sm:$0xff]  ;;  %v4501_v39 = vld [vmem:[%s8656_s7 + $0x6a8] sm:$0xff] }
 0x6f0   : > { %v3650_v36 = vsel %vm1201_vm3, %v3644_v7, 0.0  ;;  %v3668_v42 = vsel %vm1201_vm3, %v3646_v52, 0.0  ;;  %3363 = vmatmul.mubr.f32.gmra.mrb[64].mxu0 %v3202_v62  ;;  %v6166_v7 = vpack.c.bf16 %v4501_v39, %v4500_v35  ;;  %v4484_v52 = vld [vmem:[%s8656_s7 + $0x620] sm:$0xff] }
 0x6f1   : > { %v8237_v12 = vadd.f32 %v3650_v36, %v3649_v32  ;;  %v8239_v44 = vadd.f32 %v3668_v42, %v3667_v47  ;;  %v3659_v45 = vsel %vm1201_vm3, %v3645_v41, 0.0  ;;  %v3677_v27 = vsel %vm1201_vm3, %v3647_v58, 0.0  ;;  %v3178_v49 = vpop.f32.mrb[56].mxu1  ;;  %6106 = vmatpush3.bf16.msra.mxu0 %v6105_v15  ;;  %3443 = vmatmul.mubr.f32.gmra.mrb[66].mxu1 %v3204_v33  ;;  %v4498_v32 = vld [vmem:[%s8656_s7 + $0x690] sm:$0xff]  ;;  %v4499_v47 = vld [vmem:[%s8656_s7 + $0x698] sm:$0xff]  ;;  %v4485_v41 = vld [vmem:[%s8656_s7 + $0x628] sm:$0xff] }
 0x6f2   : > { %v8243_v28 = vadd.f32 %v3659_v45, %v3658_v4  ;;  %v3678_v51 = vadd.f32 %v3677_v27, %v3676_v0  ;;  %v3179_v56 = vadd.f32 %v3178_v49, %v6937_v21  ;;  %v5441_v57 = vpop.f32.mrb[57].mxu1  ;;  %6107 = vmatprep.subr.bf16.mxu0 %v6414_v1  ;;  %5480 = vmatprep.mubr.msk.f32.mxu0 %vm6415_vm0, %v6416_v2  ;;  %v4482_v4 = vld [vmem:[%s8656_s7 + $0x610] sm:$0xff]  ;;  %v4483_v0 = vld [vmem:[%s8656_s7 + $0x618] sm:$0xff] }
 0x6f3   : > { %v6160_v33 = vpack.c.bf16 %v4481_v48, %v4480_v31  ;;  %v6164_v6 = vpack.c.bf16 %v4483_v0, %v4482_v4  ;;  %v4502_v36 = vld [vmem:[%s8656_s7 + $0x6b0] sm:$0xff]  ;;  %v4503_v42 = vld [vmem:[%s8656_s7 + $0x6b8] sm:$0xff]  ;;  %v4505_v57 = vld [vmem:[%s8656_s7 + $0x6c8] sm:$0xff]  ;;  %v3670_v54 = vrot.slane %v8239_v44, 4 }
 0x6f4   : > { %v3196_v53 = vmax.f32 %v3179_v56, 0.0  ;;  %v3679_v37 = vrot.slane %v3678_v51, 4  ;;  %v6170_v45 = vpack.c.bf16 %v4503_v42, %v4502_v36  ;;  %v4486_v27 = vld [vmem:[%s8656_s7 + $0x630] sm:$0xff]  ;;  %v4487_v49 = vld [vmem:[%s8656_s7 + $0x638] sm:$0xff]  ;;  %v4504_v56 = vld [vmem:[%s8656_s7 + $0x6c0] sm:$0xff] }
 0x6f5   : > { %v3183_v23 = vpop.f32.mrb[58].mxu1  ;;  %6109 = vmatpush3.bf16.msra.mxu0 %v6108_v43  ;;  %v6168_v43 = vpack.c.bf16 %v4485_v41, %v4484_v52  ;;  %v6172_v59 = vpack.c.bf16 %v4487_v49, %v4486_v27  ;;  %v3671_v11 = vadd.f32 %v3670_v54, %v8239_v44 }
 0x6f6   : > { %v3184_v9 = vadd.f32 %v3183_v23, %v6937_v21  ;;  %v5444_v63 = vpop.f32.mrb[59].mxu1  ;;  %6110 = vmatprep.subr.bf16.mxu0 %v6414_v1  ;;  %v3638_v14 = vmul.f32 %v8207_v10, %v3196_v53  ;;  %v6117_v10 = vpack.c.bf16 %v4437_v20, %v4436_v46  ;;  %v3680_v8 = vadd.f32 %v3679_v37, %v3678_v51  ;;  %v4492_v46 = vld [vmem:[%s8656_s7 + $0x660] sm:$0xff]  ;;  %v4493_v20 = vld [vmem:[%s8656_s7 + $0x668] sm:$0xff]  ;;  %v4510_v37 = vld [vmem:[%s8656_s7 + $0x6f0] sm:$0xff] }
 0x6f7   : > { %v6174_v23 = vpack.c.bf16 %v4505_v57, %v4504_v56  ;;  %v4507_v63 = vld [vmem:[%s8656_s7 + $0x6d8] sm:$0xff] }
 0x6f8   : > { %v3201_v38 = vmax.f32 %v3184_v9, 0.0  ;;  %v3681_v62 = vrot.slane %v3680_v8, 2  ;;  %v4506_v9 = vld [vmem:[%s8656_s7 + $0x6d0] sm:$0xff] }
 0x6f9   : > { %v3188_v15 = vpop.f32.mrb[60].mxu1  ;;  %6112 = vmatpush3.bf16.msra.mxu0 %v6111_v60  ;;  %v4488_v60 = vld [vmem:[%s8656_s7 + $0x640] sm:$0xff] }
 0x6fa   : > { %v3643_v30 = vmul.f32 %v8213_v16, %v3201_v38  ;;  %v3189_v18 = vadd.f32 %v3188_v15, %v6937_v21  ;;  %6113 = vmatprep.subr.bf16.mxu0 %v6414_v1  ;;  %v5447_v19 = vpop.f32.mrb[61].mxu1  ;;  %v4438_v21 = vld [vmem:[%s8653_s4 + $0x770] sm:$0xff]  ;;  %v4439_v16 = vld [vmem:[%s8653_s4 + $0x778] sm:$0xff]  ;;  %v3682_v40 = vadd.f32 %v3681_v62, %v3680_v8 }
 0x6fb   : > { %v6120_v5 = vpack.c.bf16 %v4439_v16, %v4438_v21  ;;  %v4490_v15 = vld [vmem:[%s8656_s7 + $0x650] sm:$0xff]  ;;  %v4495_v16 = vld [vmem:[%s8656_s7 + $0x678] sm:$0xff] }
 0x6fc   : > { %v3685_v22 = vadd.f32 %v3643_v30, %v3638_v14  ;;  %v3206_v24 = vmax.f32 %v3189_v18, 0.0  ;;  %v3683_v58 = vrot.slane %v3682_v40, 1  ;;  %v4508_v14 = vld [vmem:[%s8656_s7 + $0x6e0] sm:$0xff]  ;;  %v4509_v30 = vld [vmem:[%s8656_s7 + $0x6e8] sm:$0xff]  ;;  %v3672_v18 = vrot.slane %v3671_v11, 2  ;;  %v4494_v21 = vld [vmem:[%s8656_s7 + $0x670] sm:$0xff] }
 0x6fd   : > { %6115 = vmatpush3.bf16.msra.mxu0 %v6114_v17  ;;  %v4491_v17 = vld [vmem:[%s8656_s7 + $0x658] sm:$0xff]  ;;  %v6182_v19 = vpack.c.bf16 %v4509_v30, %v4508_v14  ;;  %v6188_v26 = vpack.c.bf16 %v4495_v16, %v4494_v21  ;;  %v4452_v21 = vld [vmem:[%s8656_s7 + $0x520] sm:$0xff]  ;;  %v4453_v16 = vld [vmem:[%s8656_s7 + $0x528] sm:$0xff] }
 0x6fe   : > { %v3648_v25 = vmul.f32 %v3632_v3, %v3206_v24  ;;  %6116 = vmatprep.subr.bf16.mxu0 %v6414_v1  ;;  %v6162_v3 = vpack.c.bf16 %v4499_v47, %v4498_v32  ;;  %v3684_v51 = vadd.f32 %v3683_v58, %v3682_v40  ;;  %v6180_v44 = vpack.c.bf16 %v4491_v17, %v4490_v15  ;;  %v4466_v17 = vld [vmem:[%s8656_s7 + $0x590] sm:$0xff]  ;;  %v4467_v14 = vld [vmem:[%s8656_s7 + $0x598] sm:$0xff] }
 0x700   : > { %v3686_v61 = vsel %vm1201_vm3, %v3648_v25, 0.0 }
 0x701   : > { %v8287_v55 = vadd.f32 %v3686_v61, %v3685_v22  ;;  %6118 = vmatpush3.bf16.msra.mxu0 %v6117_v10  ;;  %v4511_v22 = vld [vmem:[%s8656_s7 + $0x6f8] sm:$0xff]  ;;  %v3673_v10 = vadd.f32 %v3672_v18, %v3671_v11  ;;  %v4440_v61 = vld [vmem:[%s8654_s5 + $0x20] sm:$0xff] }
 0x702   : > { %6119 = vmatprep.subr.bf16.mxu0 %v6414_v1  ;;  %v6186_v25 = vpack.c.bf16 %v4511_v22, %v4510_v37  ;;  %5495 = vmatprep.mubr.msk.f32.mxu1 %vm2054_vm4, %v4440_v61  ;;  %v4448_v11 = vld [vmem:[%s8656_s7 + $0x500] sm:$0xff] }
 0x703   : > { %v3674_v29 = vrot.slane %v3673_v10, 1  ;;  %v4468_v22 = vld [vmem:[%s8656_s7 + $0x5a0] sm:$0xff] }
 0x705   : > { %6121 = vmatpush3.bf16.msra.mxu0 %v6120_v5  ;;  %v3675_v8 = vadd.f32 %v3674_v29, %v3673_v10  ;;  %v4471_v29 = vld [vmem:[%s8656_s7 + $0x5b8] sm:$0xff] }
 0x706   : > { %6159 = vmatprep.subr.bf16.mxu0 %v6158_v13 }
 0x708   : > { %5481 = vmatmul.mubr.f32.vlgmr.msra.gmra.mrb[66].mxu0 %v3196_v53  ;;  %v4489_v53 = vld [vmem:[%s8656_s7 + $0x648] sm:$0xff] }
 0x709   : > { %6161 = vmatpush3.bf16.msra.mxu0 %v6160_v33  ;;  %5483 = vmatprep.mubr.msk.f32.mxu0 %vm6415_vm0, %v6416_v2  ;;  %v6176_v34 = vpack.c.bf16 %v4489_v53, %v4488_v60 }
 0x70a   : > { %6163 = vmatprep.subr.bf16.mxu0 %v6162_v3 }
 0x70c   : > { %5484 = vmatmul.mubr.f32.gmra.mrb[68].mxu0 %v3201_v38  ;;  %v6178_v38 = vpack.c.bf16 %v4507_v63, %v4506_v9  ;;  %v4464_v9 = vld [vmem:[%s8656_s7 + $0x580] sm:$0xff]  ;;  %v4465_v63 = vld [vmem:[%s8656_s7 + $0x588] sm:$0xff] }
 0x70d   : > { %6165 = vmatpush3.bf16.msra.mxu0 %v6164_v6  ;;  %5486 = vmatprep.mubr.msk.f32.mxu0 %vm6415_vm0, %v6416_v2  ;;  %v6126_v30 = vpack.c.bf16 %v4465_v63, %v4464_v9  ;;  %v4512_v63 = vld [vmem:[%s8656_s7 + $0x700] sm:$0xff] }
 0x70e   : > { %6167 = vmatprep.subr.bf16.mxu0 %v6166_v7 }
 0x710   : > { %5487 = vmatmul.mubr.f32.gmra.mrb[70].mxu0 %v3206_v24  ;;  %v6184_v24 = vpack.c.bf16 %v4493_v20, %v4492_v46  ;;  %v4450_v46 = vld [vmem:[%s8656_s7 + $0x510] sm:$0xff]  ;;  %v4451_v20 = vld [vmem:[%s8656_s7 + $0x518] sm:$0xff] }
 0x711   : > { %6169 = vmatpush3.bf16.msra.mxu0 %v6168_v43  ;;  %3909 = vmatprep.mubr.f32.mxu0 %v3684_v51  ;;  %v3661_v43 = vrot.slane %v8243_v28, 4  ;;  %v6132_v10 = vpack.c.bf16 %v4451_v20, %v4450_v46  ;;  %v3688_v46 = vrot.slane %v8287_v55, 4  ;;  %v4520_v20 = vld [vmem:[%s8656_s7 + $0x740] sm:$0xff] }
 0x712   : > { %6171 = vmatprep.subr.bf16.mxu0 %v6170_v45 }
 0x713   : > { %v3662_v45 = vadd.f32 %v3661_v43, %v8243_v28 }
 0x715   : > { %6173 = vmatpush3.bf16.msra.mxu0 %v6172_v59  ;;  %v3663_v56 = vrot.slane %v3662_v45, 2 }
 0x716   : > { %6175 = vmatprep.subr.bf16.mxu0 %v6174_v23 }
 0x717   : > { %v3664_v23 = vadd.f32 %v3663_v56, %v3662_v45  ;;  %v4460_v45 = vld [vmem:[%s8656_s7 + $0x560] sm:$0xff]  ;;  %v4479_v56 = vld [vmem:[%s8656_s7 + $0x5f8] sm:$0xff] }
 0x719   : > { %6177 = vmatpush3.bf16.msra.mxu0 %v6176_v34  ;;  %v3665_v15 = vrot.slane %v3664_v23, 1 }
 0x71a   : > { %6179 = vmatprep.subr.bf16.mxu0 %v6178_v38  ;;  %v4449_v38 = vld [vmem:[%s8656_s7 + $0x508] sm:$0xff] }
 0x71b   : > { %v6128_v18 = vpack.c.bf16 %v4449_v38, %v4448_v11  ;;  %v3666_v37 = vadd.f32 %v3665_v15, %v3664_v23  ;;  %v4463_v23 = vld [vmem:[%s8656_s7 + $0x578] sm:$0xff]  ;;  %v4514_v38 = vld [vmem:[%s8656_s7 + $0x710] sm:$0xff] }
 0x71c   : > { %v4515_v15 = vld [vmem:[%s8656_s7 + $0x718] sm:$0xff] }
 0x71d   : > { %6181 = vmatpush3.bf16.msra.mxu0 %v6180_v44  ;;  %v4441_v44 = vld [vmem:[%s8654_s5 + $0x28] sm:$0xff] }
 0x71e   : > { %6183 = vmatprep.subr.bf16.mxu0 %v6182_v19  ;;  %v6130_v19 = vpack.c.bf16 %v4467_v14, %v4466_v17  ;;  %v6194_v17 = vpack.c.bf16 %v4515_v15, %v4514_v38  ;;  %v4516_v14 = vld [vmem:[%s8656_s7 + $0x720] sm:$0xff] }
 0x721   : > { %6185 = vmatpush3.bf16.msra.mxu0 %v6184_v24  ;;  %v4469_v24 = vld [vmem:[%s8656_s7 + $0x5a8] sm:$0xff] }
 0x722   : > { %6187 = vmatprep.subr.bf16.mxu0 %v6186_v25  ;;  %v6134_v25 = vpack.c.bf16 %v4469_v24, %v4468_v22  ;;  %v3689_v24 = vadd.f32 %v3688_v46, %v8287_v55  ;;  %v4524_v55 = vld [vmem:[%s8656_s7 + $0x760] sm:$0xff] }
 0x725   : > { %6189 = vmatpush3.bf16.msra.mxu0 %v6188_v26  ;;  %v4470_v26 = vld [vmem:[%s8656_s7 + $0x5b0] sm:$0xff] }
 0x726   : > { %v6138_v61 = vpack.c.bf16 %v4471_v29, %v4470_v26  ;;  %v4525_v26 = vld [vmem:[%s8656_s7 + $0x768] sm:$0xff] }
 0x727   : > { %v6209_v29 = vpack.c.bf16 %v4525_v26, %v4524_v55 }
 0x728   : > { %3910 = vmatmul.mubr.f32.vlgmr.msra.gmra.mrb[72].mxu0 %v3675_v8  ;;  %v6136_v8 = vpack.c.bf16 %v4453_v16, %v4452_v21  ;;  %v3690_v16 = vrot.slane %v3689_v24, 2 }
 0x7bb   : > { %v5003_v5 = vpop.f32.mrb[60].mxu0  ;;  %v5044_v13 = vpop.f32.mrb[62].mxu1 }
 0x7bc   : > { %v5004_v31 = vpop.f32.mrb[61].mxu0  ;;  %v5045_v32 = vpop.f32.mrb[63].mxu1 }
 0x7bd   : > { %v5005_v48 = vadd.f32 %v5004_v31, %v5003_v5  ;;  %v5046_v47 = vadd.f32 %v5045_v32, %v5044_v13  ;;  %v4454_v5 = vld [vmem:[%s8656_s7 + $0x530] sm:$0xff]  ;;  %v4455_v13 = vld [vmem:[%s8656_s7 + $0x538] sm:$0xff]  ;;  %v4472_v31 = vld [vmem:[%s8656_s7 + $0x5c0] sm:$0xff] }
 0x7be   : > { %v6140_v32 = vpack.c.bf16 %v4455_v13, %v4454_v5  ;;  %v3691_v5 = vadd.f32 %v3690_v16, %v3689_v24 }
 0x7bf   : > { %v5006_v62 = vpop.f32.mrb[62].mxu0  ;;  %v3435_v4 = vadd.f32 %v5046_v47, %v5005_v48  ;;  %v4473_v48 = vld [vmem:[%s8656_s7 + $0x5c8] sm:$0xff]  ;;  %v3652_v47 = vrot.slane %v8237_v12, 4 }
 0x7c0   : > { %v5047_v33 = vpop.f32.mrb[64].mxu1  ;;  %v5007_v3 = vpop.f32.mrb[63].mxu0 }
 0x7c1   : > { %v5008_v0 = vadd.f32 %v5007_v3, %v5006_v62  ;;  %v5048_v35 = vpop.f32.mrb[65].mxu1  ;;  %v6142_v62 = vpack.c.bf16 %v4473_v48, %v4472_v31  ;;  %v4457_v3 = vld [vmem:[%s8656_s7 + $0x548] sm:$0xff]  ;;  %v3692_v31 = vrot.slane %v3691_v5, 1 }
 0x7c2   : > { %v5049_v39 = vadd.f32 %v5048_v35, %v5047_v33  ;;  %v4456_v33 = vld [vmem:[%s8656_s7 + $0x540] sm:$0xff] }
 0x7c3   : > { %v5009_v40 = vpop.f32.mrb[64].mxu0  ;;  %v6144_v35 = vpack.c.bf16 %v4457_v3, %v4456_v33  ;;  %v3693_v48 = vadd.f32 %v3692_v31, %v3691_v5 }
 0x7c4   : > { %v5050_v6 = vpop.f32.mrb[66].mxu1  ;;  %v5010_v7 = vpop.f32.mrb[65].mxu0  ;;  %v3440_v52 = vadd.f32 %v5049_v39, %v5008_v0  ;;  %v4475_v0 = vld [vmem:[%s8656_s7 + $0x5d8] sm:$0xff]  ;;  %v3653_v39 = vadd.f32 %v3652_v47, %v8237_v12 }
 0x7c5   : > { %v5011_v41 = vadd.f32 %v5010_v7, %v5009_v40  ;;  %v5051_v58 = vpop.f32.mrb[67].mxu1  ;;  %v4459_v7 = vld [vmem:[%s8656_s7 + $0x558] sm:$0xff] }
 0x7c6   : > { %v5052_v36 = vadd.f32 %v5051_v58, %v5050_v6  ;;  %v4458_v6 = vld [vmem:[%s8656_s7 + $0x550] sm:$0xff] }
 0x7c7   : > { %v6148_v58 = vpack.c.bf16 %v4459_v7, %v4458_v6 }
 0x7c8   : > { %v3445_v42 = vadd.f32 %v5052_v36, %v5011_v41  ;;  %v4477_v41 = vld [vmem:[%s8656_s7 + $0x5e8] sm:$0xff]  ;;  %v3654_v36 = vrot.slane %v3653_v39, 2 }
 0x7db   : > { %v3514_v27 = vpop.f32.mrb[66].mxu0 }
 0x7dc   : > { %v3515_v49 = vadd.f32 %v3514_v27, %v3435_v4  ;;  %v5482_v51 = vpop.f32.mrb[67].mxu0  ;;  %v4474_v4 = vld [vmem:[%s8656_s7 + $0x5d0] sm:$0xff]  ;;  %v4461_v27 = vld [vmem:[%s8656_s7 + $0x568] sm:$0xff] }
 0x7dd   : > { %v6146_v40 = vpack.c.bf16 %v4475_v0, %v4474_v4  ;;  %v4478_v51 = vld [vmem:[%s8656_s7 + $0x5f0] sm:$0xff] }
 0x7df   : > { %v3519_v57 = vpop.f32.mrb[68].mxu0 }
 0x7e0   : > { %v3520_v59 = vadd.f32 %v3519_v57, %v3440_v52  ;;  %v5485_v54 = vpop.f32.mrb[69].mxu0  ;;  %v4476_v52 = vld [vmem:[%s8656_s7 + $0x5e0] sm:$0xff]  ;;  %v6152_v57 = vpack.c.bf16 %v4461_v27, %v4460_v45 }
 0x7e1   : > { %v6150_v43 = vpack.c.bf16 %v4477_v41, %v4476_v52  ;;  %v4462_v54 = vld [vmem:[%s8656_s7 + $0x570] sm:$0xff] }
 0x7e2   : > { %v6122_v60 = vpack.c.bf16 %v3520_v59, %v3515_v49  ;;  %v6154_v59 = vpack.c.bf16 %v4479_v56, %v4478_v51 }
 0x7e3   : > { %v3524_v53 = vpop.f32.mrb[70].mxu0 }
 0x7e4   : > { %v3525_v34 = vadd.f32 %v3524_v53, %v3445_v42  ;;  %v5488_v28 = vpop.f32.mrb[71].mxu0  ;;  %6123 = vmatprep.subr.bf16.mxu1 %v6122_v60  ;;  %v6156_v53 = vpack.c.bf16 %v4463_v23, %v4462_v54 }
 0x7e5   : > { %6125 = vmatpush3.bf16.msra.mxu1 %v6122_v60  ;;  %v3655_v60 = vadd.f32 %v3654_v36, %v3653_v39 }
 0x7e6   : > { %5493 = vmatprep.subr.msk.mxu1 %vm1201_vm3, %v3525_v34 }
 0x7e7   : > { %v3656_v9 = vrot.slane %v3655_v60, 1 }
 0x7e9   : > { %5494 = vmatpush3.msk.msra.mxu1 %vm1201_vm3, %v3525_v34  ;;  %v4513_v34 = vld [vmem:[%s8656_s7 + $0x708] sm:$0xff]  ;;  %v3657_v11 = vadd.f32 %v3656_v9, %v3655_v60 }
 0x7ea   : > { %5496 = vmatmul.mubr.msk.f32.vlgmr.msra.gmra.mrb[36].mxu1 %vm2054_vm4, %v4441_v44  ;;  %6127 = vmatprep.subr.bf16.mxu1 %v6126_v30  ;;  %v6191_v28 = vpack.c.bf16 %v4513_v34, %v4512_v63  ;;  %v4517_v30 = vld [vmem:[%s8656_s7 + $0x728] sm:$0xff] }
 0x7eb   : > { %6129 = vmatpush3.bf16.msra.mxu1 %v6128_v18  ;;  %3839 = vmatprep.mubr.f32.mxu1 %v3666_v37  ;;  %v6197_v44 = vpack.c.bf16 %v4517_v30, %v4516_v14  ;;  %v4518_v18 = vld [vmem:[%s8656_s7 + $0x730] sm:$0xff]  ;;  %v4521_v37 = vld [vmem:[%s8656_s7 + $0x748] sm:$0xff] }
 0x7ec   : > { %6131 = vmatprep.subr.bf16.mxu1 %v6130_v19  ;;  %v6203_v22 = vpack.c.bf16 %v4521_v37, %v4520_v20 }
 0x7ef   : > { %6133 = vmatpush3.bf16.msra.mxu1 %v6132_v10  ;;  %v4522_v10 = vld [vmem:[%s8656_s7 + $0x750] sm:$0xff] }
 0x7f0   : > { %6135 = vmatprep.subr.bf16.mxu1 %v6134_v25  ;;  %v4523_v25 = vld [vmem:[%s8656_s7 + $0x758] sm:$0xff] }
 0x7f1   : > { %v6206_v21 = vpack.c.bf16 %v4523_v25, %v4522_v10 }
 0x7f3   : > { %6137 = vmatpush3.bf16.msra.mxu1 %v6136_v8  ;;  %v4526_v8 = vld [vmem:[%s8656_s7 + $0x770] sm:$0xff] }
 0x7f4   : > { %6139 = vmatprep.subr.bf16.mxu1 %v6138_v61  ;;  %v4527_v61 = vld [vmem:[%s8656_s7 + $0x778] sm:$0xff] }
 0x7f5   : > { %v6212_v13 = vpack.c.bf16 %v4527_v61, %v4526_v8 }
 0x7f7   : > { %6141 = vmatpush3.bf16.msra.mxu1 %v6140_v32  ;;  %v3996_v32 = vpop.permute.xlu1 %3995 }
 0x7f8   : > { %6143 = vmatprep.subr.bf16.mxu1 %v6142_v62 }
 0x7fb   : > { %6145 = vmatpush3.bf16.msra.mxu1 %v6144_v35  ;;  %v5144_v12 = vpop.f32.mrb[72].mxu0 }
 0x7fc   : > { %v5145_v42 = vpop.f32.mrb[73].mxu0  ;;  %6147 = vmatprep.subr.bf16.mxu1 %v6146_v40 }
 0x7fd   : > { %v8484_v49 = vadd.f32 %v5145_v42, %v5144_v12 }
 0x7ff   : > { %6149 = vmatpush3.bf16.msra.mxu1 %v6148_v58 }
 0x800   : > { %6151 = vmatprep.subr.bf16.mxu1 %v6150_v43 }
 0x803   : > { %6153 = vmatpush3.bf16.msra.mxu1 %v6152_v57 }
 0x804   : > { %6155 = vmatprep.subr.bf16.mxu1 %v6154_v59 }
 0x807   : > { %6157 = vmatpush3.bf16.msra.mxu1 %v6156_v53 }
 0x808   : > { %6190 = vmatprep.subr.bf16.mxu1 %v6414_v1 }
 0x80a   : > { %3840 = vmatmul.mubr.f32.vlgmr.msra.gmra.mrb[68].mxu1 %v3657_v11 }
 0x80b   : > { %6192 = vmatpush3.bf16.msra.mxu1 %v6191_v28  ;;  %5530 = vmatprep.mubr.msk.f32.mxu1 %vm6415_vm0, %v6416_v2  ;;  %v4519_v2 = vld [vmem:[%s8656_s7 + $0x738] sm:$0xff] }
 0x80c   : > { %6193 = vmatprep.subr.bf16.mxu1 %v6414_v1  ;;  %v6200_v19 = vpack.c.bf16 %v4519_v2, %v4518_v18 }
 0x80f   : > { %6195 = vmatpush3.bf16.msra.mxu1 %v6194_v17 }
 0x810   : > { %6196 = vmatprep.subr.bf16.mxu1 %v6414_v1 }
 0x813   : > { %6198 = vmatpush3.bf16.msra.mxu1 %v6197_v44 }
 0x814   : > { %6199 = vmatprep.subr.bf16.mxu1 %v6414_v1 }
 0x817   : > { %6201 = vmatpush3.bf16.msra.mxu1 %v6200_v19 }
 0x818   : > { %6202 = vmatprep.subr.bf16.mxu1 %v6414_v1 }
 0x81b   : > { %6204 = vmatpush3.bf16.msra.mxu1 %v6203_v22 }
 0x81c   : > { %6205 = vmatprep.subr.bf16.mxu1 %v6414_v1 }
 0x81f   : > { %6207 = vmatpush3.bf16.msra.mxu1 %v6206_v21 }
 0x820   : > { %6208 = vmatprep.subr.bf16.mxu1 %v6414_v1 }
 0x823   : > { %6210 = vmatpush3.bf16.msra.mxu1 %v6209_v29 }
 0x824   : > { %6211 = vmatprep.subr.bf16.mxu1 %v6414_v1 }
 0x827   : > { %6213 = vmatpush3.bf16.msra.mxu1 %v6212_v13 }
 0x82a   : > { %5531 = vmatmul.mubr.f32.vlgmr.msra.gmra.mrb[70].mxu1 %v3693_v48 }
 0x8bd   : > { %v5497_v47 = vpop.f32.mrb[36].mxu1 }
 0x8be   : > { %v3999_v1 = vadd.f32 %v5497_v47, %v3996_v32  ;;  %v3606_v62 = vpop.f32.mrb[37].mxu1 }
 0x8bf   : > { %v3998_v33 = vadd.f32 %v3996_v32, %v3606_v62 }
 0x8c0   : > { %4001 = vst.msk [vmem:[%s400_s26 + $0x8] sm:$0xff] %vm418_vm1, %v3999_v1 }
 0x8c1   : > { %4000 = vst.msk [vmem:[%s400_s26] sm:$0xff] %vm418_vm1, %v3998_v33 }
 0x8c2   : > { %6324 = shalt.err (!%p6321_p7)
}
 0x8c3   : > { %s6325_s26 = scalar_lea.hbm %s8568_s23, 256  ;;  %s6329_s18 = scalar_lea.hbm %s8659_s10, 512 }
 0x8c4   : > { %p6326_p8 = scmp.ne.s32.totalorder %s8568_s23, %s6325_s26  ;;  %p6330_p1 = scmp.lt.u32.totalorder %s8568_s23, %s8659_s10 }
 0x8c5   : > { %p6331_p0 = scmp.lt.u32.totalorder %s6329_s18, %s6325_s26  ;;  %p6333_p6 = scmp.lt.u32.totalorder %s6325_s26, %s8568_s23 }
 0x8c6   : > { %p6327_p11 = pnand %p6326_p8, %p8673_p9 }
 0x8c7   : > { %p6332_p5 = por %p6331_p0, %p6330_p1 }
 0x8c8   : > { %p6328_p13 = pneg %p6327_p11 }
 0x8c9   : > { %p6334_p10 = por %p6333_p6, %p6332_p5 }
 0x8cb   : > { %p6335_p12 = pnand %p6334_p10, %p6328_p13 }
 0x8cd   : > { %6338 = shalt.err (!%p6335_p12)
}
 0x8ce   : > { %s6419_s0 = smov 128   ;;  %s6420_s30 = smov 8   ;;  %v4002_v7 = vld [vmem:[%s8658_s9] sm:$0x1] }
 0x8cf   : > { %6222 = dma.vmem_to_hbm [thread:$0]  (%p8673_p9), %s8563_s12, 256, %s8568_s23, %s4006_s13, %s6419_s0, %s6419_s0, %s6420_s30  }
 0x8d0   : > { %s4532_s16 = sshll.u32 %s6506_s8, 4  ;;  %s406_s18 = scalar_lea.vmem [#allocation7], %s8559_s17 }
 0x8d1   : > { %s4039_s14 = sshll.u32 %s406_s18, 4  ;;  %s8606_s13 = scalar_lea.hbm %s8660_s11, %s4532_s16  ;;  %s8608_s14 = int_to_ptr.vmem [resolvable:$true] %s4039_s14 }
 0x8d2   : > { %s4011_s25 = scalar_lea.sflag [#allocation8], %s8559_s17  ;;  %s6339_s0 = scalar_lea.vmem %s8608_s14, 16 }
 0x8d3   : > { %p6340_p2 = scmp.ne.s32.totalorder %s8608_s14, %s6339_s0  ;;  %s6421_s8 = smov [#allocation7]  }
 0x8d4   : > { %s6343_s30 = sshll.u32 %s6421_s8, 4  ;;  %s6344_s30 = int_to_ptr.vmem [resolvable:$false] %s6343_s30 }
 0x8d5   : > { %p6341_p3 = pnand %p6340_p2, %p8673_p9  ;;  %s6345_s26 = scalar_lea.vmem %s6344_s30, 32 }
 0x8d6   : > { %p6346_p7 = scmp.lt.s32.totalorder %s8608_s14, %s6344_s30  ;;  %p6347_p8 = scmp.lt.s32.totalorder %s6345_s26, %s6339_s0 }
 0x8d7   : > { %p6342_p4 = pneg %p6341_p3 }
 0x8d8   : > { %p6348_p11 = por %p6347_p8, %p6346_p7 }
 0x8da   : > { %p6349_p13 = pnand %p6348_p11, %p6342_p4 }
 0x8dd   : > { %v5109_v3 = vpop.f32.mrb[68].mxu1 }
 0x8de   : > { %v5110_v4 = vpop.f32.mrb[69].mxu1 }
 0x8df   : > { %v5111_v0 = vadd.f32 %v5110_v4, %v5109_v3 }
 0x8e1   : > { %v3912_v35 = vadd.f32 %v8484_v49, %v5111_v0 }
 0x8fd   : > { %v3981_v39 = vpop.f32.mrb[70].mxu1 }
 0x8fe   : > { %v3982_v40 = vadd.f32 %v3981_v39, %v3912_v35  ;;  %v5532_v6 = vpop.f32.mrb[71].mxu1 }
 0x900   : > { %v3987_v52 = vadd.f32 %v3982_v40, %v7972_v50 }
 0x902   : > { %v4003_v41 = vadd.f32 %v4002_v7, %v3987_v52 }
 0x904   : > { %4004 = vst [vmem:[%s406_s18] sm:$0x1] %v4003_v41 }
 0x905   : > { %6352 = shalt.err (!%p6349_p13)
}
 0x906   : > { %s6353_s17 = scalar_lea.hbm %s8606_s13, 16  ;;  %s6357_s18 = scalar_lea.hbm %s8660_s11, 32 }
 0x907   : > { %p6354_p1 = scmp.ne.s32.totalorder %s8606_s13, %s6353_s17  ;;  %p6358_p6 = scmp.lt.u32.totalorder %s8606_s13, %s8660_s11 }
 0x908   : > { %p6359_p10 = scmp.lt.u32.totalorder %s6357_s18, %s6353_s17  ;;  %p6361_p2 = scmp.lt.u32.totalorder %s6353_s17, %s8606_s13 }
 0x909   : > { %p6355_p0 = pnand %p6354_p1, %p8673_p9 }
 0x90a   : > { %p6360_p12 = por %p6359_p10, %p6358_p6 }
 0x90b   : > { %p6356_p5 = pneg %p6355_p0 }
 0x90c   : > { %p6362_p3 = por %p6361_p2, %p6360_p12 }
 0x90e   : > { %p6363_p4 = pnand %p6362_p3, %p6356_p5 }
 0x910   : > { %6366 = shalt.err (!%p6363_p4)
}
 0x911   : > { %6223 = dma.vmem_to_hbm [thread:$0]  (%p8673_p9), %s8608_s14, 16, %s8606_s13, %s4011_s25  }
 0x912 PF: > { %p6239_p7 = scmp.ge.s32.totalorder %s6409_s22, 2  ;;  %s4051_s0 = sand.u32 1, %s6397_s19  }
 0x913   : > { %p8674_p8 = scmp.ne.s32.totalorder %s8666_s29, 0  ;;  %s4052_s8 = scalar_lea.sflag [#allocation5], %s4051_s0 }
 0x915   : > { %p6231_p11 = pnand %p6239_p7, %p8674_p8 }
 0x917   : > { %6388 = dma.done.wait (!%p6231_p11), %s4052_s8, 256  }
 0x918   : > { %6390 = vsyncadd (!%p6231_p11), %s4052_s8, 4294967040  ;;  %s4061_s30 = scalar_lea.sflag [#allocation8], %s4051_s0 }
 0x919   : > { %6392 = dma.done.wait (!%p6231_p11), %s4061_s30, 16  }
 0x91a   : > { %6394 = vsyncadd (!%p6231_p11), %s4061_s30, 4294967280  ;;  %p28_p9 = scmp.ge.s32.totalorder %s6510_s24, 4   ;;  %s8675_s19 = smov %s6401_s20 }
 0x91b   : > { %s8676_s20 = smov %s6405_s21  ;;  %s8677_s21 = smov %s6521_s27 }
 0x91c   : > { %s8678_s22 = smov %s6510_s24  ;;  %30 = sbr.rel (!%p28_p9) target bundleno = 9 (0x9), region = 129 }
 0x923   :  { %4065 = vsyncpa [#allocation4], 1 }
 0x924   :  { %4067 = vsyncpa [#allocation4 + $0x1], 1 }
 0x925   :  { %4068 = vsyncpa [#allocation5], 1 }
 0x926   :  { %4070 = vsyncpa [#allocation5 + $0x1], 1 }
 0x927   :  { %4071 = vsyncpa [#allocation8], 1 }
 0x928   :  { %4073 = vsyncpa [#allocation8 + $0x1], 1 }

</bundles_post_ra>
